<compile_context>
chip_gen: v7x
topology: tpu7x:2x2x1
jax: 0.10.0
libtpu: 0.0.40
codegen_flags: <defaults>
</compile_context>

<pallas_src>
import functools
import math

import jax
import jax.numpy as jnp
from jax import lax
from jax.experimental import pallas as pl
from jax.experimental.pallas import tpu as pltpu


# Polynomial atan on [0, 1] (Abramowitz & Stegun 4.4.49, |err| <= 2e-8).
_ATAN_COEFFS = (-0.3333314528, 0.1999355085, -0.1420889944, 0.1065626393,
                -0.0752896400, 0.0429096138, -0.0161657367, 0.0028662257)


def _atan2(y, x):
    """Branch-free atan2 built only from ops with guaranteed Mosaic lowerings.

    atan2(0, 0) == 0, matching EquiCtsConvBase.PolarCoords.
    """
    ax = jnp.abs(x)
    ay = jnp.abs(y)
    amax = jnp.maximum(ax, ay)
    amin = jnp.minimum(ax, ay)
    denom = jnp.where(amax == 0.0, 1.0, amax)
    z = amin * pl.reciprocal(denom, approx=True)           # EUP slot; VALU stays free
    z2 = z * z
    p = jnp.full_like(z, _ATAN_COEFFS[-1])
    for c in _ATAN_COEFFS[-2::-1]:
        p = p * z2 + c
    a = z + z * z2 * p                                     # atan(z) on [0, 1]
    a = jnp.where(ay > ax, 0.5 * math.pi - a, a)
    a = jnp.where(x < 0.0, math.pi - a, a)
    a = jnp.where(y < 0.0, -a, a)
    return jnp.where((x == 0.0) & (y == 0.0), jnp.zeros_like(a), a)


def _equi_conv_kernel(amask_ref, field_ref, centerT_ref, featT_ref, km_ref,
                      out_ref, fk_ref, acc_ref, psi_ref, *,
                      radius, num_r, num_theta,
                      use_attention, normalize_attention, dot_dtype):
    """One (batch b, m-tile i, n-tile j) grid step.

    amask_ref   : [1, tn, 1]    attention mask / padding validity per field point
    field_ref   : [1, tn, 2]    field positions
    centerT_ref : [1, 2, tm]    center positions, transposed (m on lanes)
    featT_ref   : [1, F, tn]    field features, transposed, F = c_in*2 (f = i*2 + x)
    km_ref      : [G*OY, F]     kernel table, rows (t, r, oy); G = T*R, OY = c_out*2
    out_ref     : [1, OY, tm]   lane-dense output block (resident over j)
    fk_ref      : [G*OY, tn]    scratch: kernel-table x feature products (per n tile)
    acc_ref     : [OY, tm]      scratch: output accumulator over n tiles
    psi_ref     : [1, tm]       scratch: attention normalizer (lane-dense)
    """
    j = pl.program_id(2)
    nj = pl.num_programs(2)

    f32 = jnp.float32
    W = num_r
    T = num_theta
    h_in = T + 2                       # grid_sample height of the theta-padded kernel
    tm = centerT_ref.shape[2]
    tn = featT_ref.shape[2]
    GOY = km_ref.shape[0]
    OY = GOY // (T * W)
    WOY = W * OY

    # ---- fk[(t, r, oy), n] = sum_f km[(t,r,oy), f] * feat[n, f]  (tiny K=F dot) ----
    featT = featT_ref[0]                                   # [F, tn]
    fk_all = jnp.dot(km_ref[...].astype(dot_dtype), featT.astype(dot_dtype),
                     preferred_element_type=f32)           # [G*OY, tn], f32 acc
    fk_ref[...] = fk_all

    # ---- relative field / polar coords, [tn (sublanes), tm (lanes)] ---------------
    fpos = field_ref[0]                                    # [tn, 2]
    cpos = centerT_ref[0]                                  # [2, tm]
    inv_rad = 1.0 / radius
    relx = (fpos[:, 0:1] - cpos[0:1, :]) * inv_rad         # [tn, tm]
    rely = (fpos[:, 1:2] - cpos[1:2, :]) * inv_rad
    amask = amask_ref[0]                                   # [tn, 1]

    r2 = relx * relx + rely * rely
    r = jnp.sqrt(r2 + 1e-9)                                # PolarCoords epsilon
    theta = _atan2(rely, relx)

    if use_attention:
        u = jnp.maximum(1.0 - r2, 0.0)
        att = (u * u * u) * amask                          # [tn, tm]
    else:
        att = jnp.broadcast_to(amask, (tn, tm))            # padding-validity only

    if normalize_attention:
        psi_part = jnp.sum(att, axis=0, keepdims=True)     # [1, tm] lane-dense

    # ---- bilinear grid_sample coords (align_corners=False, zero pad on r axis) ----
    gx = 2.0 * r - 1.0
    gy = theta * (float(T) / (math.pi * float(h_in)))
    ix = ((gx + 1.0) * W - 1.0) * 0.5
    iy = ((gy + 1.0) * h_in - 1.0) * 0.5
    x0f = jnp.floor(ix)
    y0f = jnp.floor(iy)
    wx1 = ix - x0f
    wx0 = 1.0 - wx1
    wy1 = iy - y0f
    wy0 = 1.0 - wy1
    x0 = x0f.astype(jnp.int32)
    x1 = x0 + 1
    y0 = y0f.astype(jnp.int32)

    # theta axis: padded corner index y in [0, T+1] wraps onto raw index (y-1) mod T.
    # |theta| <= pi  =>  iy in [0.5, T+0.5]  =>  y0 in [0, T], y1 = y0+1 in [1, T+1].
    t0 = jnp.where(y0 == 0, T - 1, y0 - 1)
    t1 = jnp.where(y0 >= T, y0 - T, y0)

    zero = jnp.zeros_like(wx0)
    # r-axis one-hots (separable); out-of-range corners never match -> zero padding.
    w_r = [jnp.where(x0 == rr, wx0, zero) + jnp.where(x1 == rr, wx1, zero)
           for rr in range(W)]
    # fold attention into the two theta corner weights (2 multiplies, not W or G).
    wy0a = wy0 * att
    wy1a = wy1 * att

    # ---- slab loop over theta bins: bounded live set, lane-dense [OY, tm] acc -----
    def slab_body(tt, acc):
        w_t = jnp.where(t0 == tt, wy0a, zero) + jnp.where(t1 == tt, wy1a, zero)
        start = tt * WOY
        if WOY % 8 == 0:
            start = pl.multiple_of(start, 8)
        fk_slab = fk_ref[pl.ds(start, WOY), :]             # [W*OY, tn]
        for rr in range(W):
            wrn = (w_t * w_r[rr]).astype(dot_dtype)        # [tn, tm]
            fk_r = fk_slab[rr * OY:(rr + 1) * OY, :].astype(dot_dtype)  # [OY, tn]
            acc = acc + jnp.dot(fk_r, wrn, preferred_element_type=f32)
        return acc

    acc = lax.fori_loop(0, T, slab_body, jnp.zeros((OY, tm), f32))

    # ---- accumulate across n tiles; normalize + store on the last one -------------
    @pl.when(j == 0)
    def _init_write():
        acc_ref[...] = acc                                  # direct write, no zero-init
        if normalize_attention:
            psi_ref[...] = psi_part

    @pl.when(j > 0)
    def _accumulate():
        acc_ref[...] = acc_ref[...] + acc
        if normalize_attention:
            psi_ref[...] = psi_ref[...] + psi_part

    @pl.when(j == nj - 1)
    def _finalize():
        res = acc_ref[...]
        if normalize_attention:
            psi = psi_ref[...]
            psi = jnp.where(psi == 0.0, 1.0, psi)
            res = res * (1.0 / psi)                         # [OY, tm] * [1, tm]
        out_ref[0] = res.astype(out_ref.dtype)


def _round_up(a, b):
    return ((a + b - 1) // b) * b


def equi_cts_conv_forward(field, center, field_feat, field_mask, kernel, *,
                          radius, num_r, num_theta,
                          use_attention=True, normalize_attention=True,
                          dot_dtype=jnp.bfloat16,
                          tm_max=128, tn_max=256):
    """Pallas TPU implementation of EquiCtsConvBase.forward / ContinuousConv.

    field       [B, N, 2], center [B, M, 2], field_feat [B, N, c_in, 2],
    field_mask  [B, N, 1], kernel [c_out, c_in, num_r, num_theta, 2, 2]
    returns     [B, M, c_out, 2]
    """
    f32 = jnp.float32
    field = field.astype(f32)
    center = center.astype(f32)
    field_feat = field_feat.astype(f32)
    field_mask = field_mask.astype(f32)
    kernel = kernel.astype(f32)

    B, N, _ = field.shape
    M = center.shape[1]
    c_out, c_in = kernel.shape[0], kernel.shape[1]
    F = c_in * 2
    OY = c_out * 2
    T = num_theta
    W = num_r
    G = T * W

    # ---- tiling: n (field pts) on sublanes / contraction, m (centers) on lanes ----
    tn = min(tn_max, _round_up(N, 128))
    tn = max(128, (tn // 128) * 128)
    n_pad = _round_up(N, tn)

    m8 = _round_up(M, 8)
    if m8 <= max(tm_max, 8):
        tm = m8                                   # single lane-dense m tile (== full)
        m_pad = m8
    else:
        tm = max(128, (tm_max // 128) * 128)      # lane dim must be a multiple of 128
        m_pad = _round_up(M, tm)

    # ---- wrapper-side layout plumbing, O(B*(M+N)) + O(kernel) only ----------------
    fieldP = jnp.pad(field, ((0, 0), (0, n_pad - N), (0, 0)))            # [B, n_pad, 2]
    centerT = jnp.pad(jnp.transpose(center, (0, 2, 1)),
                      ((0, 0), (0, 0), (0, m_pad - M)))                  # [B, 2, m_pad]
    featT = jnp.pad(jnp.transpose(field_feat.reshape(B, N, F), (0, 2, 1)),
                    ((0, 0), (0, 0), (0, n_pad - N)))                    # [B, F, n_pad]
    if use_attention:
        # padded field points carry mask 0 -> contribute nothing
        amask = jnp.pad(field_mask.reshape(B, N), ((0, 0), (0, n_pad - N)))
    else:
        # torch reference ignores field_mask here; only mask out the padding
        amask = jnp.broadcast_to((jnp.arange(n_pad) < N).astype(f32)[None, :],
                                 (B, n_pad))
    amask = amask.reshape(B, n_pad, 1)

    # kernel table, rows ordered (t, r, oy), columns f = i*2 + x  -> [G*OY, F]
    km = jnp.transpose(kernel, (3, 2, 0, 4, 1, 5)).reshape(G * OY, F)

    kern = functools.partial(
        _equi_conv_kernel,
        radius=float(radius), num_r=W, num_theta=T,
        use_attention=bool(use_attention),
        normalize_attention=bool(normalize_attention),
        dot_dtype=dot_dtype)

    grid = (B, m_pad // tm, n_pad // tn)

    outT = pl.pallas_call(
        kern,
        out_shape=jax.ShapeDtypeStruct((B, OY, m_pad), f32),
        grid_spec=pltpu.PrefetchScalarGridSpec(
            num_scalar_prefetch=0,
            grid=grid,
            in_specs=[
                pl.BlockSpec((1, tn, 1), lambda b, i, j: (b, j, 0)),   # mask / validity
                pl.BlockSpec((1, tn, 2), lambda b, i, j: (b, j, 0)),   # field positions
                pl.BlockSpec((1, 2, tm), lambda b, i, j: (b, 0, i)),   # center positions^T
                pl.BlockSpec((1, F, tn), lambda b, i, j: (b, 0, j)),   # field features^T
                pl.BlockSpec((G * OY, F), lambda b, i, j: (0, 0)),     # kernel table (resident)
            ],
            out_specs=pl.BlockSpec((1, OY, tm), lambda b, i, j: (b, 0, i)),
            scratch_shapes=[
                pltpu.VMEM((G * OY, tn), f32),   # fk = kernel-table x features (per n tile)
                pltpu.VMEM((OY, tm), f32),       # lane-dense output accumulator
                pltpu.VMEM((1, tm), f32),        # lane-dense psi accumulator
            ],
        ),
        compiler_params=pltpu.CompilerParams(
            dimension_semantics=("parallel", "parallel", "arbitrary"),
            vmem_limit_bytes=32 * 1024 * 1024),
    )(amask, fieldP, centerT, featT, km)

    out = jnp.transpose(outT, (0, 2, 1))[:, :M, :]                       # [B, M, OY]
    return out.reshape(B, M, c_out, 2)


def _reference(field, center, field_feat, field_mask, kernel, *,
               radius, num_r, num_theta, use_attention, normalize_attention):
    """Pure-JAX transliteration of the PyTorch ContinuousConv (for validation)."""
    B, N, _ = field.shape
    M = center.shape[1]
    T = num_theta
    H = T + 2
    W = num_r
    rel = (field[:, None, :, :] - center[:, :, None, :]) / radius        # [B,M,N,2]
    r = jnp.sqrt(rel[..., 0] ** 2 + rel[..., 1] ** 2 + 1e-9)
    nz = ~((rel[..., 0] == 0.0) & (rel[..., 1] == 0.0))
    theta = jnp.where(nz, jnp.arctan2(rel[..., 1], rel[..., 0]), 0.0)
    gx = 2.0 * r - 1.0
    gy = theta / math.pi * (T / (T + 2))
    ix = ((gx + 1.0) * W - 1.0) * 0.5
    iy = ((gy + 1.0) * H - 1.0) * 0.5
    x0 = jnp.floor(ix).astype(jnp.int32)
    y0 = jnp.floor(iy).astype(jnp.int32)
    wx1 = ix - jnp.floor(ix)
    wy1 = iy - jnp.floor(iy)
    corners = [(y0, x0, (1 - wy1) * (1 - wx1)), (y0, x0 + 1, (1 - wy1) * wx1),
               (y0 + 1, x0, wy1 * (1 - wx1)), (y0 + 1, x0 + 1, wy1 * wx1)]
    kpad = jnp.concatenate([kernel[:, :, :, -1:], kernel, kernel[:, :, :, :1]],
                           axis=3)                                        # [o,i,r,t',y,x]
    k_interp = 0.0
    for (yy, xx, w) in corners:
        valid = ((xx >= 0) & (xx < W) & (yy >= 0) & (yy < H)).astype(jnp.float32)
        xc = jnp.clip(xx, 0, W - 1)
        yc = jnp.clip(yy, 0, H - 1)
        vals = kpad[:, :, xc, yc, :, :]                  # [o, i, B, M, N, 2, 2]
        vals = jnp.transpose(vals, (2, 3, 4, 0, 1, 5, 6))
        k_interp = k_interp + vals * (w * valid)[..., None, None, None, None]
    if use_attention:
        att = jnp.maximum((1.0 - (rel ** 2).sum(-1)) ** 3, 0.0)[..., None]
        att = att * field_mask[:, None]
    else:
        att = jnp.ones((B, M, N, 1), jnp.float32)
    if normalize_attention:
        psi = att.sum(axis=2)[..., 0]
        psi = jnp.where(psi == 0.0, 1.0, psi)[..., None, None]
    else:
        psi = 1.0
    att_feat = field_feat[:, None] * att[..., None]
    out = jnp.einsum('bmnoiyx,bmnix->bmoy', k_interp, att_feat,
                     precision=lax.Precision.HIGHEST)
    return out / psi


if __name__ == "__main__":
    key = jax.random.PRNGKey(0)

    def make_inputs(k, B, M, N, c_in, c_out, num_r, num_theta):
        k1, k2, k3, k4, k5 = jax.random.split(k, 5)
        field = jax.random.uniform(k1, (B, N, 2), jnp.float32, -1.0, 1.0)
        center = jax.random.uniform(k2, (B, M, 2), jnp.float32, -1.0, 1.0)
        field_feat = jax.random.normal(k3, (B, N, c_in, 2), jnp.float32)
        field_mask = (jax.random.uniform(k4, (B, N, 1)) > 0.2).astype(jnp.float32)
        # deterministic stand-in for computeKernel(): [c_out, c_in, num_r, num_theta, 2, 2]
        kernel = 0.1 * jax.random.normal(
            k5, (c_out, c_in, num_r, num_theta, 2, 2), jnp.float32)
        return field, center, field_feat, field_mask, kernel

    radius = 1.5
    num_r, num_theta = 4, 8
    c_in, c_out = 4, 4

    cases = [
        # (B,   M,   N, use_att, norm_att, dot_dtype,    atol,  rtol)
        (2,    8,  16,  True,   True,     jnp.float32,  1e-3,  1e-3),
        (2,    8,  16,  False,  True,     jnp.float32,  1e-3,  1e-3),
        # multiple m/n tiles, M/N not multiples of the tile sizes (exercises j>0
        # accumulation, padding, and the psi / output residency paths)
        (2,  137, 300,  True,   True,     jnp.float32,  1e-3,  1e-3),
        # default fast path: bf16 MXU operands, f32 accumulation
        (2,  137, 300,  True,   True,     jnp.bfloat16, 2e-2,  2e-2),
    ]
    for idx, (B, M, N, use_att, norm_att, ddt, atol, rtol) in enumerate(cases):
        field, center, field_feat, field_mask, kernel = make_inputs(
            jax.random.fold_in(key, idx), B, M, N, c_in, c_out, num_r, num_theta)
        out = equi_cts_conv_forward(
            field, center, field_feat, field_mask, kernel,
            radius=radius, num_r=num_r, num_theta=num_theta,
            use_attention=use_att, normalize_attention=norm_att,
            dot_dtype=ddt)
        out = jax.block_until_ready(out)
        assert out.shape == (B, M, c_out, 2)
        ref = _reference(field, center, field_feat, field_mask, kernel,
                         radius=radius, num_r=num_r, num_theta=num_theta,
                         use_attention=use_att, normalize_attention=norm_att)
        err = float(jnp.max(jnp.abs(out - ref)))
        assert jnp.allclose(out, ref, atol=atol, rtol=rtol), (
            "case %d: max abs err = %g" % (idx, err))
    print("KERNEL_OK")
</pallas_src>

<mosaic_0001>
module attributes {stable_mosaic.version = 11 : i64} {
  func.func @_equi_conv_kernel(%arg0: i32, %arg1: i32, %arg2: i32, %arg3: memref<1x128x1xf32, #tpu.memory_space<vmem>>, %arg4: memref<1x128x2xf32, #tpu.memory_space<vmem>>, %arg5: memref<1x2x8xf32, #tpu.memory_space<vmem>>, %arg6: memref<1x8x128xf32, #tpu.memory_space<vmem>>, %arg7: memref<256x8xf32, #tpu.memory_space<vmem>>, %arg8: memref<1x8x8xf32, #tpu.memory_space<vmem>>, %arg9: memref<256x128xf32, #tpu.memory_space<vmem>>, %arg10: memref<8x8xf32, #tpu.memory_space<vmem>>, %arg11: memref<1x8xf32, #tpu.memory_space<vmem>>) attributes {dimension_semantics = [#tpu.dimension_semantics<parallel>, #tpu.dimension_semantics<parallel>, #tpu.dimension_semantics<arbitrary>], iteration_bounds = array<i64: 2, 1, 1>, scalar_prefetch = 0 : i64, scratch_operands = 3 : i64, tpu.core_type = #tpu.core_type<tc>, window_params = [{transform_indices = @transform_0, window_bounds = array<i64: 1, 128, 1>}, {transform_indices = @transform_1, window_bounds = array<i64: 1, 128, 2>}, {transform_indices = @transform_2, window_bounds = array<i64: 1, 2, 8>}, {transform_indices = @transform_3, window_bounds = array<i64: 1, 8, 128>}, {pipeline_mode = #tpu.pipeline_mode<synchronous>, transform_indices = @transform_4, window_bounds = array<i64: 256, 8>}, {transform_indices = @transform_5, window_bounds = array<i64: 1, 8, 8>}]} {
    %c0 = arith.constant 0 : index
    %c0_0 = arith.constant 0 : index
    %c0_1 = arith.constant 0 : index
    %0 = vector.load %arg6[%c0, %c0_0, %c0_1] : memref<1x8x128xf32, #tpu.memory_space<vmem>>, vector<1x8x128xf32>
    %1 = vector.shape_cast %0 : vector<1x8x128xf32> to vector<8x128xf32>
    %c0_2 = arith.constant 0 : index
    %c0_3 = arith.constant 0 : index
    %2 = vector.load %arg7[%c0_2, %c0_3] : memref<256x8xf32, #tpu.memory_space<vmem>>, vector<256x8xf32>
    %cst = arith.constant dense<0.000000e+00> : vector<256x128xf32>
    %3 = tpu.matmul %2, %1, %cst {dimension_numbers = #tpu.dot_dimension_numbers<[1], [0], [0], [1], [0, 0, 1, 1], [], []>} : vector<256x8xf32>, vector<8x128xf32>, vector<256x128xf32> -> vector<256x128xf32>
    %c0_4 = arith.constant 0 : index
    %c0_5 = arith.constant 0 : index
    %4 = vector.load %arg9[%c0_4, %c0_5] : memref<256x128xf32, #tpu.memory_space<vmem>>, vector<256x128xf32>
    tpu.vector_store %arg9[%c0_4, %c0_5], %3 {strides = array<i32>} : memref<256x128xf32, #tpu.memory_space<vmem>>, vector<256x128xf32>,
    %c0_6 = arith.constant 0 : index
    %c0_7 = arith.constant 0 : index
    %c0_8 = arith.constant 0 : index
    %5 = vector.load %arg4[%c0_6, %c0_7, %c0_8] : memref<1x128x2xf32, #tpu.memory_space<vmem>>, vector<1x128x2xf32>
    %6 = vector.shape_cast %5 : vector<1x128x2xf32> to vector<128x2xf32>
    %c0_9 = arith.constant 0 : index
    %c0_10 = arith.constant 0 : index
    %c0_11 = arith.constant 0 : index
    %7 = vector.load %arg5[%c0_9, %c0_10, %c0_11] : memref<1x2x8xf32, #tpu.memory_space<vmem>>, vector<1x2x8xf32>
    %8 = vector.shape_cast %7 : vector<1x2x8xf32> to vector<2x8xf32>
    %9 = vector.extract_strided_slice %6 {offsets = [0, 0], sizes = [128, 1], strides = [1, 1]} : vector<128x2xf32> to vector<128x1xf32>
    %10 = vector.extract_strided_slice %8 {offsets = [0, 0], sizes = [1, 8], strides = [1, 1]} : vector<2x8xf32> to vector<1x8xf32>
    %11 = vector.broadcast %9 : vector<128x1xf32> to vector<128x8xf32>
    %12 = vector.broadcast %10 : vector<1x8xf32> to vector<128x8xf32>
    %13 = arith.subf %11, %12 : vector<128x8xf32>
    %cst_12 = arith.constant 0.666666686 : f32
    %14 = vector.broadcast %cst_12 : f32 to vector<128x8xf32>
    %15 = arith.mulf %13, %14 : vector<128x8xf32>
    %16 = vector.extract_strided_slice %6 {offsets = [0, 1], sizes = [128, 1], strides = [1, 1]} : vector<128x2xf32> to vector<128x1xf32>
    %17 = vector.extract_strided_slice %8 {offsets = [1, 0], sizes = [1, 8], strides = [1, 1]} : vector<2x8xf32> to vector<1x8xf32>
    %18 = vector.broadcast %16 : vector<128x1xf32> to vector<128x8xf32>
    %19 = vector.broadcast %17 : vector<1x8xf32> to vector<128x8xf32>
    %20 = arith.subf %18, %19 : vector<128x8xf32>
    %cst_13 = arith.constant 0.666666686 : f32
    %21 = vector.broadcast %cst_13 : f32 to vector<128x8xf32>
    %22 = arith.mulf %20, %21 : vector<128x8xf32>
    %c0_14 = arith.constant 0 : index
    %c0_15 = arith.constant 0 : index
    %c0_16 = arith.constant 0 : index
    %23 = vector.load %arg3[%c0_14, %c0_15, %c0_16] : memref<1x128x1xf32, #tpu.memory_space<vmem>>, vector<1x128x1xf32>
    %24 = vector.shape_cast %23 : vector<1x128x1xf32> to vector<128x1xf32>
    %25 = arith.mulf %15, %15 : vector<128x8xf32>
    %26 = arith.mulf %22, %22 : vector<128x8xf32>
    %27 = arith.addf %25, %26 : vector<128x8xf32>
    %cst_17 = arith.constant 9.99999971E-10 : f32
    %28 = vector.broadcast %cst_17 : f32 to vector<128x8xf32>
    %29 = arith.addf %27, %28 : vector<128x8xf32>
    %30 = math.sqrt %29 : vector<128x8xf32>
    %31 = math.absf %15 : vector<128x8xf32>
    %32 = math.absf %22 : vector<128x8xf32>
    %33 = arith.maximumf %31, %32 : vector<128x8xf32>
    %34 = arith.minimumf %31, %32 : vector<128x8xf32>
    %cst_18 = arith.constant 0.000000e+00 : f32
    %35 = vector.broadcast %cst_18 : f32 to vector<128x8xf32>
    %36 = arith.cmpf oeq, %33, %35 : vector<128x8xf32>
    %cst_19 = arith.constant 1.000000e+00 : f32
    %37 = vector.broadcast %cst_19 : f32 to vector<128x8xf32>
    %38 = arith.select %36, %37, %33 : vector<128x8xi1>, vector<128x8xf32>
    %39 = tpu.reciprocal %38 {approx = true} : vector<128x8xf32> -> vector<128x8xf32>
    %40 = arith.mulf %34, %39 : vector<128x8xf32>
    %41 = arith.mulf %40, %40 : vector<128x8xf32>
    %cst_20 = arith.constant 0.00286622578 : f32
    %42 = vector.broadcast %cst_20 : f32 to vector<128x8xf32>
    %43 = arith.mulf %42, %41 : vector<128x8xf32>
    %cst_21 = arith.constant -0.0161657371 : f32
    %44 = vector.broadcast %cst_21 : f32 to vector<128x8xf32>
    %45 = arith.addf %43, %44 : vector<128x8xf32>
    %46 = arith.mulf %45, %41 : vector<128x8xf32>
    %cst_22 = arith.constant 0.0429096147 : f32
    %47 = vector.broadcast %cst_22 : f32 to vector<128x8xf32>
    %48 = arith.addf %46, %47 : vector<128x8xf32>
    %49 = arith.mulf %48, %41 : vector<128x8xf32>
    %cst_23 = arith.constant -0.0752896368 : f32
    %50 = vector.broadcast %cst_23 : f32 to vector<128x8xf32>
    %51 = arith.addf %49, %50 : vector<128x8xf32>
    %52 = arith.mulf %51, %41 : vector<128x8xf32>
    %cst_24 = arith.constant 0.106562637 : f32
    %53 = vector.broadcast %cst_24 : f32 to vector<128x8xf32>
    %54 = arith.addf %52, %53 : vector<128x8xf32>
    %55 = arith.mulf %54, %41 : vector<128x8xf32>
    %cst_25 = arith.constant -1.420890e-01 : f32
    %56 = vector.broadcast %cst_25 : f32 to vector<128x8xf32>
    %57 = arith.addf %55, %56 : vector<128x8xf32>
    %58 = arith.mulf %57, %41 : vector<128x8xf32>
    %cst_26 = arith.constant 0.199935511 : f32
    %59 = vector.broadcast %cst_26 : f32 to vector<128x8xf32>
    %60 = arith.addf %58, %59 : vector<128x8xf32>
    %61 = arith.mulf %60, %41 : vector<128x8xf32>
    %cst_27 = arith.constant -0.333331466 : f32
    %62 = vector.broadcast %cst_27 : f32 to vector<128x8xf32>
    %63 = arith.addf %61, %62 : vector<128x8xf32>
    %64 = arith.mulf %40, %41 : vector<128x8xf32>
    %65 = arith.mulf %64, %63 : vector<128x8xf32>
    %66 = arith.addf %40, %65 : vector<128x8xf32>
    %67 = arith.cmpf ogt, %32, %31 : vector<128x8xf32>
    %cst_28 = arith.constant 1.57079637 : f32
    %68 = vector.broadcast %cst_28 : f32 to vector<128x8xf32>
    %69 = arith.subf %68, %66 : vector<128x8xf32>
    %70 = arith.select %67, %69, %66 : vector<128x8xi1>, vector<128x8xf32>
    %cst_29 = arith.constant 0.000000e+00 : f32
    %71 = vector.broadcast %cst_29 : f32 to vector<128x8xf32>
    %72 = arith.cmpf olt, %15, %71 : vector<128x8xf32>
    %cst_30 = arith.constant 3.14159274 : f32
    %73 = vector.broadcast %cst_30 : f32 to vector<128x8xf32>
    %74 = arith.subf %73, %70 : vector<128x8xf32>
    %75 = arith.select %72, %74, %70 : vector<128x8xi1>, vector<128x8xf32>
    %cst_31 = arith.constant 0.000000e+00 : f32
    %76 = vector.broadcast %cst_31 : f32 to vector<128x8xf32>
    %77 = arith.cmpf olt, %22, %76 : vector<128x8xf32>
    %cst_32 = arith.constant 0.000000e+00 : f32
    %78 = vector.broadcast %cst_32 : f32 to vector<128x8xf32>
    %79 = arith.subf %78, %75 : vector<128x8xf32>
    %80 = arith.select %77, %79, %75 : vector<128x8xi1>, vector<128x8xf32>
    %cst_33 = arith.constant 0.000000e+00 : f32
    %81 = vector.broadcast %cst_33 : f32 to vector<128x8xf32>
    %82 = arith.cmpf oeq, %15, %81 : vector<128x8xf32>
    %cst_34 = arith.constant 0.000000e+00 : f32
    %83 = vector.broadcast %cst_34 : f32 to vector<128x8xf32>
    %84 = arith.cmpf oeq, %22, %83 : vector<128x8xf32>
    %85 = arith.andi %82, %84 : vector<128x8xi1>
    %cst_35 = arith.constant 0.000000e+00 : f32
    %86 = vector.broadcast %cst_35 : f32 to vector<128x8xf32>
    %87 = arith.select %85, %86, %80 : vector<128x8xi1>, vector<128x8xf32>
    %cst_36 = arith.constant 1.000000e+00 : f32
    %88 = vector.broadcast %cst_36 : f32 to vector<128x8xf32>
    %89 = arith.subf %88, %27 : vector<128x8xf32>
    %cst_37 = arith.constant 0.000000e+00 : f32
    %90 = vector.broadcast %cst_37 : f32 to vector<128x8xf32>
    %91 = arith.maximumf %89, %90 : vector<128x8xf32>
    %92 = arith.mulf %91, %91 : vector<128x8xf32>
    %93 = arith.mulf %92, %91 : vector<128x8xf32>
    %94 = vector.broadcast %24 : vector<128x1xf32> to vector<128x8xf32>
    %95 = arith.mulf %93, %94 : vector<128x8xf32>
    %cst_38 = arith.constant dense<0.000000e+00> : vector<8xf32>
    %96 = vector.multi_reduction <add>, %95, %cst_38 [0] : vector<128x8xf32> to vector<8xf32>
    %97 = vector.shape_cast %96 : vector<8xf32> to vector<1x8xf32>
    %cst_39 = arith.constant 2.000000e+00 : f32
    %98 = vector.broadcast %cst_39 : f32 to vector<128x8xf32>
    %99 = arith.mulf %98, %30 : vector<128x8xf32>
    %cst_40 = arith.constant 1.000000e+00 : f32
    %100 = vector.broadcast %cst_40 : f32 to vector<128x8xf32>
    %101 = arith.subf %99, %100 : vector<128x8xf32>
    %cst_41 = arith.constant 0.254647911 : f32
    %102 = vector.broadcast %cst_41 : f32 to vector<128x8xf32>
    %103 = arith.mulf %87, %102 : vector<128x8xf32>
    %cst_42 = arith.constant 1.000000e+00 : f32
    %104 = vector.broadcast %cst_42 : f32 to vector<128x8xf32>
    %105 = arith.addf %101, %104 : vector<128x8xf32>
    %cst_43 = arith.constant 4.000000e+00 : f32
    %106 = vector.broadcast %cst_43 : f32 to vector<128x8xf32>
    %107 = arith.mulf %105, %106 : vector<128x8xf32>
    %cst_44 = arith.constant 1.000000e+00 : f32
    %108 = vector.broadcast %cst_44 : f32 to vector<128x8xf32>
    %109 = arith.subf %107, %108 : vector<128x8xf32>
    %cst_45 = arith.constant 5.000000e-01 : f32
    %110 = vector.broadcast %cst_45 : f32 to vector<128x8xf32>
    %111 = arith.mulf %109, %110 : vector<128x8xf32>
    %cst_46 = arith.constant 1.000000e+00 : f32
    %112 = vector.broadcast %cst_46 : f32 to vector<128x8xf32>
    %113 = arith.addf %103, %112 : vector<128x8xf32>
    %cst_47 = arith.constant 1.000000e+01 : f32
    %114 = vector.broadcast %cst_47 : f32 to vector<128x8xf32>
    %115 = arith.mulf %113, %114 : vector<128x8xf32>
    %cst_48 = arith.constant 1.000000e+00 : f32
    %116 = vector.broadcast %cst_48 : f32 to vector<128x8xf32>
    %117 = arith.subf %115, %116 : vector<128x8xf32>
    %cst_49 = arith.constant 5.000000e-01 : f32
    %118 = vector.broadcast %cst_49 : f32 to vector<128x8xf32>
    %119 = arith.mulf %117, %118 : vector<128x8xf32>
    %120 = math.floor %111 : vector<128x8xf32>
    %121 = math.floor %119 : vector<128x8xf32>
    %122 = arith.subf %111, %120 : vector<128x8xf32>
    %cst_50 = arith.constant 1.000000e+00 : f32
    %123 = vector.broadcast %cst_50 : f32 to vector<128x8xf32>
    %124 = arith.subf %123, %122 : vector<128x8xf32>
    %125 = arith.subf %119, %121 : vector<128x8xf32>
    %cst_51 = arith.constant 1.000000e+00 : f32
    %126 = vector.broadcast %cst_51 : f32 to vector<128x8xf32>
    %127 = arith.subf %126, %125 : vector<128x8xf32>
    %128 = arith.fptosi %120 : vector<128x8xf32> to vector<128x8xi32>
    %c1_i32 = arith.constant 1 : i32
    %129 = vector.broadcast %c1_i32 : i32 to vector<128x8xi32>
    %130 = arith.addi %128, %129 : vector<128x8xi32>
    %131 = arith.fptosi %121 : vector<128x8xf32> to vector<128x8xi32>
    %c0_i32 = arith.constant 0 : i32
    %132 = vector.broadcast %c0_i32 : i32 to vector<128x8xi32>
    %133 = arith.cmpi eq, %131, %132 : vector<128x8xi32>
    %c1_i32_52 = arith.constant 1 : i32
    %134 = vector.broadcast %c1_i32_52 : i32 to vector<128x8xi32>
    %135 = arith.subi %131, %134 : vector<128x8xi32>
    %c7_i32 = arith.constant 7 : i32
    %136 = vector.broadcast %c7_i32 : i32 to vector<128x8xi32>
    %137 = arith.select %133, %136, %135 : vector<128x8xi1>, vector<128x8xi32>
    %c8_i32 = arith.constant 8 : i32
    %138 = vector.broadcast %c8_i32 : i32 to vector<128x8xi32>
    %139 = arith.cmpi sge, %131, %138 : vector<128x8xi32>
    %c8_i32_53 = arith.constant 8 : i32
    %140 = vector.broadcast %c8_i32_53 : i32 to vector<128x8xi32>
    %141 = arith.subi %131, %140 : vector<128x8xi32>
    %142 = arith.select %139, %141, %131 : vector<128x8xi1>, vector<128x8xi32>
    %cst_54 = arith.constant 0.000000e+00 : f32
    %143 = vector.broadcast %cst_54 : f32 to vector<128x8xf32>
    %c0_i32_55 = arith.constant 0 : i32
    %144 = vector.broadcast %c0_i32_55 : i32 to vector<128x8xi32>
    %145 = arith.cmpi eq, %128, %144 : vector<128x8xi32>
    %146 = arith.select %145, %124, %143 : vector<128x8xi1>, vector<128x8xf32>
    %c0_i32_56 = arith.constant 0 : i32
    %147 = vector.broadcast %c0_i32_56 : i32 to vector<128x8xi32>
    %148 = arith.cmpi eq, %130, %147 : vector<128x8xi32>
    %149 = arith.select %148, %122, %143 : vector<128x8xi1>, vector<128x8xf32>
    %150 = arith.addf %146, %149 : vector<128x8xf32>
    %c1_i32_57 = arith.constant 1 : i32
    %151 = vector.broadcast %c1_i32_57 : i32 to vector<128x8xi32>
    %152 = arith.cmpi eq, %128, %151 : vector<128x8xi32>
    %153 = arith.select %152, %124, %143 : vector<128x8xi1>, vector<128x8xf32>
    %c1_i32_58 = arith.constant 1 : i32
    %154 = vector.broadcast %c1_i32_58 : i32 to vector<128x8xi32>
    %155 = arith.cmpi eq, %130, %154 : vector<128x8xi32>
    %156 = arith.select %155, %122, %143 : vector<128x8xi1>, vector<128x8xf32>
    %157 = arith.addf %153, %156 : vector<128x8xf32>
    %c2_i32 = arith.constant 2 : i32
    %158 = vector.broadcast %c2_i32 : i32 to vector<128x8xi32>
    %159 = arith.cmpi eq, %128, %158 : vector<128x8xi32>
    %160 = arith.select %159, %124, %143 : vector<128x8xi1>, vector<128x8xf32>
    %c2_i32_59 = arith.constant 2 : i32
    %161 = vector.broadcast %c2_i32_59 : i32 to vector<128x8xi32>
    %162 = arith.cmpi eq, %130, %161 : vector<128x8xi32>
    %163 = arith.select %162, %122, %143 : vector<128x8xi1>, vector<128x8xf32>
    %164 = arith.addf %160, %163 : vector<128x8xf32>
    %c3_i32 = arith.constant 3 : i32
    %165 = vector.broadcast %c3_i32 : i32 to vector<128x8xi32>
    %166 = arith.cmpi eq, %128, %165 : vector<128x8xi32>
    %167 = arith.select %166, %124, %143 : vector<128x8xi1>, vector<128x8xf32>
    %c3_i32_60 = arith.constant 3 : i32
    %168 = vector.broadcast %c3_i32_60 : i32 to vector<128x8xi32>
    %169 = arith.cmpi eq, %130, %168 : vector<128x8xi32>
    %170 = arith.select %169, %122, %143 : vector<128x8xi1>, vector<128x8xf32>
    %171 = arith.addf %167, %170 : vector<128x8xf32>
    %172 = arith.mulf %127, %95 : vector<128x8xf32>
    %173 = arith.mulf %125, %95 : vector<128x8xf32>
    %cst_61 = arith.constant 0.000000e+00 : f32
    %174 = vector.broadcast %cst_61 : f32 to vector<8x8xf32>
    %c0_i32_62 = arith.constant 0 : i32
    %c8_i32_63 = arith.constant 8 : i32
    %175 = arith.addi %c0_i32_62, %c8_i32_63 : i32
    %c1_i32_64 = arith.constant 1 : i32
    %176 = scf.for %arg12 = %c0_i32_62 to %175 step %c1_i32_64 iter_args(%arg13 = %174) -> (vector<8x8xf32>)  : i32 {
      %186 = vector.broadcast %arg12 : i32 to vector<128x8xi32>
      %187 = arith.cmpi eq, %137, %186 : vector<128x8xi32>
      %188 = arith.select %187, %172, %143 : vector<128x8xi1>, vector<128x8xf32>
      %189 = vector.broadcast %arg12 : i32 to vector<128x8xi32>
      %190 = arith.cmpi eq, %142, %189 : vector<128x8xi32>
      %191 = arith.select %190, %173, %143 : vector<128x8xi1>, vector<128x8xf32>
      %192 = arith.addf %188, %191 : vector<128x8xf32>
      %c32_i32 = arith.constant 32 : i32
      %193 = arith.muli %arg12, %c32_i32 : i32
      %194 = tpu.assume_multiple %193, 8 : i32
      %195 = arith.index_cast %194 : i32 to index
      %c0_72 = arith.constant 0 : index
      %196 = vector.load %arg9[%195, %c0_72] : memref<256x128xf32, #tpu.memory_space<vmem>>, vector<32x128xf32>
      %197 = arith.mulf %192, %150 : vector<128x8xf32>
      %198 = vector.extract_strided_slice %196 {offsets = [0, 0], sizes = [8, 128], strides = [1, 1]} : vector<32x128xf32> to vector<8x128xf32>
      %cst_73 = arith.constant dense<0.000000e+00> : vector<8x8xf32>
      %199 = tpu.matmul %198, %197, %cst_73 {dimension_numbers = #tpu.dot_dimension_numbers<[1], [0], [0], [1], [0, 0, 1, 1], [], []>} : vector<8x128xf32>, vector<128x8xf32>, vector<8x8xf32> -> vector<8x8xf32>
      %200 = arith.addf %arg13, %199 : vector<8x8xf32>
      %201 = arith.mulf %192, %157 : vector<128x8xf32>
      %202 = vector.extract_strided_slice %196 {offsets = [8, 0], sizes = [8, 128], strides = [1, 1]} : vector<32x128xf32> to vector<8x128xf32>
      %cst_74 = arith.constant dense<0.000000e+00> : vector<8x8xf32>
      %203 = tpu.matmul %202, %201, %cst_74 {dimension_numbers = #tpu.dot_dimension_numbers<[1], [0], [0], [1], [0, 0, 1, 1], [], []>} : vector<8x128xf32>, vector<128x8xf32>, vector<8x8xf32> -> vector<8x8xf32>
      %204 = arith.addf %200, %203 : vector<8x8xf32>
      %205 = arith.mulf %192, %164 : vector<128x8xf32>
      %206 = vector.extract_strided_slice %196 {offsets = [16, 0], sizes = [8, 128], strides = [1, 1]} : vector<32x128xf32> to vector<8x128xf32>
      %cst_75 = arith.constant dense<0.000000e+00> : vector<8x8xf32>
      %207 = tpu.matmul %206, %205, %cst_75 {dimension_numbers = #tpu.dot_dimension_numbers<[1], [0], [0], [1], [0, 0, 1, 1], [], []>} : vector<8x128xf32>, vector<128x8xf32>, vector<8x8xf32> -> vector<8x8xf32>
      %208 = arith.addf %204, %207 : vector<8x8xf32>
      %209 = arith.mulf %192, %171 : vector<128x8xf32>
      %210 = vector.extract_strided_slice %196 {offsets = [24, 0], sizes = [8, 128], strides = [1, 1]} : vector<32x128xf32> to vector<8x128xf32>
      %cst_76 = arith.constant dense<0.000000e+00> : vector<8x8xf32>
      %211 = tpu.matmul %210, %209, %cst_76 {dimension_numbers = #tpu.dot_dimension_numbers<[1], [0], [0], [1], [0, 0, 1, 1], [], []>} : vector<8x128xf32>, vector<128x8xf32>, vector<8x8xf32> -> vector<8x8xf32>
      %212 = arith.addf %208, %211 : vector<8x8xf32>
      scf.yield %212 : vector<8x8xf32>
    }
    %c8_i32_65 = arith.constant 8 : i32
    %c0_i32_66 = arith.constant 0 : i32
    %177 = arith.cmpi eq, %arg2, %c0_i32_66 : i32
    %178 = arith.extui %177 : i1 to i32
    %c0_i32_67 = arith.constant 0 : i32
    %179 = arith.cmpi ne, %178, %c0_i32_67 : i32
    scf.if %179 {
      %c0_72 = arith.constant 0 : index
      %c0_73 = arith.constant 0 : index
      %186 = vector.load %arg10[%c0_72, %c0_73] : memref<8x8xf32, #tpu.memory_space<vmem>>, vector<8x8xf32>
      tpu.vector_store %arg10[%c0_72, %c0_73], %176 {strides = array<i32>} : memref<8x8xf32, #tpu.memory_space<vmem>>, vector<8x8xf32>,
      %c0_74 = arith.constant 0 : index
      %c0_75 = arith.constant 0 : index
      %187 = vector.load %arg11[%c0_74, %c0_75] : memref<1x8xf32, #tpu.memory_space<vmem>>, vector<1x8xf32>
      tpu.vector_store %arg11[%c0_74, %c0_75], %97 {strides = array<i32>} : memref<1x8xf32, #tpu.memory_space<vmem>>, vector<1x8xf32>,
    } else {
    }
    %c0_i32_68 = arith.constant 0 : i32
    %180 = arith.cmpi sgt, %arg2, %c0_i32_68 : i32
    %181 = arith.extui %180 : i1 to i32
    %c0_i32_69 = arith.constant 0 : i32
    %182 = arith.cmpi ne, %181, %c0_i32_69 : i32
    scf.if %182 {
      %c0_72 = arith.constant 0 : index
      %c0_73 = arith.constant 0 : index
      %186 = vector.load %arg10[%c0_72, %c0_73] : memref<8x8xf32, #tpu.memory_space<vmem>>, vector<8x8xf32>
      %187 = arith.addf %186, %176 : vector<8x8xf32>
      %c0_74 = arith.constant 0 : index
      %c0_75 = arith.constant 0 : index
      %188 = vector.load %arg10[%c0_74, %c0_75] : memref<8x8xf32, #tpu.memory_space<vmem>>, vector<8x8xf32>
      tpu.vector_store %arg10[%c0_74, %c0_75], %187 {strides = array<i32>} : memref<8x8xf32, #tpu.memory_space<vmem>>, vector<8x8xf32>,
      %c0_76 = arith.constant 0 : index
      %c0_77 = arith.constant 0 : index
      %189 = vector.load %arg11[%c0_76, %c0_77] : memref<1x8xf32, #tpu.memory_space<vmem>>, vector<1x8xf32>
      %190 = arith.addf %189, %97 : vector<1x8xf32>
      %c0_78 = arith.constant 0 : index
      %c0_79 = arith.constant 0 : index
      %191 = vector.load %arg11[%c0_78, %c0_79] : memref<1x8xf32, #tpu.memory_space<vmem>>, vector<1x8xf32>
      tpu.vector_store %arg11[%c0_78, %c0_79], %190 {strides = array<i32>} : memref<1x8xf32, #tpu.memory_space<vmem>>, vector<1x8xf32>,
    } else {
    }
    %c0_i32_70 = arith.constant 0 : i32
    %183 = arith.cmpi eq, %arg2, %c0_i32_70 : i32
    %184 = arith.extui %183 : i1 to i32
    %c0_i32_71 = arith.constant 0 : i32
    %185 = arith.cmpi ne, %184, %c0_i32_71 : i32
    scf.if %185 {
      %c0_72 = arith.constant 0 : index
      %c0_73 = arith.constant 0 : index
      %186 = vector.load %arg10[%c0_72, %c0_73] : memref<8x8xf32, #tpu.memory_space<vmem>>, vector<8x8xf32>
      %c0_74 = arith.constant 0 : index
      %c0_75 = arith.constant 0 : index
      %187 = vector.load %arg11[%c0_74, %c0_75] : memref<1x8xf32, #tpu.memory_space<vmem>>, vector<1x8xf32>
      %cst_76 = arith.constant 0.000000e+00 : f32
      %188 = vector.broadcast %cst_76 : f32 to vector<1x8xf32>
      %189 = arith.cmpf oeq, %187, %188 : vector<1x8xf32>
      %cst_77 = arith.constant 1.000000e+00 : f32
      %190 = vector.broadcast %cst_77 : f32 to vector<1x8xf32>
      %191 = arith.select %189, %190, %187 : vector<1x8xi1>, vector<1x8xf32>
      %cst_78 = arith.constant 1.000000e+00 : f32
      %192 = vector.broadcast %cst_78 : f32 to vector<1x8xf32>
      %193 = arith.divf %192, %191 : vector<1x8xf32>
      %194 = vector.broadcast %193 : vector<1x8xf32> to vector<8x8xf32>
      %195 = arith.mulf %186, %194 : vector<8x8xf32>
      %c0_79 = arith.constant 0 : index
      %c0_80 = arith.constant 0 : index
      %c0_81 = arith.constant 0 : index
      %196 = vector.load %arg8[%c0_79, %c0_80, %c0_81] : memref<1x8x8xf32, #tpu.memory_space<vmem>>, vector<1x8x8xf32>
      %197 = vector.shape_cast %196 : vector<1x8x8xf32> to vector<8x8xf32>
      %198 = vector.shape_cast %195 : vector<8x8xf32> to vector<1x8x8xf32>
      tpu.vector_store %arg8[%c0_79, %c0_80, %c0_81], %198 {strides = array<i32>} : memref<1x8x8xf32, #tpu.memory_space<vmem>>, vector<1x8x8xf32>,
    } else {
    }
    return
  }
  func.func @transform_0(%arg0: i32, %arg1: i32, %arg2: i32) -> (i32, i32, i32) {
    %c0_i32 = arith.constant 0 : i32
    %c0_i32_0 = arith.constant 0 : i32
    return %arg0, %arg2, %c0_i32 : i32, i32, i32
  }
  func.func @transform_1(%arg0: i32, %arg1: i32, %arg2: i32) -> (i32, i32, i32) {
    %c0_i32 = arith.constant 0 : i32
    %c0_i32_0 = arith.constant 0 : i32
    return %arg0, %arg2, %c0_i32 : i32, i32, i32
  }
  func.func @transform_2(%arg0: i32, %arg1: i32, %arg2: i32) -> (i32, i32, i32) {
    %c0_i32 = arith.constant 0 : i32
    %c0_i32_0 = arith.constant 0 : i32
    return %arg0, %c0_i32, %arg1 : i32, i32, i32
  }
  func.func @transform_3(%arg0: i32, %arg1: i32, %arg2: i32) -> (i32, i32, i32) {
    %c0_i32 = arith.constant 0 : i32
    %c0_i32_0 = arith.constant 0 : i32
    return %arg0, %c0_i32, %arg2 : i32, i32, i32
  }
  func.func @transform_4(%arg0: i32, %arg1: i32, %arg2: i32) -> (i32, i32) {
    %c0_i32 = arith.constant 0 : i32
    %c0_i32_0 = arith.constant 0 : i32
    %c0_i32_1 = arith.constant 0 : i32
    return %c0_i32, %c0_i32_0 : i32, i32
  }
  func.func @transform_5(%arg0: i32, %arg1: i32, %arg2: i32) -> (i32, i32, i32) {
    %c0_i32 = arith.constant 0 : i32
    %c0_i32_0 = arith.constant 0 : i32
    return %arg0, %c0_i32, %arg1 : i32, i32, i32
  }
}

</mosaic_0001>

<bundles_post_ra>
// kernel: tpu_custom_call.1
= control target key start
LH: loop header
LB: loop body
LE: loop exit
PB: predicated region body
PF: predicated region fallthrough
CT: control target
= control target key end

     0   :  { %10 = vsyncpa [#allocation6], 0  ;;  %s6675_s0 = inlined_call_operand.vmem [shape: f32[2,128,1], index: 0, kind: input, shape index: {}]   ;;  %s6676_s1 = inlined_call_operand.vmem [shape: f32[2,128,2], index: 1, kind: input, shape index: {}]   ;;  %s6677_s2 = inlined_call_operand.vmem [shape: f32[2,2,8], index: 2, kind: input, shape index: {}]   ;;  %s6678_s3 = inlined_call_operand.vmem [shape: f32[2,8,128], index: 3, kind: input, shape index: {}]   ;;  %s6679_s4 = inlined_call_operand.vmem [shape: f32[256,8], index: 4, kind: input, shape index: {}]   ;;  %s6680_s5 = inlined_call_operand.hbm [shape: f32[2,8,8], index: 5, kind: output, shape index: {}]  }
   0x1   :  { %12 = vsyncpa [#allocation6 + $0x1], 0  ;;  %s4250_s18 = smov 0   ;;  %s4252_s19 = smov 0  }
   0x2   :  { %s4254_s20 = smov 0   ;;  %s4256_s21 = smov 0  }
   0x3   :  { %s4258_s22 = smov 0   ;;  %s4260_s23 = smov 0  }
   0x4 LB: > { %s3380_s24 = sadd.s32 4294967295, %s4204_s23   ;;  %s3381_s25 = sadd.s32 4294967294, %s4204_s23   ;;  %s4204_s23 = sphi %s4260_s23, %s18_s23   ;;  %s4200_s22 = sphi %s4258_s22, %s7181_s22   ;;  %s4196_s21 = sphi %s4256_s21, %s7180_s21   ;;  %s4192_s20 = sphi %s4254_s20, %s7179_s20   ;;  %s4188_s19 = sphi %s4252_s19, %s7178_s19   ;;  %s4184_s18 = sphi %s4250_s18, %s7177_s18  }
   0x5   : > { %s37_s26 = sadd.s32 1, %s4200_s22  ;;  %s179_s27 = sadd.s32 1, %s4192_s20 }
   0x6   : > { %p39_p0 = scmp.ge.s32.totalorder %s37_s26, 2  ;;  %p189_p1 = scmp.ne.s32.totalorder %s4192_s20, %s4188_s19 }
   0x7   : > { %p190_p2 = scmp.eq.s32.totalorder %s3380_s24, 1  ;;  %p195_p3 = scmp.ne.s32.totalorder %s4188_s19, %s4184_s18 }
   0x8   : > { %s7183_s26 = smov (%p39_p0, %s37_s26), 0  ;;  %p196_p5 = scmp.eq.s32.totalorder %s3381_s25, 1 }
   0x9   : > { %p4290_p4 = por %p190_p2, %p189_p1  ;;  %s174_s29 = ssub.s32 %s4200_s22, %s7183_s26 }
   0xa   : > { %p3384_p6 = scmp.ge.s32.totalorder %s4204_s23, 1  ;;  %p177_p7 = scmp.eq.s32.totalorder %s174_s29, 0 }
   0xb   : > { %p4297_p8 = por %p196_p5, %p195_p3  ;;  %p263_p9 = scmp.lt.s32.totalorder %s4204_s23, 3 }
   0xc   : > { %s4303_s6 = scalar_select %p177_p7, %s4192_s20, %s179_s27  }
   0xd   : > { %p264_p10 = pnand %p3384_p6, %p263_p9 }
   0xf   : > { %267 = sbr.rel (%p264_p10) target bundleno = 965 (0x3c5), region = 40 }
  0x16   : > { %p319_p11 = scmp.lt.s32.totalorder %s4196_s21, 1  ;;  %s315_s7 = sand.u32 1, %s4188_s19   ;;  %v353_v0 = vld [vmem:[%s6679_s4] sm:$0xff]  ;;  %vm6762_vm0 = vcmask 64512   ;;  %v4214_v2 = vmov 0   ;;  %v354_v8 = vld [vmem:[%s6679_s4 + $0x8] sm:$0xff] }
  0x17   : > { %v369_v1 = vld [vmem:[%s6679_s4 + $0x80] sm:$0xff]  ;;  %4047 = vset.pattern.permute.xlu1 %v4214_v2  ;;  %4046 = vset.pattern.permute.xlu0 %v4214_v2  ;;  %s4317_s12 = sshll.u32 %s315_s7, 3  ;;  %v370_v9 = vld [vmem:[%s6679_s4 + $0x88] sm:$0xff]  ;;  %v355_v12 = vld [vmem:[%s6679_s4 + $0x10] sm:$0xff]  ;;  %v4215_v48 = vmov 1   ;;  %s6293_s15 = smov 0  }
  0x18   : > { %s4320_s13 = scalar_select %p319_p11, %s4196_s21, 1  ;;  %3614 = vmatprep.mubr.msk.f32.mxu0 %vm6762_vm0, %v353_v0  ;;  %3638 = vmatprep.mubr.msk.f32.mxu1 %vm6762_vm0, %v369_v1  ;;  %v371_v13 = vld [vmem:[%s6679_s4 + $0x90] sm:$0xff]  ;;  %v356_v14 = vld [vmem:[%s6679_s4 + $0x18] sm:$0xff]  ;;  %v357_v18 = vld [vmem:[%s6679_s4 + $0x20] sm:$0xff] }
  0x19   : > { %v372_v15 = vld [vmem:[%s6679_s4 + $0x98] sm:$0xff]  ;;  %v373_v19 = vld [vmem:[%s6679_s4 + $0xa0] sm:$0xff]  ;;  %v358_v20 = vld [vmem:[%s6679_s4 + $0x28] sm:$0xff] }
  0x1a   : > { %s3509_s14 = sshll.u32 %s4320_s13, 7  ;;  %s3391_s24 = sshll.u32 %s4320_s13, 3  ;;  %v374_v21 = vld [vmem:[%s6679_s4 + $0xa8] sm:$0xff]  ;;  %v359_v24 = vld [vmem:[%s6679_s4 + $0x30] sm:$0xff]  ;;  %v360_v26 = vld [vmem:[%s6679_s4 + $0x38] sm:$0xff] }
  0x1b   : > { %s4330_s17 = scalar_lea.vmem %s6676_s1, %s3509_s14  ;;  %s351_s29 = scalar_lea.vmem %s6678_s3, %s3391_s24  ;;  %v375_v25 = vld [vmem:[%s6679_s4 + $0xb0] sm:$0xff]  ;;  %v376_v27 = vld [vmem:[%s6679_s4 + $0xb8] sm:$0xff]  ;;  %v361_v30 = vld [vmem:[%s6679_s4 + $0x40] sm:$0xff] }
  0x1c   : > { %v4333_v3 = vld [vmem:[%s4330_s17 + $0x10] sm:$0xff]  ;;  %v4336_v4 = vld [vmem:[%s4330_s17] sm:$0xff]  ;;  %v4342_v5 = vld [vmem:[%s4330_s17 + $0x18] sm:$0xff]  ;;  %s4517_s8 = scalar_lea.vmem %s6675_s0, %s3509_s14  ;;  %s3390_s14 = sshll.u32 %s4320_s13, 1 }
  0x1d   : > { %768 = vperm.xlu1 %4047, %v4333_v3   ;;  %758 = vperm.xlu0 %4046, %v4336_v4   ;;  %v4345_v6 = vld [vmem:[%s4330_s17 + $0x8] sm:$0xff]  ;;  %v352_v7 = vld [vmem:[%s351_s29] sm:$0xff]  ;;  %v4381_v16 = vld [vmem:[%s4330_s17 + $0x38] sm:$0xff]  ;;  %s344_s11 = scalar_lea.vmem %s6677_s2, %s3390_s14  ;;  %s317_s13 = scalar_lea.vmem [#allocation5], %s4317_s12 }
  0x1e   : > { %v4359_v10 = vld [vmem:[%s4330_s17 + $0x28] sm:$0xff]  ;;  %v4362_v11 = vld [vmem:[%s4330_s17 + $0x20] sm:$0xff]  ;;  %3612 = vmatprep.subr.mxu0 %v352_v7  ;;  %3898 = vmatprep.subr.mxu1 %v352_v7  ;;  %v4384_v17 = vld [vmem:[%s4330_s17 + $0x30] sm:$0xff] }
  0x1f   : > { %3613 = vmatpush3.msra.mxu0 %v352_v7  ;;  %3899 = vmatpush3.msra.mxu1 %v352_v7  ;;  %v4405_v22 = vld [vmem:[%s4330_s17 + $0x48] sm:$0xff]  ;;  %v4408_v23 = vld [vmem:[%s4330_s17 + $0x40] sm:$0xff]  ;;  %v750_v28 = vld [vmem:[%s4330_s17 + $0x58] sm:$0xff] }
  0x20   : > { %3615 = vmatmul.mubr.msk.f32.vlgmr.msra.gmra.mrb[0].mxu0 %vm6762_vm0, %v354_v8  ;;  %3639 = vmatmul.mubr.msk.f32.vlgmr.msra.gmra.mrb[0].mxu1 %vm6762_vm0, %v370_v9  ;;  %v749_v29 = vld [vmem:[%s4330_s17 + $0x50] sm:$0xff]  ;;  %v377_v31 = vld [vmem:[%s6679_s4 + $0xc0] sm:$0xff]  ;;  %v362_v32 = vld [vmem:[%s6679_s4 + $0x48] sm:$0xff] }
  0x21   : > { %773 = vperm.xlu1 %4047, %v4342_v5   ;;  %763 = vperm.xlu0 %4046, %v4345_v6   ;;  %v378_v33 = vld [vmem:[%s6679_s4 + $0xc8] sm:$0xff]  ;;  %v751_v35 = vld [vmem:[%s4330_s17 + $0x60] sm:$0xff]  ;;  %v363_v36 = vld [vmem:[%s6679_s4 + $0x50] sm:$0xff] }
  0x22   : > { %3617 = vmatprep.mubr.msk.f32.mxu0 %vm6762_vm0, %v355_v12  ;;  %3641 = vmatprep.mubr.msk.f32.mxu1 %vm6762_vm0, %v371_v13  ;;  %v752_v34 = vld [vmem:[%s4330_s17 + $0x68] sm:$0xff]  ;;  %v379_v37 = vld [vmem:[%s6679_s4 + $0xd0] sm:$0xff]  ;;  %v364_v38 = vld [vmem:[%s6679_s4 + $0x58] sm:$0xff] }
  0x23   : > { %v380_v39 = vld [vmem:[%s6679_s4 + $0xd8] sm:$0xff]  ;;  %v753_v41 = vld [vmem:[%s4330_s17 + $0x70] sm:$0xff]  ;;  %v365_v42 = vld [vmem:[%s6679_s4 + $0x60] sm:$0xff] }
  0x24   : > { %3618 = vmatmul.mubr.msk.f32.gmra.mrb[2].mxu0 %vm6762_vm0, %v356_v14  ;;  %3642 = vmatmul.mubr.msk.f32.gmra.mrb[2].mxu1 %vm6762_vm0, %v372_v15  ;;  %v754_v40 = vld [vmem:[%s4330_s17 + $0x78] sm:$0xff]  ;;  %v381_v43 = vld [vmem:[%s6679_s4 + $0xe0] sm:$0xff]  ;;  %v366_v44 = vld [vmem:[%s6679_s4 + $0x68] sm:$0xff] }
  0x25   : > { %783 = vperm.xlu1 %4047, %v4359_v10   ;;  %778 = vperm.xlu0 %4046, %v4362_v11   ;;  %v382_v45 = vld [vmem:[%s6679_s4 + $0xe8] sm:$0xff]  ;;  %v367_v46 = vld [vmem:[%s6679_s4 + $0x70] sm:$0xff]  ;;  %v368_v49 = vld [vmem:[%s6679_s4 + $0x78] sm:$0xff] }
  0x26   : > { %3620 = vmatprep.mubr.msk.f32.mxu0 %vm6762_vm0, %v357_v18  ;;  %3644 = vmatprep.mubr.msk.f32.mxu1 %vm6762_vm0, %v373_v19  ;;  %v383_v47 = vld [vmem:[%s6679_s4 + $0xf0] sm:$0xff]  ;;  %v384_v50 = vld [vmem:[%s6679_s4 + $0xf8] sm:$0xff]  ;;  %v973_v51 = vld [vmem:[%s4517_s8 + $0x8] sm:$0xff] }
  0x27   : > { %v972_v52 = vld [vmem:[%s4517_s8] sm:$0xff]  ;;  %v974_v54 = vld [vmem:[%s4517_s8 + $0x10] sm:$0xff]  ;;  %v975_v56 = vld [vmem:[%s4517_s8 + $0x18] sm:$0xff] }
  0x28   : > { %3621 = vmatmul.mubr.msk.f32.gmra.mrb[4].mxu0 %vm6762_vm0, %v358_v20  ;;  %3645 = vmatmul.mubr.msk.f32.gmra.mrb[4].mxu1 %vm6762_vm0, %v374_v21  ;;  %v976_v53 = vld [vmem:[%s4517_s8 + $0x20] sm:$0xff]  ;;  %v978_v55 = vld [vmem:[%s4517_s8 + $0x30] sm:$0xff]  ;;  %v977_v58 = vld [vmem:[%s4517_s8 + $0x28] sm:$0xff] }
  0x29   : > { %793 = vperm.xlu1 %4047, %v4381_v16   ;;  %788 = vperm.xlu0 %4046, %v4384_v17   ;;  %v980_v57 = vld [vmem:[%s4517_s8 + $0x40] sm:$0xff]  ;;  %v982_v59 = vld [vmem:[%s4517_s8 + $0x50] sm:$0xff]  ;;  %v979_v60 = vld [vmem:[%s4517_s8 + $0x38] sm:$0xff] }
  0x2a   : > { %3623 = vmatprep.mubr.msk.f32.mxu0 %vm6762_vm0, %v359_v24  ;;  %3647 = vmatprep.mubr.msk.f32.mxu1 %vm6762_vm0, %v375_v25  ;;  %v984_v61 = vld [vmem:[%s4517_s8 + $0x60] sm:$0xff]  ;;  %v981_v62 = vld [vmem:[%s4517_s8 + $0x48] sm:$0xff]  ;;  %v986_v63 = vld [vmem:[%s4517_s8 + $0x70] sm:$0xff] }
  0x2b   : > { %v983_v0 = vld [vmem:[%s4517_s8 + $0x58] sm:$0xff]  ;;  %v985_v1 = vld [vmem:[%s4517_s8 + $0x68] sm:$0xff]  ;;  %v755_v18 = vld [vmem:[%s344_s11] sm:$0x3] }
  0x2c   : > { %3624 = vmatmul.mubr.msk.f32.gmra.mrb[6].mxu0 %vm6762_vm0, %v360_v26  ;;  %3648 = vmatmul.mubr.msk.f32.gmra.mrb[6].mxu1 %vm6762_vm0, %v376_v27 }
  0x2d   : > { %803 = vperm.xlu1 %4047, %v4405_v22   ;;  %798 = vperm.xlu0 %4046, %v4408_v23  }
  0x2e   : > { %3626 = vmatprep.mubr.msk.f32.mxu0 %vm6762_vm0, %v361_v30  ;;  %3650 = vmatprep.mubr.msk.f32.mxu1 %vm6762_vm0, %v377_v31 }
  0x30   : > { %3627 = vmatmul.mubr.msk.f32.gmra.mrb[8].mxu0 %vm6762_vm0, %v362_v32  ;;  %3651 = vmatmul.mubr.msk.f32.gmra.mrb[8].mxu1 %vm6762_vm0, %v378_v33 }
  0x31   : > { %813 = vperm.xlu1 %4047, %v750_v28   ;;  %808 = vperm.xlu0 %4046, %v749_v29  }
  0x32   : > { %3629 = vmatprep.mubr.msk.f32.mxu0 %vm6762_vm0, %v363_v36  ;;  %3653 = vmatprep.mubr.msk.f32.mxu1 %vm6762_vm0, %v379_v37 }
  0x34   : > { %3630 = vmatmul.mubr.msk.f32.gmra.mrb[10].mxu0 %vm6762_vm0, %v364_v38  ;;  %3654 = vmatmul.mubr.msk.f32.gmra.mrb[10].mxu1 %vm6762_vm0, %v380_v39 }
  0x35   : > { %823 = vperm.xlu1 %4047, %v752_v34   ;;  %818 = vperm.xlu0 %4046, %v751_v35  }
  0x36   : > { %3632 = vmatprep.mubr.msk.f32.mxu0 %vm6762_vm0, %v365_v42  ;;  %3656 = vmatprep.mubr.msk.f32.mxu1 %vm6762_vm0, %v381_v43 }
  0x38   : > { %3633 = vmatmul.mubr.msk.f32.gmra.mrb[12].mxu0 %vm6762_vm0, %v366_v44  ;;  %3657 = vmatmul.mubr.msk.f32.gmra.mrb[12].mxu1 %vm6762_vm0, %v382_v45 }
  0x39   : > { %833 = vperm.xlu1 %4047, %v754_v40   ;;  %828 = vperm.xlu0 %4046, %v753_v41  }
  0x3a   : > { %3635 = vmatprep.mubr.msk.f32.mxu0 %vm6762_vm0, %v367_v46  ;;  %3659 = vmatprep.mubr.msk.f32.mxu1 %vm6762_vm0, %v383_v47 }
  0x3c   : > { %3636 = vmatmul.mubr.msk.f32.gmra.mrb[14].mxu0 %vm6762_vm0, %v368_v49  ;;  %3660 = vmatmul.mubr.msk.f32.gmra.mrb[14].mxu1 %vm6762_vm0, %v384_v50 }
  0x3d   : > { %4049 = vset.pattern.permute.xlu1 %v4215_v48  ;;  %4048 = vset.pattern.permute.xlu0 %v4215_v48 }
  0x3e   : > { %877 = vperm.xlu1 %4049, %v4345_v6   ;;  %873 = vperm.xlu0 %4048, %v4336_v4  }
  0x42   : > { %881 = vperm.xlu1 %4049, %v4333_v3   ;;  %885 = vperm.xlu0 %4048, %v4342_v5  }
  0x46   : > { %889 = vperm.xlu1 %4049, %v4362_v11   ;;  %893 = vperm.xlu0 %4048, %v4359_v10   ;;  %v836_v11 = vlaneseq }
  0x48   : > { %v4548_v14 = vshrl.u32 %v836_v11, 7 }
  0x4a   : > { %897 = vperm.xlu1 %4049, %v4384_v17   ;;  %901 = vperm.xlu0 %4048, %v4381_v16   ;;  %6776 = vst [vmem:[#allocation8_spill] sm:$0xff] %v4548_v14  ;;  %v6681_v17 = vsub.s32 0, %v4548_v14 }
  0x4c   : > { %v4564_v21 = vrot.slane %v755_v18, %v6681_v17 }
  0x4e   : > { %905 = vperm.xlu1 %4049, %v4408_v23   ;;  %909 = vperm.xlu0 %4048, %v4405_v22   ;;  %v938_v22 = vsub.s32 1, %v4548_v14 }
  0x50   : > { %v4573_v27 = vrot.slane %v755_v18, %v938_v22 }
  0x52   : > { %913 = vperm.xlu1 %4049, %v749_v29   ;;  %917 = vperm.xlu0 %4048, %v750_v28  }
  0x56   : > { %921 = vperm.xlu1 %4049, %v751_v35   ;;  %925 = vperm.xlu0 %4048, %v752_v34  }
  0x5a   : > { %929 = vperm.xlu1 %4049, %v753_v41   ;;  %933 = vperm.xlu0 %4048, %v754_v40  }
  0x5e   : > { %4050 = vset.pattern.permute.xlu1 %v4214_v2  ;;  %4051 = vset.pattern.permute.xlu0 %v4214_v2  ;;  %v987_v2 = vld [vmem:[%s4517_s8 + $0x78] sm:$0xff] }
  0x5f   : > { %1859 = vperm.xlu0 %4051, %v973_v51   ;;  %1854 = vperm.xlu1 %4050, %v972_v52  }
  0x63   : > { %1874 = vperm.xlu0 %4051, %v976_v53   ;;  %1864 = vperm.xlu1 %4050, %v974_v54  }
  0x67   : > { %1884 = vperm.xlu0 %4051, %v978_v55   ;;  %1869 = vperm.xlu1 %4050, %v975_v56  }
  0x6b   : > { %1894 = vperm.xlu0 %4051, %v980_v57   ;;  %1879 = vperm.xlu1 %4050, %v977_v58  }
  0x6f   : > { %1904 = vperm.xlu0 %4051, %v982_v59   ;;  %1889 = vperm.xlu1 %4050, %v979_v60  }
  0x73   : > { %1914 = vperm.xlu0 %4051, %v984_v61   ;;  %1899 = vperm.xlu1 %4050, %v981_v62  }
  0x77   : > { %1924 = vperm.xlu0 %4051, %v986_v63   ;;  %1909 = vperm.xlu1 %4050, %v983_v0  }
  0x7b   : > { %1919 = vperm.xlu1 %4050, %v985_v1  }
  0x7f   : > { %1929 = vperm.xlu1 %4050, %v987_v2  }
  0x9c   : > { %v769_v3 = vpop.permute.xlu1 %768  ;;  %v759_v4 = vpop.permute.xlu0 %758 }
  0x9d   : > { %v840_v25 = vsub.f32 %v759_v4, %v4564_v21  ;;  %v842_v28 = vsub.f32 %v769_v3, %v4564_v21 }
  0x9f   : > { %v4576_v31 = vmul.f32 0.6666667, %v840_v25  ;;  %v4583_v36 = vmul.f32 0.6666667, %v842_v28 }
  0xa0   : > { %v774_v5 = vpop.permute.xlu1 %773  ;;  %v764_v6 = vpop.permute.xlu0 %763 }
  0xa1   : > { %v841_v26 = vsub.f32 %v764_v6, %v4564_v21  ;;  %v843_v32 = vsub.f32 %v774_v5, %v4564_v21  ;;  %6777 = vst [vmem:[#allocation9_spill] sm:$0xff] %v4583_v36  ;;  %v4590_v41 = vand.u32 2147483647, %v4576_v31  ;;  %v4615_v55 = vand.u32 2147483647, %v4583_v36 }
  0xa2   : > { %vm1628_vm11 = vcmp.lt.f32.partialorder %v4576_v31, 0.0  ;;  %vm1630_vm12 = vcmp.lt.f32.partialorder %v4583_v36, 0.0 }
  0xa3   : > { %v4579_v33 = vmul.f32 0.6666667, %v841_v26  ;;  %v4592_v42 = vmul.f32 0.6666667, %v843_v32 }
  0xa4   : > { %v784_v7 = vpop.permute.xlu1 %783  ;;  %v4537_v8 = vpop.permute.xlu0 %778 }
  0xa5   : > { %6778 = vst [vmem:[#allocation10_spill] sm:$0xff] %v4592_v42  ;;  %v4597_v45 = vand.u32 2147483647, %v4579_v33  ;;  %v845_v50 = vsub.f32 %v784_v7, %v4564_v21  ;;  %v4618_v56 = vand.u32 2147483647, %v4592_v42  ;;  %v844_v57 = vsub.f32 %v4537_v8, %v4564_v21 }
  0xa6   : > { %vm1629_vm9 = vcmp.lt.f32.partialorder %v4579_v33, 0.0 }
  0xa7   : > { %v4632_v0 = vmul.f32 0.6666667, %v845_v50  ;;  %v4636_v3 = vmul.f32 0.6666667, %v844_v57 }
  0xa8   : > { %v4539_v9 = vpop.permute.xlu1 %793  ;;  %v4541_v10 = vpop.permute.xlu0 %788 }
  0xa9   : > { %v846_v59 = vsub.f32 %v4541_v10, %v4564_v21  ;;  %6781 = vst [vmem:[#allocation13_spill] sm:$0xff] %v4632_v0  ;;  %6782 = vst [vmem:[#allocation14_spill] sm:$0xff] %v4636_v3  ;;  %v847_v4 = vsub.f32 %v4539_v9, %v4564_v21  ;;  %v4648_v9 = vand.u32 2147483647, %v4632_v0 }
  0xab   : > { %v4640_v5 = vmul.f32 0.6666667, %v846_v59  ;;  %6785 = vst [vmem:[#allocation17_spill] sm:$0xff] %v4648_v9 }
  0xac   : > { %v4543_v12 = vpop.permute.xlu1 %803  ;;  %v4545_v13 = vpop.permute.xlu0 %798 }
  0xad   : > { %6783 = vst [vmem:[#allocation15_spill] sm:$0xff] %v4640_v5 }
  0xb0   : > { %v4553_v15 = vpop.permute.xlu1 %813  ;;  %v4555_v16 = vpop.permute.xlu0 %808 }
  0xb4   : > { %v4558_v19 = vpop.permute.xlu1 %823  ;;  %v4560_v20 = vpop.permute.xlu0 %818 }
  0xb8   : > { %v4567_v23 = vpop.permute.xlu1 %833  ;;  %v4569_v24 = vpop.permute.xlu0 %828 }
  0xbd   : > { %v878_v29 = vpop.permute.xlu1 %877  ;;  %v874_v30 = vpop.permute.xlu0 %873 }
  0xbe   : > { %v941_v34 = vsub.f32 %v878_v29, %v4573_v27  ;;  %v940_v35 = vsub.f32 %v874_v30, %v4573_v27  ;;  %v4656_v29 = vand.u32 2147483647, %v4636_v3  ;;  %v4658_v30 = vmul.f32 0.6666667, %v847_v4 }
  0xc0   : > { %v4585_v37 = vmul.f32 0.6666667, %v941_v34  ;;  %v4587_v38 = vmul.f32 0.6666667, %v940_v35  ;;  %6788 = vst [vmem:[#allocation20_spill] sm:$0xff] %v4658_v30 }
  0xc1   : > { %v882_v39 = vpop.permute.xlu1 %881  ;;  %v886_v40 = vpop.permute.xlu0 %885  ;;  %v4664_v34 = vand.u32 2147483647, %v4640_v5 }
  0xc2   : > { %v942_v43 = vsub.f32 %v882_v39, %v4573_v27  ;;  %v943_v44 = vsub.f32 %v886_v40, %v4573_v27  ;;  %v4600_v46 = vand.u32 2147483647, %v4585_v37  ;;  %v4603_v47 = vand.u32 2147483647, %v4587_v38 }
  0xc3   : > { %6789 = vst [vmem:[#allocation21_spill] sm:$0xff] %v4664_v34  ;;  %v849_v40 = vsub.f32 %v4543_v12, %v4564_v21 }
  0xc4   : > { %v4605_v48 = vmul.f32 0.6666667, %v942_v43  ;;  %v4607_v49 = vmul.f32 0.6666667, %v943_v44  ;;  %v1197_v51 = vmax.f32 %v4597_v45, %v4600_v46  ;;  %v1196_v52 = vmax.f32 %v4590_v41, %v4603_v47 }
  0xc5   : > { %v890_v53 = vpop.permute.xlu1 %889  ;;  %v894_v54 = vpop.permute.xlu0 %893  ;;  %v1213_v44 = vmin.f32 %v4597_v45, %v4600_v46  ;;  %v1212_v12 = vmin.f32 %v4590_v41, %v4603_v47  ;;  %vm1581_vm10 = vcmp.gt.f32.partialorder %v4600_v46, %v4597_v45  ;;  %vm1580_vm13 = vcmp.gt.f32.partialorder %v4603_v47, %v4590_v41 }
  0xc6   : > { %6779 = vst [vmem:[#allocation11_spill] sm:$0xff] %v4605_v48  ;;  %6780 = vst [vmem:[#allocation12_spill] sm:$0xff] %v4607_v49  ;;  %v4623_v58 = vand.u32 2147483647, %v4605_v48  ;;  %vm1229_vm1 = vcmp.eq.f32.partialorder %v1197_v51, 0.0  ;;  %vm1228_vm2 = vcmp.eq.f32.partialorder %v1196_v52, 0.0  ;;  %v944_v7 = vsub.f32 %v890_v53, %v4573_v27 }
  0xc7   : > { %v4628_v60 = vand.u32 2147483647, %v4607_v49  ;;  %v1245_v61 = vsel %vm1229_vm1, 1.0, %v1197_v51  ;;  %v1244_v62 = vsel %vm1228_vm2, 1.0, %v1196_v52  ;;  %v945_v11 = vsub.f32 %v894_v54, %v4573_v27 }
  0xc8   : > { %v1198_v63 = vmax.f32 %v4615_v55, %v4623_v58  ;;  %4052 = vrcp.f32 %v1245_v61  ;;  %v4645_v22 = vmul.f32 0.6666667, %v944_v7  ;;  %v4685_v54 = vand.u32 2147483647, %v4658_v30 }
  0xc9   : > { %v1199_v1 = vmax.f32 %v4618_v56, %v4628_v60  ;;  %v898_v2 = vpop.permute.xlu1 %897  ;;  %4054 = vrcp.f32 %v1244_v62  ;;  %v902_v8 = vpop.permute.xlu0 %901  ;;  %v4650_v25 = vmul.f32 0.6666667, %v945_v11  ;;  %v1214_v57 = vmin.f32 %v4615_v55, %v4623_v58 }
  0xca   : > { %vm1230_vm3 = vcmp.eq.f32.partialorder %v1198_v63, 0.0  ;;  %v946_v18 = vsub.f32 %v898_v2, %v4573_v27  ;;  %6784 = vst [vmem:[#allocation16_spill] sm:$0xff] %v4645_v22  ;;  %v947_v28 = vsub.f32 %v902_v8, %v4573_v27  ;;  %v4661_v32 = vand.u32 2147483647, %v4645_v22  ;;  %6793 = vst [vmem:[#allocation25_spill] sm:$0xff] %v4685_v54 }
  0xcb   : > { %v1246_v6 = vsel %vm1230_vm3, 1.0, %v1198_v63  ;;  %vm1231_vm4 = vcmp.eq.f32.partialorder %v1199_v1, 0.0  ;;  %6786 = vst [vmem:[#allocation18_spill] sm:$0xff] %v4650_v25  ;;  %v4667_v35 = vand.u32 2147483647, %v4650_v25  ;;  %v1215_v7 = vmin.f32 %v4618_v56, %v4628_v60 }
  0xcc   : > { %4056 = vrcp.f32 %v1246_v6  ;;  %v1247_v10 = vsel %vm1231_vm4, 1.0, %v1199_v1  ;;  %v4652_v26 = vmul.f32 0.6666667, %v946_v18  ;;  %v1200_v43 = vmax.f32 %v4656_v29, %v4661_v32 }
  0xcd   : > { %4058 = vrcp.f32 %v1247_v10  ;;  %6790 = vst [vmem:[#allocation22_spill] sm:$0xff] %v4667_v35  ;;  %v1201_v50 = vmax.f32 %v4648_v9, %v4667_v35  ;;  %v4682_v52 = vmul.f32 0.6666667, %v947_v28  ;;  %v1216_v14 = vmin.f32 %v4656_v29, %v4661_v32 }
  0xce   : > { %6787 = vst [vmem:[#allocation19_spill] sm:$0xff] %v4652_v26  ;;  %v4670_v39 = vand.u32 2147483647, %v4652_v26  ;;  %vm1232_vm5 = vcmp.eq.f32.partialorder %v1200_v43, 0.0  ;;  %vm1582_vm14 = vcmp.gt.f32.partialorder %v4623_v58, %v4615_v55  ;;  %vm1583_vm1 = vcmp.gt.f32.partialorder %v4628_v60, %v4618_v56 }
  0xcf   : > { %6792 = vst [vmem:[#allocation24_spill] sm:$0xff] %v4682_v52  ;;  %v1248_v62 = vsel %vm1232_vm5, 1.0, %v1200_v43  ;;  %vm1233_vm6 = vcmp.eq.f32.partialorder %v1201_v50, 0.0  ;;  %v4702_v8 = vand.u32 2147483647, %v4682_v52  ;;  %vm1631_vm2 = vcmp.lt.f32.partialorder %v4592_v42, 0.0 }
  0xd0   : > { %6791 = vst [vmem:[#allocation23_spill] sm:$0xff] %v4670_v39  ;;  %v1202_v51 = vmax.f32 %v4664_v34, %v4670_v39  ;;  %4060 = vrcp.f32 %v1248_v62  ;;  %v1249_v1 = vsel %vm1233_vm6, 1.0, %v1201_v50  ;;  %v848_v50 = vsub.f32 %v4545_v13, %v4564_v21 }
  0xd1   : > { %4062 = vrcp.f32 %v1249_v1  ;;  %6794 = vst [vmem:[#allocation26_spill] sm:$0xff] %v4702_v8  ;;  %vm1677_vm3 = vcmp.lt.f32.partialorder %v4585_v37, 0.0  ;;  %vm1741_vm4 = vcmp.eq.f32.partialorder %v4585_v37, 0.0  ;;  %vm1740_vm5 = vcmp.eq.f32.partialorder %v4587_v38, 0.0 }
  0xd2   : > { %v4053_v53 = vpop.eup %4052  ;;  %vm1234_vm7 = vcmp.eq.f32.partialorder %v1202_v51, 0.0  ;;  %vm1725_vm6 = vcmp.eq.f32.partialorder %v4579_v33, 0.0 }
  0xd3   : > { %v4055_v59 = vpop.eup %4054  ;;  %v4691_v61 = vmul.f32 %v4053_v53, %v1213_v44  ;;  %v1250_v2 = vsel %vm1234_vm7, 1.0, %v1202_v51  ;;  %v1203_v44 = vmax.f32 %v4685_v54, %v4702_v8  ;;  %vm1676_vm7 = vcmp.lt.f32.partialorder %v4587_v38, 0.0 }
  0xd4   : > { %v4693_v63 = vmul.f32 %v4055_v59, %v1212_v12  ;;  %4064 = vrcp.f32 %v1250_v2  ;;  %v4722_v12 = vmul.f32 0.6666667, %v849_v40 }
  0xd5   : > { %v4697_v6 = vmul.f32 %v4691_v61, %v4691_v61  ;;  %vm1235_vm8 = vcmp.eq.f32.partialorder %v1203_v44, 0.0 }
  0xd6   : > { %v4057_v4 = vpop.eup %4056  ;;  %v4706_v11 = vmul.f32 %v4693_v63, %v4693_v63  ;;  %6795 = vst [vmem:[#allocation27_spill] sm:$0xff] %v4722_v12  ;;  %v1251_v2 = vsel %vm1235_vm8, 1.0, %v1203_v44  ;;  %vm1678_vm8 = vcmp.lt.f32.partialorder %v4605_v48, 0.0 }
  0xd7   : > { %v4059_v10 = vpop.eup %4058  ;;  %v4708_v18 = vmul.f32 %v4057_v4, %v1214_v57  ;;  %v1309_v28 = vmul.f32 0.0028662258, %v4697_v6  ;;  %4066 = vrcp.f32 %v1251_v2  ;;  %v1217_v2 = vmin.f32 %v4648_v9, %v4667_v35 }
  0xd8   : > { %v4711_v43 = vmul.f32 %v4059_v10, %v1215_v7  ;;  %v1308_v51 = vmul.f32 0.0028662258, %v4706_v11  ;;  %v4731_v7 = vmul.f32 0.6666667, %v848_v50 }
  0xd9   : > { %v4720_v53 = vmul.f32 %v4708_v18, %v4708_v18  ;;  %v1325_v57 = vadd.f32 -0.016165737, %v1309_v28 }
  0xda   : > { %v4726_v59 = vmul.f32 %v4711_v43, %v4711_v43  ;;  %v1324_v62 = vadd.f32 -0.016165737, %v1308_v51  ;;  %6796 = vst [vmem:[#allocation28_spill] sm:$0xff] %v4731_v7  ;;  %v4061_v52 = vpop.eup %4060  ;;  %v4737_v51 = vand.u32 2147483647, %v4722_v12 }
  0xdb   : > { %v1310_v1 = vmul.f32 0.0028662258, %v4720_v53  ;;  %v1341_v13 = vmul.f32 %v1325_v57, %v4697_v6  ;;  %v4063_v50 = vpop.eup %4062  ;;  %v4749_v12 = vand.u32 2147483647, %v4731_v7 }
  0xdc   : > { %v1311_v4 = vmul.f32 0.0028662258, %v4726_v59  ;;  %v1340_v40 = vmul.f32 %v1324_v62, %v4706_v11  ;;  %v4752_v26 = vmul.f32 %v4063_v50, %v1217_v2 }
  0xdd   : > { %v1326_v10 = vadd.f32 -0.016165737, %v1310_v1  ;;  %v1357_v28 = vadd.f32 0.042909615, %v1341_v13  ;;  %v4744_v1 = vmul.f32 %v4061_v52, %v1216_v14  ;;  %v1218_v13 = vmin.f32 %v4664_v34, %v4670_v39 }
  0xde   : > { %v1327_v17 = vadd.f32 -0.016165737, %v1311_v4  ;;  %v1356_v44 = vadd.f32 0.042909615, %v1340_v40  ;;  %v4065_v4 = vpop.eup %4064 }
  0xdf   : > { %v1342_v57 = vmul.f32 %v1326_v10, %v4720_v53  ;;  %v1373_v30 = vmul.f32 %v1357_v28, %v4697_v6  ;;  %v4756_v28 = vmul.f32 %v4744_v1, %v4744_v1  ;;  %v4758_v14 = vmul.f32 %v4065_v4, %v1218_v13 }
  0xe0   : > { %v1343_v62 = vmul.f32 %v1327_v17, %v4726_v59  ;;  %v1372_v40 = vmul.f32 %v1356_v44, %v4706_v11  ;;  %v851_v17 = vsub.f32 %v4553_v15, %v4564_v21  ;;  %v4765_v44 = vmul.f32 %v4752_v26, %v4752_v26 }
  0xe1   : > { %v1358_v10 = vadd.f32 0.042909615, %v1342_v57  ;;  %v1389_v25 = vadd.f32 -0.07528964, %v1373_v30  ;;  %6797 = vst [vmem:[#allocation29_spill] sm:$0xff] %v4758_v14  ;;  %v1219_v4 = vmin.f32 %v4685_v54, %v4702_v8  ;;  %v4778_v30 = vmul.f32 %v4758_v14, %v4758_v14  ;;  %v906_v14 = vpop.permute.xlu1 %905 }
  0xe2   : > { %v1359_v22 = vadd.f32 0.042909615, %v1343_v62  ;;  %v1388_v52 = vadd.f32 -0.07528964, %v1372_v40  ;;  %v1312_v50 = vmul.f32 0.0028662258, %v4756_v28  ;;  %v4067_v40 = vpop.eup %4066  ;;  %v1536_v58 = vmul.f32 %v4756_v28, %v4744_v1 }
  0xe3   : > { %v1374_v7 = vmul.f32 %v1358_v10, %v4720_v53  ;;  %v1405_v57 = vmul.f32 %v1389_v25, %v4697_v6  ;;  %v1313_v15 = vmul.f32 0.0028662258, %v4765_v44  ;;  %v4781_v0 = vmul.f32 %v4067_v40, %v1219_v4 }
  0xe4   : > { %v1375_v2 = vmul.f32 %v1359_v22, %v4726_v59  ;;  %v1404_v62 = vmul.f32 %v1388_v52, %v4706_v11  ;;  %v1328_v39 = vadd.f32 -0.016165737, %v1312_v50 }
  0xe5   : > { %v1390_v13 = vadd.f32 -0.07528964, %v1374_v7  ;;  %v1421_v10 = vadd.f32 0.10656264, %v1405_v57  ;;  %v1329_v34 = vadd.f32 -0.016165737, %v1313_v15  ;;  %v4793_v4 = vmul.f32 %v4781_v0, %v4781_v0 }
  0xe6   : > { %v1391_v5 = vadd.f32 -0.07528964, %v1375_v2  ;;  %v1420_v25 = vadd.f32 0.10656264, %v1404_v62  ;;  %6798 = vst [vmem:[#allocation30_spill] sm:$0xff] %v4781_v0  ;;  %v1344_v8 = vmul.f32 %v1328_v39, %v4756_v28 }
  0xe7   : > { %v1406_v22 = vmul.f32 %v1390_v13, %v4720_v53  ;;  %v1437_v7 = vmul.f32 %v1421_v10, %v4697_v6  ;;  %v1314_v57 = vmul.f32 0.0028662258, %v4778_v30  ;;  %v4787_v2 = vmul.f32 0.6666667, %v851_v17 }
  0xe8   : > { %v1407_v52 = vmul.f32 %v1391_v5, %v4726_v59  ;;  %v1436_v50 = vmul.f32 %v1420_v25, %v4706_v11  ;;  %v1345_v62 = vmul.f32 %v1329_v34, %v4765_v44  ;;  %v1360_v15 = vadd.f32 0.042909615, %v1344_v8 }
  0xe9   : > { %v1422_v54 = vadd.f32 0.10656264, %v1406_v22  ;;  %v1453_v3 = vadd.f32 -0.142089, %v1437_v7  ;;  %v1330_v10 = vadd.f32 -0.016165737, %v1314_v57  ;;  %v948_v57 = vsub.f32 %v906_v14, %v4573_v27 }
  0xea   : > { %v1423_v13 = vadd.f32 0.10656264, %v1407_v52  ;;  %v1452_v40 = vadd.f32 -0.142089, %v1436_v50  ;;  %v1361_v39 = vadd.f32 0.042909615, %v1345_v62  ;;  %v1376_v22 = vmul.f32 %v1360_v15, %v4756_v28 }
  0xeb   : > { %v1438_v5 = vmul.f32 %v1422_v54, %v4720_v53  ;;  %v1469_v17 = vmul.f32 %v1453_v3, %v4697_v6  ;;  %v1315_v34 = vmul.f32 0.0028662258, %v4793_v4  ;;  %v1346_v50 = vmul.f32 %v1330_v10, %v4778_v30 }
  0xec   : > { %v1439_v25 = vmul.f32 %v1423_v13, %v4726_v59  ;;  %v1468_v8 = vmul.f32 %v1452_v40, %v4706_v11  ;;  %v1377_v52 = vmul.f32 %v1361_v39, %v4765_v44  ;;  %v1392_v62 = vadd.f32 -0.07528964, %v1376_v22 }
  0xed   : > { %v1454_v7 = vadd.f32 -0.142089, %v1438_v5  ;;  %v1485_v0 = vadd.f32 0.19993551, %v1469_v17  ;;  %v1362_v35 = vadd.f32 0.042909615, %v1346_v50 }
  0xee   : > { %v1455_v54 = vadd.f32 -0.142089, %v1439_v25  ;;  %v1484_v49 = vadd.f32 0.19993551, %v1468_v8  ;;  %v1393_v13 = vadd.f32 -0.07528964, %v1377_v52  ;;  %v1408_v40 = vmul.f32 %v1392_v62, %v4756_v28 }
  0xef   : > { %v1470_v3 = vmul.f32 %v1454_v7, %v4720_v53  ;;  %v1501_v15 = vmul.f32 %v1485_v0, %v4697_v6  ;;  %v1331_v5 = vadd.f32 -0.016165737, %v1315_v34  ;;  %v1378_v25 = vmul.f32 %v1362_v35, %v4778_v30 }
  0xf0   : > { %v1471_v9 = vmul.f32 %v1455_v54, %v4726_v59  ;;  %v1500_v39 = vmul.f32 %v1484_v49, %v4706_v11  ;;  %v1409_v17 = vmul.f32 %v1393_v13, %v4765_v44  ;;  %v1424_v8 = vadd.f32 0.10656264, %v1408_v40 }
  0xf1   : > { %v1486_v10 = vadd.f32 0.19993551, %v1470_v3  ;;  %v1517_v14 = vadd.f32 -0.33333147, %v1501_v15  ;;  %v1347_v7 = vmul.f32 %v1331_v5, %v4793_v4  ;;  %v1533_v0 = vmul.f32 %v4697_v6, %v4691_v61 }
  0xf2   : > { %v1487_v22 = vadd.f32 0.19993551, %v1471_v9  ;;  %v1425_v50 = vadd.f32 0.10656264, %v1409_v17  ;;  %v1394_v54 = vadd.f32 -0.07528964, %v1378_v25  ;;  %v1440_v62 = vmul.f32 %v1424_v8, %v4756_v28 }
  0xf3   : > { %v1502_v52 = vmul.f32 %v1486_v10, %v4720_v53  ;;  %v1516_v34 = vadd.f32 -0.33333147, %v1500_v39  ;;  %v1363_v3 = vadd.f32 0.042909615, %v1347_v7  ;;  %v1549_v13 = vmul.f32 %v1533_v0, %v1517_v14 }
  0xf4   : > { %v1503_v49 = vmul.f32 %v1487_v22, %v4726_v59  ;;  %v1441_v9 = vmul.f32 %v1425_v50, %v4765_v44  ;;  %v1410_v15 = vmul.f32 %v1394_v54, %v4778_v30  ;;  %v6799_v40 = vsub.f32 %v4555_v16, %v4564_v21 }
  0xf5   : > { %v1518_v35 = vadd.f32 -0.33333147, %v1502_v52  ;;  %v1532_v5 = vmul.f32 %v4706_v11, %v4693_v63  ;;  %v1456_v39 = vadd.f32 -0.142089, %v1440_v62  ;;  %v1379_v10 = vmul.f32 %v1363_v3, %v4793_v4  ;;  %v910_v3 = vpop.permute.xlu0 %909 }
  0xf6   : > { %v4822_v6 = vmul.f32 0.6666667, %v6799_v40  ;;  %v853_v17 = vsub.f32 %v4558_v19, %v4564_v21  ;;  %v1534_v25 = vmul.f32 %v4720_v53, %v4708_v18  ;;  %v1457_v14 = vadd.f32 -0.142089, %v1441_v9 }
  0xf7   : > { %v4831_v22 = vmul.f32 0.6666667, %v948_v57  ;;  %v852_v16 = vsub.f32 %v4560_v20, %v4564_v21  ;;  %v1548_v8 = vmul.f32 %v1532_v5, %v1516_v34  ;;  %v1519_v7 = vadd.f32 -0.33333147, %v1503_v49 }
  0xf8   : > { %v1395_v0 = vadd.f32 -0.07528964, %v1379_v10  ;;  %v1565_v11 = vadd.f32 %v1549_v13, %v4691_v61  ;;  %v1550_v52 = vmul.f32 %v1534_v25, %v1518_v35  ;;  %v1472_v50 = vmul.f32 %v1456_v39, %v4756_v28 }
  0xf9   : > { %v1426_v54 = vadd.f32 0.10656264, %v1410_v15  ;;  %v855_v19 = vsub.f32 %v4567_v23, %v4564_v21  ;;  %v854_v53 = vsub.f32 %v4569_v24, %v4564_v21  ;;  %v1535_v57 = vmul.f32 %v4726_v59, %v4711_v43 }
  0xfa   : > { %v1473_v20 = vmul.f32 %v1457_v14, %v4765_v44  ;;  %v4845_v34 = vand.u32 2147483647, %v4787_v2  ;;  %v4847_v49 = vmul.f32 0.6666667, %v853_v17  ;;  %v4850_v61 = vand.u32 2147483647, %v4831_v22 }
  0xfb   : > { %v4854_v62 = vmul.f32 %v4576_v31, %v4576_v31  ;;  %v4856_v23 = vmul.f32 0.6666667, %v852_v16  ;;  %v1564_v21 = vadd.f32 %v1548_v8, %v4693_v63  ;;  %v1551_v24 = vmul.f32 %v1535_v57, %v1519_v7 }
  0xfc   : > { %6800 = vst [vmem:[#allocation31_spill] sm:$0xff] %v4847_v49  ;;  %v1411_v59 = vmul.f32 %v1395_v0, %v4793_v4  ;;  %v1597_v13 = vsub.f32 1.5707964, %v1565_v11  ;;  %v1566_v35 = vadd.f32 %v1550_v52, %v4708_v18  ;;  %v1488_v9 = vadd.f32 0.19993551, %v1472_v50 }
  0xfd   : > { %6801 = vst [vmem:[#allocation32_spill] sm:$0xff] %v4854_v62  ;;  %v1442_v15 = vmul.f32 %v1426_v54, %v4778_v30  ;;  %v4862_v40 = vmul.f32 0.6666667, %v855_v19  ;;  %v4864_v5 = vmul.f32 0.6666667, %v854_v53  ;;  %v4868_v10 = vmul.f32 %v4579_v33, %v4579_v33 }
  0xfe   : > { %v1489_v39 = vadd.f32 0.19993551, %v1473_v20  ;;  %v4872_v63 = vand.u32 2147483647, %v4822_v6  ;;  %v4875_v17 = vand.u32 2147483647, %v4847_v49  ;;  %v1204_v18 = vmax.f32 %v4749_v12, %v4850_v61 }
  0xff   : > { %6802 = vst [vmem:[#allocation33_spill] sm:$0xff] %v4862_v40  ;;  %6803 = vst [vmem:[#allocation34_spill] sm:$0xff] %v4864_v5  ;;  %v949_v25 = vsub.f32 %v910_v3, %v4573_v27  ;;  %v1596_v14 = vsub.f32 1.5707964, %v1564_v21  ;;  %v1567_v16 = vadd.f32 %v1551_v24, %v4711_v43  ;;  %v1427_v8 = vadd.f32 0.10656264, %v1411_v59  ;;  %v914_v43 = vpop.permute.xlu1 %913 }
 0x100   : > { %v1613_v7 = vsel %vm1581_vm10, %v1597_v13, %v1565_v11  ;;  %v1598_v0 = vsub.f32 1.5707964, %v1566_v35  ;;  %v1504_v52 = vmul.f32 %v1488_v9, %v4756_v28  ;;  %v1458_v50 = vadd.f32 -0.142089, %v1442_v15 }
 0x101   : > { %v4886_v54 = vand.u32 2147483647, %v4856_v23  ;;  %v4889_v19 = vand.u32 2147483647, %v4862_v40  ;;  %v4892_v53 = vand.u32 2147483647, %v4864_v5  ;;  %v1505_v45 = vmul.f32 %v1489_v39, %v4765_v44 }
 0x102   : > { %vm1236_vm15 = vcmp.eq.f32.partialorder %v1204_v18, 0.0  ;;  %v4900_v46 = vmul.f32 0.6666667, %v949_v25  ;;  %v1645_v11 = vsub.f32 3.1415927, %v1613_v7  ;;  %v1612_v57 = vsel %vm1580_vm13, %v1596_v14, %v1564_v21 }
 0x103   : > { %v1599_v20 = vsub.f32 1.5707964, %v1567_v16  ;;  %v1443_v24 = vmul.f32 %v1427_v8, %v4793_v4  ;;  %v1614_v59 = vsel %vm1582_vm14, %v1598_v0, %v1566_v35  ;;  %v1520_v3 = vadd.f32 -0.33333147, %v1504_v52  ;;  %v922_v52 = vpop.permute.xlu1 %921 }
 0x104   : > { %6804 = vst [vmem:[#allocation35_spill] sm:$0xff] %v4900_v46  ;;  %v1474_v13 = vmul.f32 %v1458_v50, %v4778_v30  ;;  %v1252_v9 = vsel %vm1236_vm15, 1.0, %v1204_v18  ;;  %v1521_v41 = vadd.f32 -0.33333147, %v1505_v45  ;;  %v950_v47 = vsub.f32 %v914_v43, %v4573_v27 }
 0x105   : > { %4068 = vrcp.f32 %v1252_v9  ;;  %v1644_v55 = vsub.f32 3.1415927, %v1612_v57  ;;  %v1537_v21 = vmul.f32 %v4765_v44, %v4752_v26  ;;  %v4914_v35 = vand.u32 2147483647, %v4900_v46 }
 0x106   : > { %v1661_v56 = vsel %vm1629_vm9, %v1645_v11, %v1613_v7  ;;  %v1646_v60 = vsub.f32 3.1415927, %v1614_v59  ;;  %v1615_v15 = vsel %vm1583_vm1, %v1599_v20, %v1567_v16  ;;  %v1459_v39 = vadd.f32 -0.142089, %v1443_v24  ;;  %v918_v16 = vpop.permute.xlu0 %917  ;;  %v6806_v20 = vld [vmem:[#allocation17_spill] sm:$0xff]  ;;  %v6807_v24 = vld [vmem:[#allocation22_spill] sm:$0xff] }
 0x107   : > { %v1552_v18 = vmul.f32 %v1536_v58, %v1520_v3  ;;  %v1490_v25 = vadd.f32 0.19993551, %v1474_v13  ;;  %vm1742_vm10 = vcmp.eq.f32.partialorder %v4605_v48, 0.0  ;;  %v1553_v28 = vmul.f32 %v1537_v21, %v1521_v41  ;;  %v6808_v21 = vld [vmem:[#allocation12_spill] sm:$0xff]  ;;  %v930_v48 = vpop.permute.xlu1 %929 }
 0x108   : > { %v1205_v44 = vmax.f32 %v4737_v51, %v4914_v35  ;;  %v4926_v14 = vmul.f32 0.6666667, %v950_v47  ;;  %vm1724_vm9 = vcmp.eq.f32.partialorder %v4576_v31, 0.0  ;;  %v1693_v8 = vsub.f32 0.0, %v1661_v56 }
 0x109   : > { %v1660_v7 = vsel %vm1628_vm11, %v1644_v55, %v1612_v57  ;;  %v1647_v0 = vsub.f32 3.1415927, %v1615_v15  ;;  %v4933_v50 = vmul.f32 %v4585_v37, %v4585_v37  ;;  %vm1726_vm13 = vcmp.eq.f32.partialorder %v4583_v36, 0.0 }
 0x10a   : > { %6805 = vst [vmem:[#allocation36_spill] sm:$0xff] %v4926_v14  ;;  %v1662_v45 = vsel %vm1630_vm12, %v1646_v60, %v1614_v59  ;;  %vm1584_vm14 = vcmp.gt.f32.partialorder %v4661_v32, %v4656_v29  ;;  %v1475_v43 = vmul.f32 %v1459_v39, %v4793_v4  ;;  %vm1237_vm15 = vcmp.eq.f32.partialorder %v1205_v44, 0.0 }
 0x10b   : > { %v4942_v11 = vand.u32 2147483647, %v4926_v14  ;;  %v1568_v57 = vadd.f32 %v1552_v18, %v4744_v1  ;;  %vm1585_vm11 = vcmp.gt.f32.partialorder %v6807_v24, %v6806_v20  ;;  %v1506_v3 = vmul.f32 %v1490_v25, %v4778_v30  ;;  %v6809_v1 = vld [vmem:[#allocation29_spill] sm:$0xff]  ;;  %v6827_v24 = vld [vmem:[#allocation23_spill] sm:$0xff] }
 0x10c   : > { %v1253_v13 = vsel %vm1237_vm15, 1.0, %v1205_v44  ;;  %v951_v9 = vsub.f32 %v918_v16, %v4573_v27  ;;  %v1569_v59 = vadd.f32 %v1553_v28, %v4752_v26  ;;  %v952_v47 = vsub.f32 %v922_v52, %v4573_v27  ;;  %v6826_v20 = vld [vmem:[#allocation21_spill] sm:$0xff]  ;;  %v6841_v14 = vld [vmem:[#allocation19_spill] sm:$0xff] }
 0x10d   : > { %4070 = vrcp.f32 %v1253_v13  ;;  %v1206_v41 = vmax.f32 %v4872_v63, %v4942_v11  ;;  %v1692_v55 = vsub.f32 0.0, %v1660_v7  ;;  %v1694_v58 = vsub.f32 0.0, %v1662_v45 }
 0x10e   : > { %vm1679_vm12 = vcmp.lt.f32.partialorder %v6808_v21, 0.0  ;;  %v1538_v60 = vmul.f32 %v4778_v30, %v6809_v1  ;;  %v1220_v39 = vmin.f32 %v4749_v12, %v4850_v61  ;;  %v4960_v26 = vsel %vm1677_vm3, %v1693_v8, %v1661_v56  ;;  %v6812_v56 = vld [vmem:[#allocation14_spill] sm:$0xff] }
 0x10f   : > { %v4069_v18 = vpop.eup %4068  ;;  %v1663_v25 = vsel %vm1631_vm2, %v1647_v0, %v1615_v15  ;;  %v1491_v28 = vadd.f32 0.19993551, %v1475_v43  ;;  %vm1238_vm1 = vcmp.eq.f32.partialorder %v1206_v41, 0.0  ;;  %v1600_v44 = vsub.f32 1.5707964, %v1568_v57  ;;  %vm4976_vm2 = vmand %vm1725_vm6, %vm1741_vm4  ;;  %v6817_v43 = vld [vmem:[#allocation30_spill] sm:$0xff] }
 0x110   : > { %v1522_v16 = vadd.f32 -0.33333147, %v1506_v3  ;;  %v4964_v52 = vmul.f32 %v4069_v18, %v1220_v39  ;;  %v1254_v13 = vsel %vm1238_vm1, 1.0, %v1206_v41  ;;  %vm1743_vm15 = vcmp.eq.f32.partialorder %v6808_v21, 0.0  ;;  %vm5002_vm6 = vmand %vm1724_vm9, %vm1740_vm5  ;;  %v6824_v18 = vld [vmem:[#allocation13_spill] sm:$0xff] }
 0x111   : > { %v1601_v30 = vsub.f32 1.5707964, %v1569_v59  ;;  %4072 = vrcp.f32 %v1254_v13  ;;  %v4967_v40 = vmul.f32 0.6666667, %v951_v9  ;;  %v4969_v5 = vmul.f32 0.6666667, %v952_v47  ;;  %v926_v47 = vpop.permute.xlu0 %925 }
 0x112   : > { %vm1632_vm3 = vcmp.lt.f32.partialorder %v6812_v56, 0.0  ;;  %v4982_v8 = vsel %vm1676_vm7, %v1692_v55, %v1660_v7  ;;  %v4986_v0 = vsel %vm1678_vm8, %v1694_v58, %v1662_v45  ;;  %v1539_v3 = vmul.f32 %v4793_v4, %v6817_v43  ;;  %vm5014_vm7 = vmand %vm1726_vm13, %vm1742_vm10 }
 0x113   : > { %6810 = vst [vmem:[#allocation17_spill] sm:$0xff] %v4967_v40  ;;  %6811 = vst [vmem:[#allocation22_spill] sm:$0xff] %v4969_v5  ;;  %v4992_v37 = vmul.f32 %v4964_v52, %v4964_v52  ;;  %vm1727_vm4 = vcmp.eq.f32.partialorder %v4592_v42, 0.0  ;;  %v6818_v7 = vmov 0  ;;  %v1695_v45 = vsub.f32 0.0, %v1663_v25 }
 0x114   : > { %6815 = vst [vmem:[#allocation29_spill] sm:$0xff] %v4982_v8  ;;  %6816 = vst [vmem:[#allocation14_spill] sm:$0xff] %v4986_v0  ;;  %v6819_v7 = vsel %vm5002_vm6, 4294967295, %v6818_v7  ;;  %v1507_v9 = vmul.f32 %v1491_v28, %v4793_v4  ;;  %v5008_v41 = vand.u32 2147483647, %v4967_v40  ;;  %v6821_v55 = vmov 0 }
 0x115   : > { %6820 = vst [vmem:[#allocation30_spill] sm:$0xff] %v6819_v7  ;;  %v6822_v55 = vsel %vm5014_vm7, 4294967295, %v6821_v55  ;;  %v1616_v31 = vsel %vm1584_vm14, %v1600_v44, %v1568_v57  ;;  %v1554_v58 = vmul.f32 %v1538_v60, %v1522_v16  ;;  %v1316_v39 = vmul.f32 0.0028662258, %v4992_v37  ;;  %vm5069_vm13 = vmand %vm1727_vm4, %vm1743_vm15 }
 0x116   : > { %6823 = vst [vmem:[#allocation37_spill] sm:$0xff] %v6822_v55  ;;  %v5023_v4 = vand.u32 2147483647, %v4969_v5  ;;  %vm1633_vm5 = vcmp.lt.f32.partialorder %v6824_v18, 0.0  ;;  %v1617_v29 = vsel %vm1585_vm11, %v1601_v30, %v1569_v59  ;;  %v1207_v32 = vmax.f32 %v4845_v34, %v5008_v41 }
 0x117   : > { %v1332_v57 = vadd.f32 -0.016165737, %v1316_v39  ;;  %v1221_v60 = vmin.f32 %v4737_v51, %v4914_v35  ;;  %v953_v16 = vsub.f32 %v926_v47, %v4573_v27  ;;  %v4071_v28 = vpop.eup %4070  ;;  %v5044_v13 = vsel %vm1679_vm12, %v1695_v45, %v1663_v25 }
 0x118   : > { %v1208_v44 = vmax.f32 %v4886_v54, %v5023_v4  ;;  %6825 = vst [vmem:[#allocation38_spill] sm:$0xff] %v5044_v13  ;;  %v1648_v33 = vsub.f32 3.1415927, %v1616_v31  ;;  %vm1586_vm8 = vcmp.gt.f32.partialorder %v6827_v24, %v6826_v20  ;;  %v1523_v59 = vadd.f32 -0.33333147, %v1507_v9  ;;  %v6837_v13 = vld [vmem:[#allocation25_spill] sm:$0xff] }
 0x119   : > { %vm1239_vm10 = vcmp.eq.f32.partialorder %v1207_v32, 0.0  ;;  %v1570_v30 = vadd.f32 %v1554_v58, %v6809_v1  ;;  %v1348_v39 = vmul.f32 %v1332_v57, %v4992_v37  ;;  %v5050_v0 = vmul.f32 %v4071_v28, %v1221_v60  ;;  %v934_v1 = vpop.permute.xlu0 %933 }
 0x11a   : > { %v1255_v55 = vsel %vm1239_vm10, 1.0, %v1207_v32  ;;  %v1649_v47 = vsub.f32 3.1415927, %v1617_v29  ;;  %v1222_v36 = vmin.f32 %v4872_v63, %v4942_v11  ;;  %vm1240_vm9 = vcmp.eq.f32.partialorder %v1208_v44, 0.0 }
 0x11b   : > { %4074 = vrcp.f32 %v1255_v55  ;;  %v1364_v25 = vadd.f32 0.042909615, %v1348_v39  ;;  %v5056_v45 = vmul.f32 %v5050_v0, %v5050_v0  ;;  %v1256_v9 = vsel %vm1240_vm9, 1.0, %v1208_v44  ;;  %v4073_v58 = vpop.eup %4072 }
 0x11c   : > { %v5058_v8 = vmul.f32 0.6666667, %v953_v16  ;;  %v5062_v28 = vsel %vm1632_vm3, %v1648_v33, %v1616_v31  ;;  %v1555_v32 = vmul.f32 %v1539_v3, %v1523_v59  ;;  %4076 = vrcp.f32 %v1256_v9  ;;  %v6833_v59 = vld [vmem:[#allocation15_spill] sm:$0xff] }
 0x11d   : > { %v954_v57 = vsub.f32 %v930_v48, %v4573_v27  ;;  %v6829_v55 = vmov 0  ;;  %v1602_v60 = vsub.f32 1.5707964, %v1570_v30  ;;  %v1380_v44 = vmul.f32 %v1364_v25, %v4992_v37 }
 0x11e   : > { %6828 = vst [vmem:[#allocation21_spill] sm:$0xff] %v5058_v8  ;;  %v6830_v55 = vsel %vm5069_vm13, 4294967295, %v6829_v55  ;;  %v1317_v16 = vmul.f32 0.0028662258, %v5056_v45  ;;  %v5075_v39 = vmul.f32 %v4073_v58, %v1222_v36  ;;  %v5081_v48 = vand.u32 2147483647, %v5058_v8 }
 0x11f   : > { %6831 = vst [vmem:[#allocation23_spill] sm:$0xff] %v6830_v55  ;;  %v5083_v33 = vmul.f32 0.6666667, %v954_v57  ;;  %v955_v31 = vsub.f32 %v934_v1, %v4573_v27  ;;  %vm1634_vm14 = vcmp.lt.f32.partialorder %v6833_v59, 0.0  ;;  %v1665_v25 = vsel %vm1633_vm5, %v1649_v47, %v1617_v29  ;;  %v6835_v1 = vld [vmem:[#allocation16_spill] sm:$0xff]  ;;  %v6836_v29 = vld [vmem:[#allocation18_spill] sm:$0xff] }
 0x120   : > { %v1396_v9 = vadd.f32 -0.07528964, %v1380_v44  ;;  %v1333_v42 = vadd.f32 -0.016165737, %v1317_v16  ;;  %v5091_v36 = vmul.f32 %v5075_v39, %v5075_v39  ;;  %v1696_v58 = vsub.f32 0.0, %v5062_v28  ;;  %v6838_v55 = vld [vmem:[#allocation26_spill] sm:$0xff] }
 0x121   : > { %6832 = vst [vmem:[#allocation39_spill] sm:$0xff] %v5083_v33  ;;  %v1571_v3 = vadd.f32 %v1555_v32, %v6817_v43  ;;  %v1209_v57 = vmax.f32 %v4875_v17, %v5081_v48  ;;  %v5098_v27 = vand.u32 2147483647, %v5083_v33  ;;  %vm1680_vm11 = vcmp.lt.f32.partialorder %v6835_v1, 0.0 }
 0x122   : > { %vm1744_vm12 = vcmp.eq.f32.partialorder %v6835_v1, 0.0  ;;  %vm1681_vm1 = vcmp.lt.f32.partialorder %v6836_v29, 0.0  ;;  %v1618_v47 = vsel %vm1586_vm8, %v1602_v60, %v1570_v30  ;;  %v1412_v44 = vmul.f32 %v1396_v9, %v4992_v37 }
 0x123   : > { %6834 = vst [vmem:[#allocation15_spill] sm:$0xff] %v5098_v27  ;;  %v1349_v43 = vmul.f32 %v1333_v42, %v5056_v45  ;;  %v1318_v32 = vmul.f32 0.0028662258, %v5091_v36  ;;  %v1697_v16 = vsub.f32 0.0, %v1665_v25  ;;  %vm1745_vm15 = vcmp.eq.f32.partialorder %v6836_v29, 0.0 }
 0x124   : > { %vm1587_vm3 = vcmp.gt.f32.partialorder %v6838_v55, %v6837_v13  ;;  %vm1241_vm4 = vcmp.eq.f32.partialorder %v1209_v57, 0.0  ;;  %v1210_v21 = vmax.f32 %v4892_v53, %v5098_v27  ;;  %v5114_v33 = vmul.f32 0.6666667, %v955_v31 }
 0x125   : > { %vm1728_vm5 = vcmp.eq.f32.partialorder %v6812_v56, 0.0  ;;  %v1428_v20 = vadd.f32 0.10656264, %v1412_v44  ;;  %v1365_v24 = vadd.f32 0.042909615, %v1349_v43  ;;  %v1223_v42 = vmin.f32 %v4845_v34, %v5008_v41  ;;  %v4075_v60 = vpop.eup %4074 }
 0x126   : > { %6839 = vst [vmem:[#allocation25_spill] sm:$0xff] %v5114_v33  ;;  %v1334_v30 = vadd.f32 -0.016165737, %v1318_v32  ;;  %vm1729_vm8 = vcmp.eq.f32.partialorder %v6824_v18, 0.0  ;;  %v1650_v9 = vsub.f32 3.1415927, %v1618_v47  ;;  %v4077_v44 = vpop.eup %4076  ;;  %v1224_v43 = vmin.f32 %v4886_v54, %v5023_v4 }
 0x127   : > { %v1603_v8 = vsub.f32 1.5707964, %v1571_v3  ;;  %v1257_v7 = vsel %vm1241_vm4, 1.0, %v1209_v57  ;;  %vm1242_vm10 = vcmp.eq.f32.partialorder %v1210_v21, 0.0  ;;  %v1444_v49 = vmul.f32 %v1428_v20, %v4992_v37 }
 0x128   : > { %v1381_v31 = vmul.f32 %v1365_v24, %v5056_v45  ;;  %v1350_v5 = vmul.f32 %v1334_v30, %v5091_v36  ;;  %v5123_v62 = vmul.f32 %v4075_v60, %v1223_v42  ;;  %4078 = vrcp.f32 %v1257_v7 }
 0x129   : > { %v1258_v32 = vsel %vm1242_vm10, 1.0, %v1210_v21  ;;  %v5128_v40 = vand.u32 2147483647, %v5114_v33  ;;  %vm1682_vm9 = vcmp.lt.f32.partialorder %v6841_v14, 0.0  ;;  %v1460_v57 = vadd.f32 -0.142089, %v1444_v49 }
 0x12a   : > { %v1397_v46 = vadd.f32 -0.07528964, %v1381_v31  ;;  %v1366_v20 = vadd.f32 0.042909615, %v1350_v5  ;;  %v5133_v24 = vmul.f32 %v5123_v62, %v5123_v62  ;;  %v1666_v30 = vsel %vm1634_vm14, %v1650_v9, %v1618_v47  ;;  %v6842_v31 = vld [vmem:[#allocation20_spill] sm:$0xff] }
 0x12b   : > { %6840 = vst [vmem:[#allocation26_spill] sm:$0xff] %v5128_v40  ;;  %v5137_v42 = vmul.f32 %v4077_v44, %v1224_v43  ;;  %4080 = vrcp.f32 %v1258_v32  ;;  %v1211_v21 = vmax.f32 %v4889_v19, %v5128_v40  ;;  %v1476_v7 = vmul.f32 %v1460_v57, %v4992_v37 }
 0x12c   : > { %v1413_v60 = vmul.f32 %v1397_v46, %v5056_v45  ;;  %v1382_v49 = vmul.f32 %v1366_v20, %v5091_v36  ;;  %v1319_v5 = vmul.f32 0.0028662258, %v5133_v24  ;;  %vm1635_vm4 = vcmp.lt.f32.partialorder %v6842_v31, 0.0 }
 0x12d   : > { %v5149_v47 = vsel %vm1680_vm11, %v1696_v58, %v5062_v28  ;;  %v5153_v9 = vsel %vm1681_vm1, %v1697_v16, %v1665_v25  ;;  %v5157_v44 = vmul.f32 %v5137_v42, %v5137_v42  ;;  %vm1243_vm14 = vcmp.eq.f32.partialorder %v1211_v21, 0.0  ;;  %vm5166_vm11 = vmand %vm1728_vm5, %vm1744_vm12 }
 0x12e   : > { %6843 = vst [vmem:[#allocation19_spill] sm:$0xff] %v5149_v47  ;;  %6844 = vst [vmem:[#allocation20_spill] sm:$0xff] %v5153_v9  ;;  %v1619_v46 = vsel %vm1587_vm3, %v1603_v8, %v1571_v3  ;;  %v1492_v43 = vadd.f32 0.19993551, %v1476_v7  ;;  %v1429_v32 = vadd.f32 0.10656264, %v1413_v60  ;;  %v1225_v18 = vmin.f32 %v4875_v17, %v5081_v48 }
 0x12f   : > { %v1398_v57 = vadd.f32 -0.07528964, %v1382_v49  ;;  %v6845_v28 = vmov 0  ;;  %v1698_v25 = vsub.f32 0.0, %v1666_v30  ;;  %v1335_v58 = vadd.f32 -0.016165737, %v1319_v5  ;;  %vm5178_vm1 = vmand %vm1729_vm8, %vm1745_vm15 }
 0x130   : > { %v6846_v28 = vsel %vm5166_vm11, 4294967295, %v6845_v28  ;;  %v1320_v16 = vmul.f32 0.0028662258, %v5157_v44  ;;  %v1259_v20 = vsel %vm1243_vm14, 1.0, %v1211_v21  ;;  %v6848_v13 = vmov 0  ;;  %v6851_v9 = vld [vmem:[#allocation24_spill] sm:$0xff] }
 0x131   : > { %6847 = vst [vmem:[#allocation40_spill] sm:$0xff] %v6846_v28  ;;  %v6849_v13 = vsel %vm5178_vm1, 4294967295, %v6848_v13  ;;  %v1508_v55 = vmul.f32 %v1492_v43, %v4992_v37  ;;  %v1445_v3 = vmul.f32 %v1429_v32, %v5056_v45  ;;  %v1414_v7 = vmul.f32 %v1398_v57, %v5091_v36 }
 0x132   : > { %6850 = vst [vmem:[#allocation41_spill] sm:$0xff] %v6849_v13  ;;  %v1651_v60 = vsub.f32 3.1415927, %v1619_v46  ;;  %v1351_v49 = vmul.f32 %v1335_v58, %v5133_v24  ;;  %v1336_v5 = vadd.f32 -0.016165737, %v1320_v16  ;;  %4082 = vrcp.f32 %v1259_v20  ;;  %v4079_v29 = vpop.eup %4078 }
 0x133   : > { %v1461_v8 = vadd.f32 -0.142089, %v1445_v3  ;;  %v1430_v33 = vadd.f32 0.10656264, %v1414_v7  ;;  %v5193_v43 = vsel %vm1682_vm9, %v1698_v25, %v1666_v30  ;;  %v5198_v21 = vadd.f32 %v4933_v50, %v4868_v10 }
 0x134   : > { %v1367_v32 = vadd.f32 0.042909615, %v1351_v49  ;;  %v1352_v57 = vmul.f32 %v1336_v5, %v5157_v44  ;;  %v1524_v58 = vadd.f32 -0.33333147, %v1508_v55  ;;  %v5202_v7 = vmul.f32 %v4079_v29, %v1225_v18 }
 0x135   : > { %v1477_v16 = vmul.f32 %v1461_v8, %v5056_v45  ;;  %v1446_v3 = vmul.f32 %v1430_v33, %v5091_v36  ;;  %v4081_v20 = vpop.eup %4080  ;;  %vm1683_vm12 = vcmp.lt.f32.partialorder %v6851_v9, 0.0  ;;  %v1540_v30 = vmul.f32 %v4992_v37, %v4964_v52 }
 0x136   : > { %v1383_v25 = vmul.f32 %v1367_v32, %v5133_v24  ;;  %v1368_v49 = vadd.f32 0.042909615, %v1352_v57  ;;  %v1226_v10 = vmin.f32 %v4892_v53, %v5098_v27  ;;  %v1667_v50 = vsel %vm1635_vm4, %v1651_v60, %v1619_v46 }
 0x137   : > { %v1493_v8 = vadd.f32 0.19993551, %v1477_v16  ;;  %v1462_v55 = vadd.f32 -0.142089, %v1446_v3  ;;  %v5214_v18 = vmul.f32 %v5202_v7, %v5202_v7  ;;  %v5220_v37 = vadd.f32 1e-09, %v5198_v21 }
 0x138   : > { %v1399_v33 = vadd.f32 -0.07528964, %v1383_v25  ;;  %v1384_v29 = vmul.f32 %v1368_v49, %v5157_v44  ;;  %v5217_v5 = vmul.f32 %v4081_v20, %v1226_v10  ;;  %v1556_v32 = vmul.f32 %v1540_v30, %v1524_v58 }
 0x139   : > { %v1509_v57 = vmul.f32 %v1493_v8, %v5056_v45  ;;  %v1478_v13 = vmul.f32 %v1462_v55, %v5091_v36  ;;  %v1321_v46 = vmul.f32 0.0028662258, %v5214_v18  ;;  %v1699_v60 = vsub.f32 0.0, %v1667_v50 }
 0x13a   : > { %v1415_v16 = vmul.f32 %v1399_v33, %v5133_v24  ;;  %v1400_v3 = vadd.f32 -0.07528964, %v1384_v29  ;;  %v5228_v25 = vmul.f32 %v5217_v5, %v5217_v5  ;;  %v1541_v49 = vmul.f32 %v5056_v45, %v5050_v0 }
 0x13b   : > { %v1525_v20 = vadd.f32 -0.33333147, %v1509_v57  ;;  %v1494_v10 = vadd.f32 0.19993551, %v1478_v13  ;;  %v1337_v58 = vadd.f32 -0.016165737, %v1321_v46  ;;  %vm1588_vm15 = vcmp.gt.f32.partialorder %v4850_v61, %v4749_v12 }
 0x13c   : > { %v1431_v30 = vadd.f32 0.10656264, %v1415_v16  ;;  %v1416_v8 = vmul.f32 %v1400_v3, %v5157_v44  ;;  %v1322_v55 = vmul.f32 0.0028662258, %v5228_v25  ;;  %4084 = vrsqrt.f32 %v5220_v37  ;;  %v4083_v33 = vpop.eup %4082 }
 0x13d   : > { %v1572_v29 = vadd.f32 %v1556_v32, %v4964_v52  ;;  %v1510_v57 = vmul.f32 %v1494_v10, %v5091_v36  ;;  %v1353_v47 = vmul.f32 %v1337_v58, %v5214_v18  ;;  %v1227_v45 = vmin.f32 %v4889_v19, %v5128_v40 }
 0x13e   : > { %v1557_v13 = vmul.f32 %v1541_v49, %v1525_v20  ;;  %v1447_v46 = vmul.f32 %v1431_v30, %v5133_v24  ;;  %v1432_v16 = vadd.f32 0.10656264, %v1416_v8  ;;  %v1338_v28 = vadd.f32 -0.016165737, %v1322_v55 }
 0x13f   : > { %v5245_v3 = vsel %vm1683_vm12, %v1699_v60, %v1667_v50  ;;  %v1526_v1 = vadd.f32 -0.33333147, %v1510_v57  ;;  %v1542_v52 = vmul.f32 %v5091_v36, %v5075_v39  ;;  %v1369_v32 = vadd.f32 0.042909615, %v1353_v47 }
 0x140   : > { %v1463_v10 = vadd.f32 -0.142089, %v1447_v46  ;;  %v1448_v58 = vmul.f32 %v1432_v16, %v5157_v44  ;;  %v1354_v27 = vmul.f32 %v1338_v28, %v5228_v25  ;;  %v5251_v40 = vmul.f32 %v4083_v33, %v1227_v45 }
 0x141   : > { %v1604_v20 = vsub.f32 1.5707964, %v1572_v29  ;;  %vm1589_vm3 = vcmp.gt.f32.partialorder %v4914_v35, %v4737_v51  ;;  %v1558_v49 = vmul.f32 %v1542_v52, %v1526_v1  ;;  %v1385_v50 = vmul.f32 %v1369_v32, %v5214_v18 }
 0x142   : > { %v5258_v60 = vmul.f32 %v4587_v38, %v4587_v38  ;;  %v1573_v36 = vadd.f32 %v1557_v13, %v5050_v0  ;;  %vm1590_vm5 = vcmp.gt.f32.partialorder %v4942_v11, %v4872_v63  ;;  %v1479_v47 = vmul.f32 %v1463_v10, %v5133_v24  ;;  %v6852_v38 = vld [vmem:[#allocation28_spill] sm:$0xff] }
 0x143   : > { %v1464_v28 = vadd.f32 -0.142089, %v1448_v58  ;;  %v1370_v30 = vadd.f32 0.042909615, %v1354_v27  ;;  %v1574_v8 = vadd.f32 %v1558_v49, %v5075_v39  ;;  %v1543_v1 = vmul.f32 %v5133_v24, %v5123_v62 }
 0x144   : > { %v1401_v55 = vadd.f32 -0.07528964, %v1385_v50  ;;  %v5269_v33 = vmul.f32 %v5251_v40, %v5251_v40  ;;  %vm1636_vm8 = vcmp.lt.f32.partialorder %v6852_v38, 0.0  ;;  %v1495_v0 = vadd.f32 0.19993551, %v1479_v47 }
 0x145   : > { %v1480_v57 = vmul.f32 %v1464_v28, %v5157_v44  ;;  %v1386_v45 = vmul.f32 %v1370_v30, %v5228_v25  ;;  %vm1061_vm10 = vcmp.eq.f32.partialorder %v5220_v37, inf  ;;  %v1620_v39 = vsel %vm1588_vm15, %v1604_v20, %v1572_v29 }
 0x146   : > { %v1417_v27 = vmul.f32 %v1401_v55, %v5214_v18  ;;  %v1323_v13 = vmul.f32 0.0028662258, %v5269_v33  ;;  %vm1063_vm9 = vcmp.eq.f32.partialorder %v5220_v37, 0.0  ;;  %v4085_v46 = vpop.eup %4084  ;;  %v1605_v16 = vsub.f32 1.5707964, %v1573_v36 }
 0x147   : > { %v1511_v52 = vmul.f32 %v1495_v0, %v5133_v24  ;;  %v1496_v32 = vadd.f32 0.19993551, %v1480_v57  ;;  %v1402_v10 = vadd.f32 -0.07528964, %v1386_v45  ;;  %v1606_v58 = vsub.f32 1.5707964, %v1574_v8 }
 0x148   : > { %v1544_v12 = vmul.f32 %v5157_v44, %v5137_v42  ;;  %v1433_v61 = vadd.f32 0.10656264, %v1417_v27  ;;  %v1339_v29 = vadd.f32 -0.016165737, %v1323_v13  ;;  %v1064_v24 = vand.u32 2147483648, %v5220_v37  ;;  %v6853_v0 = vld [vmem:[#allocation27_spill] sm:$0xff] }
 0x149   : > { %v1527_v20 = vadd.f32 -0.33333147, %v1511_v52  ;;  %v1512_v49 = vmul.f32 %v1496_v32, %v5157_v44  ;;  %v1418_v50 = vmul.f32 %v1402_v10, %v5228_v25  ;;  %v1652_v47 = vsub.f32 3.1415927, %v1620_v39 }
 0x14a   : > { %vm1592_vm15 = vcmp.gt.f32.partialorder %v5023_v4, %v4886_v54  ;;  %v1449_v28 = vmul.f32 %v1433_v61, %v5214_v18  ;;  %v1355_v30 = vmul.f32 %v1339_v29, %v5269_v33  ;;  %v1060_v55 = vmul.f32 %v4085_v46, %v5220_v37 }
 0x14b   : > { %vm1730_vm0 = vcmp.eq.f32.partialorder %v6833_v59, 0.0  ;;  %vm1637_vm14 = vcmp.lt.f32.partialorder %v6853_v0, 0.0  ;;  %vm1638_vm4 = vcmp.lt.f32.partialorder %v4822_v6, 0.0  ;;  %v1621_v44 = vsel %vm1589_vm3, %v1605_v16, %v1573_v36 }
 0x14c   : > { %v1559_v57 = vmul.f32 %v1543_v1, %v1527_v20  ;;  %v1528_v45 = vadd.f32 -0.33333147, %v1512_v49  ;;  %v1789_v27 = vsub.f32 1.0, %v5198_v21  ;;  %vm1731_vm12 = vcmp.eq.f32.partialorder %v6842_v31, 0.0 }
 0x14d   : > { %v1622_v13 = vsel %vm1590_vm5, %v1606_v58, %v1574_v8  ;;  %v1465_v46 = vadd.f32 -0.142089, %v1449_v28  ;;  %v1434_v52 = vadd.f32 0.10656264, %v1418_v50  ;;  %v1062_v32 = vsel %vm1061_vm10, %v5220_v37, %v1060_v55  ;;  %v6856_v55 = vld [vmem:[#allocation35_spill] sm:$0xff] }
 0x14e   : > { %v1575_v10 = vadd.f32 %v1559_v57, %v5123_v62  ;;  %v1560_v51 = vmul.f32 %v1544_v12, %v1528_v45  ;;  %v1371_v35 = vadd.f32 0.042909615, %v1355_v30  ;;  %v1065_v36 = vsel %vm1063_vm9, %v1064_v24, %v1062_v32  ;;  %v6857_v57 = vld [vmem:[#allocation36_spill] sm:$0xff]  ;;  %v6864_v32 = vld [vmem:[#allocation17_spill] sm:$0xff] }
 0x14f   : > { %v1668_v21 = vsel %vm1636_vm8, %v1652_v47, %v1620_v39  ;;  %vm1684_vm5 = vcmp.lt.f32.partialorder %v4831_v22, 0.0  ;;  %v1653_v63 = vsub.f32 3.1415927, %v1621_v44  ;;  %v1481_v11 = vmul.f32 %v1465_v46, %v5214_v18 }
 0x150   : > { %v1450_v8 = vmul.f32 %v1434_v52, %v5228_v25  ;;  %v1654_v62 = vsub.f32 3.1415927, %v1622_v13  ;;  %v1607_v1 = vsub.f32 1.5707964, %v1575_v10  ;;  %v1576_v16 = vadd.f32 %v1560_v51, %v5137_v42 }
 0x151   : > { %v1387_v37 = vmul.f32 %v1371_v35, %v5269_v33  ;;  %v1497_v58 = vadd.f32 0.19993551, %v1481_v11  ;;  %v1545_v12 = vmul.f32 %v5214_v18, %v5202_v7  ;;  %v1986_v61 = vmul.f32 2.0, %v1065_v36 }
 0x152   : > { %v1466_v39 = vadd.f32 -0.142089, %v1450_v8  ;;  %vm6854_vm3 = vcmp.gt.f32.partialorder %v5008_v41, %v4845_v34  ;;  %v1608_v20 = vsub.f32 1.5707964, %v1576_v16  ;;  %v6855_v42 = vsel %vm4976_vm2, 0.0, %v4960_v26 }
 0x153   : > { %v1623_v29 = vsel %vm6854_vm3, %v1607_v1, %v1575_v10  ;;  %v1403_v49 = vadd.f32 -0.07528964, %v1387_v37  ;;  %v2018_v50 = vmul.f32 0.2546479, %v6855_v42  ;;  %v1700_v24 = vsub.f32 0.0, %v1668_v21  ;;  %v6866_v1 = vld [vmem:[#allocation32_spill] sm:$0xff] }
 0x154   : > { %v1655_v47 = vsub.f32 3.1415927, %v1623_v29  ;;  %v1513_v28 = vmul.f32 %v1497_v58, %v5214_v18  ;;  %v1482_v30 = vmul.f32 %v1466_v39, %v5228_v25  ;;  %vm1685_vm8 = vcmp.lt.f32.partialorder %v6856_v55, 0.0  ;;  %v6867_v39 = vld [vmem:[#allocation22_spill] sm:$0xff] }
 0x155   : > { %v1624_v34 = vsel %vm1592_vm15, %v1608_v20, %v1576_v16  ;;  %v1419_v15 = vmul.f32 %v1403_v49, %v5269_v33  ;;  %v3425_v26 = vadd.f32 -1.0, %v1986_v61  ;;  %v2098_v41 = vadd.f32 1.0, %v2018_v50 }
 0x156   : > { %vm6858_vm2 = vcmp.eq.f32.partialorder %v6841_v14, 0.0  ;;  %v1669_v45 = vsel %vm1637_vm14, %v1653_v63, %v1621_v44  ;;  %v1670_v46 = vsel %vm1638_vm4, %v1654_v62, %v1622_v13  ;;  %vm1750_vm15 = vcmp.eq.f32.partialorder %v6857_v57, 0.0 }
 0x157   : > { %vm5346_vm3 = vmand %vm1730_vm0, %vm6858_vm2  ;;  %v1529_v54 = vadd.f32 -0.33333147, %v1513_v28  ;;  %v1498_v4 = vadd.f32 0.19993551, %v1482_v30  ;;  %vm1733_vm9 = vcmp.eq.f32.partialorder %v6853_v0, 0.0  ;;  %vm6861_vm10 = vcmp.eq.f32.partialorder %v6851_v9, 0.0 }
 0x158   : > { %vm5360_vm0 = vmand %vm1731_vm12, %vm6861_vm10  ;;  %v6862_v52 = vmov 0  ;;  %vm1687_vm2 = vcmp.lt.f32.partialorder %v6864_v32, 0.0  ;;  %v1435_v44 = vadd.f32 0.10656264, %v1419_v15  ;;  %v1805_v13 = vmax.f32 %v1789_v27, 0.0 }
 0x159   : > { %v6863_v52 = vsel %vm5360_vm0, 4294967295, %v6862_v52  ;;  %v2034_v10 = vadd.f32 1.0, %v3425_v26  ;;  %v2114_v51 = vmul.f32 10.0, %v2098_v41  ;;  %v1656_v63 = vsub.f32 3.1415927, %v1624_v34 }
 0x15a   : > { %v1561_v11 = vmul.f32 %v1545_v12, %v1529_v54  ;;  %v5376_v8 = vsel %vm1684_vm5, %v1700_v24, %v1668_v21  ;;  %vm6865_vm10 = vcmp.lt.f32.partialorder %v4787_v2, 0.0  ;;  %v5382_v16 = vadd.f32 %v5258_v60, %v6866_v1 }
 0x15b   : > { %v1671_v27 = vsel %vm6865_vm10, %v1655_v47, %v1623_v29  ;;  %v2050_v62 = vmul.f32 4.0, %v2034_v10  ;;  %v1701_v37 = vsub.f32 0.0, %v1669_v45  ;;  %v1702_v58 = vsub.f32 0.0, %v1670_v46 }
 0x15c   : > { %v1514_v12 = vmul.f32 %v1498_v4, %v5228_v25  ;;  %v3457_v61 = vadd.f32 -1.0, %v2114_v51  ;;  %vm1593_vm12 = vcmp.gt.f32.partialorder %v5081_v48, %v4875_v17  ;;  %v1451_v21 = vmul.f32 %v1435_v44, %v5269_v33  ;;  %v1860_v51 = vpop.permute.xlu0 %1859  ;;  %v6889_v17 = vld [vmem:[#allocation15_spill] sm:$0xff] }
 0x15d   : > { %v1821_v20 = vmul.f32 %v1805_v13, %v1805_v13  ;;  %v3441_v49 = vadd.f32 -1.0, %v2050_v62  ;;  %v5391_v29 = vmul.f32 %v6812_v56, %v6812_v56  ;;  %vm6868_vm5 = vcmp.eq.f32.partialorder %v4831_v22, 0.0 }
 0x15e   : > { %vm6869_vm10 = vcmp.eq.f32.partialorder %v6852_v38, 0.0  ;;  %v1703_v42 = vsub.f32 0.0, %v1671_v27  ;;  %vm6872_vm14 = vcmp.lt.f32.partialorder %v4856_v23, 0.0  ;;  %v1577_v24 = vadd.f32 %v1561_v11, %v5202_v7 }
 0x15f   : > { %vm5397_vm4 = vmand %vm6869_vm10, %vm6868_vm5  ;;  %v1672_v50 = vsel %vm6872_vm14, %v1656_v63, %v1624_v34  ;;  %v2146_v47 = vmul.f32 0.5, %v3457_v61  ;;  %v1546_v28 = vmul.f32 %v5228_v25, %v5217_v5  ;;  %v2082_v30 = vmul.f32 0.5, %v3441_v49 }
 0x160   : > { %v5410_v15 = vadd.f32 1e-09, %v5382_v16  ;;  %v5414_v26 = vsel %vm1685_vm8, %v1701_v37, %v1669_v45  ;;  %vm6873_vm14 = vcmp.lt.f32.partialorder %v6857_v57, 0.0  ;;  %v1530_v7 = vadd.f32 -0.33333147, %v1514_v12 }
 0x161   : > { %v5418_v34 = vsel %vm6873_vm14, %v1702_v58, %v1670_v46  ;;  %v2178_v41 = vfloor.f32 %v2146_v47  ;;  %v1704_v54 = vsub.f32 0.0, %v1672_v50  ;;  %v1467_v4 = vadd.f32 -0.142089, %v1451_v21 }
 0x162   : > { %v1837_v44 = vmul.f32 %v1821_v20, %v1805_v13  ;;  %v2162_v10 = vfloor.f32 %v2082_v30  ;;  %vm6874_vm5 = vcmp.eq.f32.partialorder %v6856_v55, 0.0  ;;  %v6875_v25 = vmov 0 }
 0x163   : > { %vm5424_vm10 = vmand %vm1733_vm9, %vm6874_vm5  ;;  %v5430_v45 = vsel %vm1687_vm2, %v1703_v42, %v1671_v27  ;;  %v1609_v46 = vsub.f32 1.5707964, %v1577_v24  ;;  %v3940_v63 = vtrunc.f32 %v2178_v41  ;;  %4086 = vrsqrt.f32 %v5410_v15 }
 0x164   : > { %v6876_v25 = vsel %vm5424_vm10, 4294967295, %v6875_v25  ;;  %6877 = vst [vmem:[#allocation24_spill] sm:$0xff] %v5430_v45  ;;  %vm6878_vm8 = vcmp.eq.f32.partialorder %v4822_v6, 0.0  ;;  %v6879_v11 = vmov 0  ;;  %v5446_v27 = vmul.f32 %v5269_v33, %v5251_v40 }
 0x165   : > { %vm5440_vm9 = vmand %vm6878_vm8, %vm1750_vm15  ;;  %v2194_v62 = vsub.f32 %v2082_v30, %v2162_v10  ;;  %v3908_v1 = vtrunc.f32 %v2162_v10  ;;  %vm6881_vm2 = vcmp.eq.f32.partialorder %v6864_v32, 0.0  ;;  %vm6882_vm14 = vcmp.eq.f32.partialorder %v4787_v2, 0.0 }
 0x166   : > { %v6880_v11 = vsel %vm5440_vm9, 4294967295, %v6879_v11  ;;  %vm5455_vm5 = vmand %vm6882_vm14, %vm6881_vm2  ;;  %v6883_v58 = vmov 0  ;;  %v1562_v12 = vmul.f32 %v1546_v28, %v1530_v7  ;;  %v3941_v61 = vcvt.f32.s32 %v3940_v63  ;;  %v6887_v7 = vld [vmem:[#allocation31_spill] sm:$0xff] }
 0x167   : > { %v6884_v58 = vsel %vm5455_vm5, 4294967295, %v6883_v58  ;;  %v5459_v21 = vmul.f32 %v1860_v51, %v1837_v44  ;;  %vm6886_vm15 = vcmp.lt.f32.partialorder %v6867_v39, 0.0  ;;  %v1483_v42 = vmul.f32 %v1467_v4, %v5269_v33 }
 0x168   : > { %6885 = vst [vmem:[#allocation28_spill] sm:$0xff] %v6884_v58  ;;  %v5466_v49 = vsel %vm6886_vm15, %v1704_v54, %v1672_v50  ;;  %v3909_v30 = vcvt.f32.s32 %v3908_v1  ;;  %v1625_v10 = vsel %vm1593_vm12, %v1609_v46, %v1577_v24  ;;  %v2210_v13 = vsub.f32 1.0, %v2194_v62  ;;  %v6891_v24 = vld [vmem:[#allocation29_spill] sm:$0xff]  ;;  %v6923_v58 = vld [vmem:[#allocation39_spill] sm:$0xff] }
 0x169   : > { %vm2306_vm8 = vcmp.eq.s32.totalorder %v3941_v61, 0  ;;  %v3473_v28 = vadd.s32 4294967295, %v3941_v61  ;;  %v2226_v44 = vsub.f32 %v2146_v47, %v2178_v41  ;;  %vm2354_vm14 = vcmp.ge.s32.totalorder %v3941_v61, 8 }
 0x16a   : > { %v2274_v51 = vadd.s32 1, %v3909_v30  ;;  %v1788_v63 = vsub.f32 1.0, %v5382_v16  ;;  %v1578_v50 = vadd.f32 %v1562_v12, %v5217_v5  ;;  %v3489_v4 = vadd.s32 4294967288, %v3941_v61 }
 0x16b   : > { %v5475_v54 = vsel %vm2306_vm8, 7, %v3473_v28  ;;  %vm2402_vm15 = vcmp.eq.s32.totalorder %v3909_v30, 0  ;;  %v1657_v1 = vsub.f32 3.1415927, %v1625_v10  ;;  %vm2482_vm10 = vcmp.eq.s32.totalorder %v3909_v30, 1 }
 0x16c   : > { %6888 = vst [vmem:[#allocation27_spill] sm:$0xff] %v5475_v54  ;;  %vm2434_vm5 = vcmp.eq.s32.totalorder %v2274_v51, 0  ;;  %v6892_v47 = vsel %vm5002_vm6, 0.0, %v6891_v24  ;;  %v1499_v46 = vadd.f32 0.19993551, %v1483_v42  ;;  %v5483_v20 = vsel %vm2354_vm14, %v3489_v4, %v3941_v61 }
 0x16d   : > { %v2017_v41 = vmul.f32 0.2546479, %v6892_v47  ;;  %6893 = vst [vmem:[#allocation35_spill] sm:$0xff] %v5483_v20  ;;  %v2418_v16 = vsel %vm2402_vm15, %v2210_v13, 0.0  ;;  %v2450_v5 = vsel %vm2434_vm5, %v2194_v62, 0.0  ;;  %vm1752_vm8 = vcmp.eq.f32.partialorder %v6867_v39, 0.0  ;;  %v4087_v37 = vpop.eup %4086 }
 0x16e   : > { %v2242_v12 = vsub.f32 1.0, %v2226_v44  ;;  %v5486_v28 = vadd.f32 %v2450_v5, %v2418_v16  ;;  %v2498_v36 = vsel %vm2482_vm10, %v2210_v13, 0.0  ;;  %vm2514_vm2 = vcmp.eq.s32.totalorder %v2274_v51, 1  ;;  %v6899_v20 = vld [vmem:[#allocation34_spill] sm:$0xff] }
 0x16f   : > { %v2530_v56 = vsel %vm2514_vm2, %v2194_v62, 0.0  ;;  %vm2562_vm12 = vcmp.eq.s32.totalorder %v3909_v30, 2  ;;  %vm2594_vm0 = vcmp.eq.s32.totalorder %v2274_v51, 2  ;;  %vm2642_vm9 = vcmp.eq.s32.totalorder %v3909_v30, 3 }
 0x170   : > { %6894 = vst [vmem:[#allocation36_spill] sm:$0xff] %v5486_v28  ;;  %vm1736_vm6 = vcmp.eq.f32.partialorder %v4856_v23, 0.0  ;;  %v1610_v48 = vsub.f32 1.5707964, %v1578_v50  ;;  %v5489_v42 = vadd.f32 %v2530_v56, %v2498_v36  ;;  %v2578_v61 = vsel %vm2562_vm12, %v2210_v13, 0.0 }
 0x171   : > { %v2610_v4 = vsel %vm2594_vm0, %v2194_v62, 0.0  ;;  %v1515_v24 = vmul.f32 %v1499_v46, %v5269_v33  ;;  %v2658_v16 = vsel %vm2642_vm9, %v2210_v13, 0.0  ;;  %vm2674_vm5 = vcmp.eq.s32.totalorder %v2274_v51, 3  ;;  %v6902_v13 = vld [vmem:[#allocation21_spill] sm:$0xff] }
 0x172   : > { %6895 = vst [vmem:[#allocation32_spill] sm:$0xff] %v5489_v42  ;;  %v5492_v47 = vadd.f32 %v2610_v4, %v2578_v61  ;;  %v2690_v5 = vsel %vm2674_vm5, %v2194_v62, 0.0  ;;  %v5495_v35 = vmul.f32 %v2242_v12, %v5459_v21  ;;  %v5498_v28 = vmul.f32 %v2226_v44, %v5459_v21  ;;  %v6906_v61 = vld [vmem:[#allocation19_spill] sm:$0xff]  ;;  %v6908_v42 = vld [vmem:[#allocation9_spill] sm:$0xff] }
 0x173   : > { %v1053_v30 = vmul.f32 %v4087_v37, %v5410_v15  ;;  %vm1642_vm10 = vcmp.lt.f32.partialorder %v6899_v20, 0.0  ;;  %vm6900_vm2 = vcmp.lt.f32.partialorder %v6887_v7, 0.0  ;;  %v5504_v56 = vadd.f32 %v2690_v5, %v2658_v16 }
 0x174   : > { %6896 = vst [vmem:[#allocation22_spill] sm:$0xff] %v5492_v47  ;;  %6897 = vst [vmem:[#allocation31_spill] sm:$0xff] %v5495_v35  ;;  %v1673_v36 = vsel %vm6900_vm2, %v1657_v1, %v1625_v10  ;;  %vm1054_vm0 = vcmp.eq.f32.partialorder %v5410_v15, inf  ;;  %v1057_v33 = vand.u32 2147483648, %v5410_v15  ;;  %vm1689_vm9 = vcmp.lt.f32.partialorder %v6902_v13, 0.0  ;;  %v6904_v10 = vld [vmem:[#allocation16_spill] sm:$0xff] }
 0x175   : > { %6898 = vst [vmem:[#allocation15_spill] sm:$0xff] %v5498_v28  ;;  %6901 = vst [vmem:[#allocation30_spill] sm:$0xff] %v5504_v56  ;;  %v1055_v62 = vsel %vm1054_vm0, %v5410_v15, %v1053_v30  ;;  %vm1056_vm14 = vcmp.eq.f32.partialorder %v5410_v15, 0.0  ;;  %v1804_v44 = vmax.f32 %v1788_v63, 0.0  ;;  %v2097_v51 = vadd.f32 1.0, %v2017_v41 }
 0x176   : > { %vm6903_vm15 = vcmp.gt.f32.partialorder %v6889_v17, %v4892_v53  ;;  %v1058_v46 = vsel %vm1056_vm14, %v1057_v33, %v1055_v62  ;;  %v1008_v1 = vmul.f32 %v6904_v10, %v6904_v10  ;;  %v6907_v4 = vsel %vm5166_vm11, 0.0, %v6906_v61  ;;  %vm5529_vm11 = vmand %vm1736_vm6, %vm1752_vm8 }
 0x177   : > { %v1626_v37 = vsel %vm6903_vm15, %v1610_v48, %v1578_v50  ;;  %v2021_v16 = vmul.f32 0.2546479, %v6907_v4  ;;  %v1531_v5 = vadd.f32 -0.33333147, %v1515_v24  ;;  %v1985_v56 = vmul.f32 2.0, %v1058_v46  ;;  %v6909_v50 = vld [vmem:[#allocation11_spill] sm:$0xff]  ;;  %v1855_v4 = vpop.permute.xlu1 %1854 }
 0x178   : > { %v2113_v30 = vmul.f32 10.0, %v2097_v51  ;;  %v990_v15 = vmul.f32 %v6908_v42, %v6908_v42  ;;  %v1820_v63 = vmul.f32 %v1804_v44, %v1804_v44  ;;  %v1024_v41 = vadd.f32 %v1008_v1, %v5391_v29  ;;  %v3640_v24 = vpop.f32.mrb[0].mxu1 }
 0x179   : > { %v2101_v53 = vadd.f32 1.0, %v2021_v16  ;;  %v1006_v17 = vmul.f32 %v6909_v50, %v6909_v50  ;;  %v1705_v48 = vsub.f32 0.0, %v1673_v36  ;;  %v1658_v33 = vsub.f32 3.1415927, %v1626_v37  ;;  %724 = vst [vmem:[#allocation2 + $0x88] sm:$0xff] %v3640_v24 }
 0x17a   : > { %v3424_v62 = vadd.f32 -1.0, %v1985_v56  ;;  %v3456_v10 = vadd.f32 -1.0, %v2113_v30  ;;  %v5533_v42 = vadd.f32 1e-09, %v1024_v41  ;;  %v1792_v51 = vsub.f32 1.0, %v1024_v41  ;;  %v6914_v41 = vld [vmem:[#allocation14_spill] sm:$0xff] }
 0x17b   : > { %v2117_v29 = vmul.f32 10.0, %v2101_v53  ;;  %v1022_v46 = vadd.f32 %v1006_v17, %v990_v15  ;;  %vm6912_vm12 = vcmask 64512   ;;  %v1563_v16 = vmul.f32 %v5446_v27, %v1531_v5 }
 0x17c   : > { %v5540_v56 = vsel %vm6912_vm12, %v5459_v21, 0.0  ;;  %v2033_v12 = vadd.f32 1.0, %v3424_v62  ;;  %v2145_v61 = vmul.f32 0.5, %v3456_v10  ;;  %v1836_v30 = vmul.f32 %v1820_v63, %v1804_v44 }
 0x17d   : > { %4088 = vrsqrt.f32 %v5533_v42  ;;  %v6915_v15 = vsel %vm5014_vm7, 0.0, %v6914_v41  ;;  %v5550_v17 = vsel %vm1642_vm10, %v1658_v33, %v1626_v37  ;;  %v1808_v47 = vmax.f32 %v1792_v51, 0.0 }
 0x17e   : > { %v2019_v53 = vmul.f32 0.2546479, %v6915_v15  ;;  %v2049_v1 = vmul.f32 4.0, %v2033_v12  ;;  %v2177_v21 = vfloor.f32 %v2145_v61  ;;  %v5554_v62 = vsel %vm1689_vm9, %v1705_v48, %v1673_v36 }
 0x17f   : > { %v5556_v27 = vmul.f32 %v1855_v4, %v1836_v30  ;;  %v3460_v44 = vadd.f32 -1.0, %v2117_v29  ;;  %v5558_v5 = vadd.f32 1e-09, %v1022_v46  ;;  %v1824_v41 = vmul.f32 %v1808_v47, %v1808_v47 }
 0x180   : > { %v3440_v63 = vadd.f32 -1.0, %v2049_v1  ;;  %v2225_v10 = vsub.f32 %v2145_v61, %v2177_v21  ;;  %v3938_v50 = vtrunc.f32 %v2177_v21  ;;  %v5562_v37 = vadd.f32 %v1563_v16, %v5251_v40  ;;  %v1875_v40 = vpop.permute.xlu0 %1874 }
 0x181   : > { %v2149_v33 = vmul.f32 0.5, %v3460_v44  ;;  %v5564_v51 = vadd.f32 1.0, %v2019_v53  ;;  %v1840_v29 = vmul.f32 %v1824_v41, %v1808_v47  ;;  %4090 = vrsqrt.f32 %v5558_v5 }
 0x182   : > { %v2081_v12 = vmul.f32 0.5, %v3440_v63  ;;  %v2241_v36 = vsub.f32 1.0, %v2225_v10  ;;  %v3939_v48 = vcvt.f32.s32 %v3938_v50  ;;  %v5567_v4 = vmul.f32 %v2225_v10, %v5556_v27 }
 0x183   : > { %v2181_v30 = vfloor.f32 %v2149_v33  ;;  %v1790_v1 = vsub.f32 1.0, %v1022_v46  ;;  %v1085_v47 = vand.u32 2147483648, %v5533_v42 }
 0x184   : > { %6916 = vst [vmem:[#allocation29_spill] sm:$0xff] %v5567_v4  ;;  %v2161_v61 = vfloor.f32 %v2081_v12  ;;  %vm2305_vm7 = vcmp.eq.s32.totalorder %v3939_v48, 0  ;;  %v3472_v21 = vadd.s32 4294967295, %v3939_v48  ;;  %vm2353_vm8 = vcmp.ge.s32.totalorder %v3939_v48, 8 }
 0x185   : > { %v3488_v16 = vadd.s32 4294967288, %v3939_v48  ;;  %v5571_v53 = vmul.f32 %v2241_v36, %v5556_v27  ;;  %v2229_v44 = vsub.f32 %v2149_v33, %v2181_v30  ;;  %v3946_v63 = vtrunc.f32 %v2181_v30 }
 0x186   : > { %v2193_v50 = vsub.f32 %v2081_v12, %v2161_v61  ;;  %v3906_v15 = vtrunc.f32 %v2161_v61  ;;  %v5573_v10 = vsel %vm2305_vm7, 7, %v3472_v21  ;;  %v5580_v4 = vmul.f32 %v1875_v40, %v1840_v29 }
 0x187   : > { %6917 = vst [vmem:[#allocation34_spill] sm:$0xff] %v5571_v53  ;;  %6918 = vst [vmem:[#allocation21_spill] sm:$0xff] %v5573_v10  ;;  %v4089_v46 = vpop.eup %4088  ;;  %v5577_v41 = vsel %vm2353_vm8, %v3488_v16, %v3939_v48  ;;  %v3947_v28 = vcvt.f32.s32 %v3946_v63  ;;  %v5582_v36 = vmax.f32 %v1790_v1, 0.0  ;;  %v2245_v61 = vsub.f32 1.0, %v2229_v44 }
 0x188   : > { %6919 = vst [vmem:[#allocation16_spill] sm:$0xff] %v5577_v41  ;;  %v2209_v33 = vsub.f32 1.0, %v2193_v50  ;;  %v3907_v30 = vcvt.f32.s32 %v3906_v15  ;;  %v1081_v12 = vmul.f32 %v4089_v46, %v5533_v42  ;;  %vm1070_vm7 = vcmp.eq.f32.partialorder %v5558_v5, 0.0 }
 0x189   : > { %v3476_v21 = vadd.s32 4294967295, %v3947_v28  ;;  %vm2357_vm0 = vcmp.ge.s32.totalorder %v3947_v28, 8  ;;  %v3492_v35 = vadd.s32 4294967288, %v3947_v28  ;;  %vm1737_vm8 = vcmp.eq.f32.partialorder %v6887_v7, 0.0 }
 0x18a   : > { %v2273_v48 = vadd.s32 1, %v3907_v30  ;;  %vm2401_vm14 = vcmp.eq.s32.totalorder %v3907_v30, 0  ;;  %vm2481_vm15 = vcmp.eq.s32.totalorder %v3907_v30, 1  ;;  %vm2561_vm12 = vcmp.eq.s32.totalorder %v3907_v30, 2 }
 0x18b   : > { %v2417_v15 = vsel %vm2401_vm14, %v2209_v33, 0.0  ;;  %v2497_v29 = vsel %vm2481_vm15, %v2209_v33, 0.0  ;;  %v2577_v1 = vsel %vm2561_vm12, %v2209_v33, 0.0  ;;  %vm2641_vm5 = vcmp.eq.s32.totalorder %v3907_v30, 3  ;;  %v4091_v16 = vpop.eup %4090  ;;  %v6924_v30 = vld [vmem:[#allocation26_spill] sm:$0xff] }
 0x18c   : > { %vm2433_vm6 = vcmp.eq.s32.totalorder %v2273_v48, 0  ;;  %vm2513_vm10 = vcmp.eq.s32.totalorder %v2273_v48, 1  ;;  %vm2593_vm2 = vcmp.eq.s32.totalorder %v2273_v48, 2  ;;  %v2657_v40 = vsel %vm2641_vm5, %v2209_v33, 0.0 }
 0x18d   : > { %v2449_v63 = vsel %vm2433_vm6, %v2193_v50, 0.0  ;;  %v2529_v46 = vsel %vm2513_vm10, %v2193_v50, 0.0  ;;  %v2609_v53 = vsel %vm2593_vm2, %v2193_v50, 0.0  ;;  %vm2673_vm9 = vcmp.eq.s32.totalorder %v2273_v48, 3 }
 0x18e   : > { %v5589_v41 = vadd.f32 %v2449_v63, %v2417_v15  ;;  %v5591_v54 = vadd.f32 %v2529_v46, %v2497_v29  ;;  %v5593_v10 = vadd.f32 %v2609_v53, %v2577_v1  ;;  %v2689_v45 = vsel %vm2673_vm9, %v2193_v50, 0.0 }
 0x18f   : > { %vm1690_vm14 = vcmp.lt.f32.partialorder %v6923_v58, 0.0  ;;  %vm1595_vm15 = vcmp.gt.f32.partialorder %v6924_v30, %v4889_v19  ;;  %v5598_v32 = vadd.f32 %v2689_v45, %v2657_v40  ;;  %vm6926_vm6 = vcmp.eq.f32.partialorder %v5533_v42, inf }
 0x190   : > { %6920 = vst [vmem:[#allocation40_spill] sm:$0xff] %v5589_v41  ;;  %6921 = vst [vmem:[#allocation19_spill] sm:$0xff] %v5591_v54  ;;  %v1083_v33 = vsel %vm6926_vm6, %v5533_v42, %v1081_v12  ;;  %vm6927_vm5 = vcmp.eq.s32.totalorder %v3947_v28, 0  ;;  %v5607_v15 = vsel %vm2357_vm0, %v3492_v35, %v3947_v28  ;;  %vm6930_vm10 = vcmp.eq.f32.partialorder %v5533_v42, 0.0 }
 0x191   : > { %6922 = vst [vmem:[#allocation9_spill] sm:$0xff] %v5593_v10  ;;  %6925 = vst [vmem:[#allocation11_spill] sm:$0xff] %v5598_v32  ;;  %v5604_v48 = vsel %vm6927_vm5, 7, %v3476_v21  ;;  %v1086_v53 = vsel %vm6930_vm10, %v1085_v47, %v1083_v33  ;;  %v5612_v50 = vmul.f32 %v2245_v61, %v5580_v4  ;;  %v5615_v29 = vmul.f32 %v2229_v44, %v5580_v4 }
 0x192   : > { %6928 = vst [vmem:[#allocation37_spill] sm:$0xff] %v5604_v48  ;;  %6929 = vst [vmem:[#allocation14_spill] sm:$0xff] %v5607_v15  ;;  %v1067_v45 = vmul.f32 %v4091_v16, %v5558_v5  ;;  %v1989_v1 = vmul.f32 2.0, %v1086_v53  ;;  %v1071_v12 = vand.u32 2147483648, %v5558_v5  ;;  %v1822_v21 = vmul.f32 %v5582_v36, %v5582_v36  ;;  %v6946_v15 = vld [vmem:[#allocation38_spill] sm:$0xff] }
 0x193   : > { %6931 = vst [vmem:[#allocation39_spill] sm:$0xff] %v5612_v50  ;;  %6932 = vst [vmem:[#allocation26_spill] sm:$0xff] %v5615_v29  ;;  %v2115_v35 = vmul.f32 10.0, %v5564_v51  ;;  %vm6933_vm2 = vcmp.eq.f32.partialorder %v5558_v5, inf  ;;  %v994_v42 = vmul.f32 %v6833_v59, %v6833_v59  ;;  %v1010_v44 = vmul.f32 %v6841_v14, %v6841_v14 }
 0x194   : > { %v1069_v28 = vsel %vm6933_vm2, %v5558_v5, %v1067_v45  ;;  %v6934_v47 = vsel %vm5346_vm3, 0.0, %v5193_v43  ;;  %v1611_v40 = vsub.f32 1.5707964, %v5562_v37  ;;  %v3428_v16 = vadd.f32 -1.0, %v1989_v1  ;;  %v6938_v43 = vld [vmem:[#allocation12_spill] sm:$0xff]  ;;  %v1865_v1 = vpop.permute.xlu1 %1864 }
 0x195   : > { %v2023_v61 = vmul.f32 0.2546479, %v6934_v47  ;;  %v1072_v51 = vsel %vm1070_vm7, %v1071_v12, %v1069_v28  ;;  %v3458_v63 = vadd.f32 -1.0, %v2115_v35  ;;  %vm6935_vm0 = vcmp.eq.f32.partialorder %v6902_v13, 0.0  ;;  %v6939_v12 = vld [vmem:[#allocation10_spill] sm:$0xff] }
 0x196   : > { %vm5640_vm9 = vmand %vm1737_vm8, %vm6935_vm0  ;;  %v1987_v14 = vmul.f32 2.0, %v1072_v51  ;;  %v1026_v18 = vadd.f32 %v1010_v44, %v994_v42  ;;  %v1007_v33 = vmul.f32 %v6938_v43, %v6938_v43  ;;  %v2037_v53 = vadd.f32 1.0, %v3428_v16 }
 0x197   : > { %v2103_v46 = vadd.f32 1.0, %v2023_v61  ;;  %v2147_v45 = vmul.f32 0.5, %v3458_v63  ;;  %v991_v35 = vmul.f32 %v6939_v12, %v6939_v12  ;;  %v1838_v28 = vmul.f32 %v1822_v21, %v5582_v36 }
 0x198   : > { %v3426_v47 = vadd.f32 -1.0, %v1987_v14  ;;  %v5652_v32 = vadd.f32 1e-09, %v1026_v18  ;;  %v1794_v42 = vsub.f32 1.0, %v1026_v18  ;;  %v2053_v44 = vmul.f32 4.0, %v2037_v53 }
 0x199   : > { %v2179_v61 = vfloor.f32 %v2147_v45  ;;  %v2119_v51 = vmul.f32 10.0, %v2103_v46  ;;  %v5654_v43 = vadd.f32 %v1007_v33, %v991_v35  ;;  %v6940_v5 = vsub.f32 0.0, %v5550_v17 }
 0x19a   : > { %v5667_v36 = vsel %vm1595_vm15, %v1611_v40, %v5562_v37  ;;  %v2035_v21 = vadd.f32 1.0, %v3426_v47  ;;  %v5669_v63 = vmul.f32 %v1865_v1, %v1838_v28  ;;  %v3444_v14 = vadd.f32 -1.0, %v2053_v44 }
 0x19b   : > { %v5661_v16 = vsel %vm1690_vm14, %v6940_v5, %v5550_v17  ;;  %v2227_v18 = vsub.f32 %v2147_v45, %v2179_v61  ;;  %v3942_v46 = vtrunc.f32 %v2179_v61  ;;  %4092 = vrsqrt.f32 %v5652_v32  ;;  %v1885_v61 = vpop.permute.xlu0 %1884 }
 0x19c   : > { %v2051_v33 = vmul.f32 4.0, %v2035_v21  ;;  %v1810_v53 = vmax.f32 %v1794_v42, 0.0  ;;  %v3462_v12 = vadd.f32 -1.0, %v2119_v51  ;;  %v5673_v17 = vadd.f32 1e-09, %v5654_v43 }
 0x19d   : > { %v2085_v5 = vmul.f32 0.5, %v3444_v14  ;;  %v2243_v35 = vsub.f32 1.0, %v2227_v18  ;;  %v3943_v54 = vcvt.f32.s32 %v3942_v46  ;;  %v5676_v19 = vmul.f32 %v2227_v18, %v5669_v63 }
 0x19e   : > { %v3442_v37 = vadd.f32 -1.0, %v2051_v33  ;;  %v1826_v30 = vmul.f32 %v1810_v53, %v1810_v53  ;;  %v2151_v40 = vmul.f32 0.5, %v3462_v12  ;;  %4094 = vrsqrt.f32 %v5673_v17 }
 0x19f   : > { %6941 = vst [vmem:[#allocation12_spill] sm:$0xff] %v5676_v19  ;;  %v2165_v45 = vfloor.f32 %v2085_v5  ;;  %vm2307_vm3 = vcmp.eq.s32.totalorder %v3943_v54, 0  ;;  %v3474_v1 = vadd.s32 4294967295, %v3943_v54  ;;  %vm2355_vm12 = vcmp.ge.s32.totalorder %v3943_v54, 8 }
 0x1a0   : > { %v2083_v28 = vmul.f32 0.5, %v3442_v37  ;;  %v3490_v47 = vadd.s32 4294967288, %v3943_v54  ;;  %v5680_v42 = vmul.f32 %v2243_v35, %v5669_v63  ;;  %v1842_v44 = vmul.f32 %v1826_v30, %v1810_v53 }
 0x1a1   : > { %v2197_v51 = vsub.f32 %v2085_v5, %v2165_v45  ;;  %v3914_v21 = vtrunc.f32 %v2165_v45  ;;  %v5682_v14 = vsel %vm2307_vm3, 7, %v3474_v1  ;;  %v2183_v18 = vfloor.f32 %v2151_v40 }
 0x1a2   : > { %6942 = vst [vmem:[#allocation10_spill] sm:$0xff] %v5680_v42  ;;  %6943 = vst [vmem:[#allocation42_spill] sm:$0xff] %v5682_v14  ;;  %v2163_v33 = vfloor.f32 %v2083_v28  ;;  %v5685_v12 = vsel %vm2355_vm12, %v3490_v47, %v3943_v54  ;;  %v6947_v37 = vsel %vm5069_vm13, 0.0, %v6946_v15  ;;  %v5694_v5 = vmul.f32 %v1885_v61, %v1842_v44 }
 0x1a3   : > { %6944 = vst [vmem:[#allocation43_spill] sm:$0xff] %v5685_v12  ;;  %v5691_v50 = vmul.f32 0.2546479, %v6947_v37  ;;  %v2213_v35 = vsub.f32 1.0, %v2197_v51  ;;  %v3915_v48 = vcvt.f32.s32 %v3914_v21  ;;  %v5696_v1 = vsub.f32 %v2151_v40, %v2183_v18 }
 0x1a4   : > { %v2195_v30 = vsub.f32 %v2083_v28, %v2163_v33  ;;  %v3910_v45 = vtrunc.f32 %v2163_v33  ;;  %v3950_v46 = vtrunc.f32 %v2183_v18  ;;  %vm1096_vm2 = vcmp.eq.f32.partialorder %v5652_v32, inf }
 0x1a5   : > { %v4093_v19 = vpop.eup %4092  ;;  %v2277_v54 = vadd.s32 1, %v3915_v48  ;;  %vm2405_vm7 = vcmp.eq.s32.totalorder %v3915_v48, 0  ;;  %vm2485_vm8 = vcmp.eq.s32.totalorder %v3915_v48, 1  ;;  %vm2565_vm14 = vcmp.eq.s32.totalorder %v3915_v48, 2 }
 0x1a6   : > { %v2421_v29 = vsel %vm2405_vm7, %v2213_v35, 0.0  ;;  %v2501_v15 = vsel %vm2485_vm8, %v2213_v35, 0.0  ;;  %v2581_v47 = vsel %vm2565_vm14, %v2213_v35, 0.0  ;;  %vm2645_vm13 = vcmp.eq.s32.totalorder %v3915_v48, 3 }
 0x1a7   : > { %vm2437_vm15 = vcmp.eq.s32.totalorder %v2277_v54, 0  ;;  %vm2517_vm6 = vcmp.eq.s32.totalorder %v2277_v54, 1  ;;  %vm2597_vm5 = vcmp.eq.s32.totalorder %v2277_v54, 2  ;;  %v2661_v21 = vsel %vm2645_vm13, %v2213_v35, 0.0 }
 0x1a8   : > { %v4095_v44 = vpop.eup %4094  ;;  %v2453_v61 = vsel %vm2437_vm15, %v2197_v51, 0.0  ;;  %v2533_v28 = vsel %vm2517_vm6, %v2197_v51, 0.0  ;;  %v2613_v33 = vsel %vm2597_vm5, %v2197_v51, 0.0  ;;  %vm2677_vm10 = vcmp.eq.s32.totalorder %v2277_v54, 3 }
 0x1a9   : > { %v5699_v40 = vadd.f32 %v2453_v61, %v2421_v29  ;;  %v5701_v18 = vadd.f32 %v2533_v28, %v2501_v15  ;;  %v5703_v37 = vadd.f32 %v2613_v33, %v2581_v47  ;;  %v2693_v53 = vsel %vm2677_vm10, %v2197_v51, 0.0 }
 0x1aa   : > { %vm1098_vm0 = vcmp.eq.f32.partialorder %v5652_v32, 0.0  ;;  %v5706_v48 = vadd.f32 %v2693_v53, %v2661_v21  ;;  %v2211_v10 = vsub.f32 1.0, %v2195_v30  ;;  %v3911_v35 = vcvt.f32.s32 %v3910_v45 }
 0x1ab   : > { %6948 = vst [vmem:[#allocation23_spill] sm:$0xff] %v5699_v40  ;;  %6949 = vst [vmem:[#allocation38_spill] sm:$0xff] %v5701_v18  ;;  %v1095_v41 = vmul.f32 %v4093_v19, %v5652_v32  ;;  %vm1075_vm3 = vcmp.eq.f32.partialorder %v5673_v17, inf  ;;  %v2247_v54 = vsub.f32 1.0, %v5696_v1  ;;  %v3951_v12 = vcvt.f32.s32 %v3950_v46 }
 0x1ac   : > { %6950 = vst [vmem:[#allocation44_spill] sm:$0xff] %v5703_v37  ;;  %6951 = vst [vmem:[#allocation45_spill] sm:$0xff] %v5706_v48  ;;  %v5713_v29 = vmul.f32 %v5696_v1, %v5694_v5  ;;  %v1074_v15 = vmul.f32 %v4095_v44, %v5673_v17  ;;  %v2275_v51 = vadd.s32 1, %v3911_v35  ;;  %vm2403_vm12 = vcmp.eq.s32.totalorder %v3911_v35, 0  ;;  %v6956_v48 = vld [vmem:[#allocation33_spill] sm:$0xff] }
 0x1ad   : > { %vm2483_vm7 = vcmp.eq.s32.totalorder %v3911_v35, 1  ;;  %vm2563_vm8 = vcmp.eq.s32.totalorder %v3911_v35, 2  ;;  %vm1077_vm14 = vcmp.eq.f32.partialorder %v5673_v17, 0.0  ;;  %v2419_v53 = vsel %vm2403_vm12, %v2211_v10, 0.0 }
 0x1ae   : > { %6952 = vst [vmem:[#allocation46_spill] sm:$0xff] %v5713_v29  ;;  %v2499_v45 = vsel %vm2483_vm7, %v2211_v10, 0.0  ;;  %v2579_v19 = vsel %vm2563_vm8, %v2211_v10, 0.0  ;;  %vm2643_vm13 = vcmp.eq.s32.totalorder %v3911_v35, 3  ;;  %vm2435_vm15 = vcmp.eq.s32.totalorder %v2275_v51, 0 }
 0x1af   : > { %vm2515_vm6 = vcmp.eq.s32.totalorder %v2275_v51, 1  ;;  %vm2595_vm5 = vcmp.eq.s32.totalorder %v2275_v51, 2  ;;  %v2659_v46 = vsel %vm2643_vm13, %v2211_v10, 0.0  ;;  %v2451_v47 = vsel %vm2435_vm15, %v2195_v30, 0.0 }
 0x1b0   : > { %v2531_v21 = vsel %vm2515_vm6, %v2195_v30, 0.0  ;;  %v2611_v1 = vsel %vm2595_vm5, %v2195_v30, 0.0  ;;  %vm2675_vm10 = vcmp.eq.s32.totalorder %v2275_v51, 3  ;;  %v5717_v61 = vadd.f32 %v2451_v47, %v2419_v53 }
 0x1b1   : > { %v5719_v44 = vadd.f32 %v2531_v21, %v2499_v45  ;;  %v5721_v28 = vadd.f32 %v2611_v1, %v2579_v19  ;;  %v2691_v33 = vsel %vm2675_vm10, %v2195_v30, 0.0  ;;  %vm1643_vm12 = vcmp.lt.f32.partialorder %v6956_v48, 0.0 }
 0x1b2   : > { %6953 = vst [vmem:[#allocation47_spill] sm:$0xff] %v5717_v61  ;;  %v5724_v18 = vadd.f32 %v2691_v33, %v2659_v46  ;;  %v1097_v35 = vsel %vm1096_vm2, %v5652_v32, %v1095_v41  ;;  %vm2311_vm7 = vcmp.eq.s32.totalorder %v3951_v12, 0  ;;  %v3478_v10 = vadd.s32 4294967295, %v3951_v12 }
 0x1b3   : > { %6954 = vst [vmem:[#allocation48_spill] sm:$0xff] %v5719_v44  ;;  %6955 = vst [vmem:[#allocation49_spill] sm:$0xff] %v5721_v28  ;;  %v6958_v29 = vand.u32 2147483648, %v5652_v32  ;;  %vm2359_vm8 = vcmp.ge.s32.totalorder %v3951_v12, 8  ;;  %v3494_v53 = vadd.s32 4294967288, %v3951_v12  ;;  %v5734_v45 = vmul.f32 %v2247_v54, %v5694_v5 }
 0x1b4   : > { %6957 = vst [vmem:[#allocation33_spill] sm:$0xff] %v5724_v18  ;;  %v5736_v19 = vsel %vm2311_vm7, 7, %v3478_v10  ;;  %v1076_v46 = vsel %vm1075_vm3, %v5673_v17, %v1074_v15  ;;  %v1078_v41 = vand.u32 2147483648, %v5673_v17  ;;  %v1791_v21 = vsub.f32 1.0, %v5654_v43  ;;  %v6965_v18 = vld [vmem:[#allocation13_spill] sm:$0xff] }
 0x1b5   : > { %v1100_v51 = vsel %vm1098_vm0, %v6958_v29, %v1097_v35  ;;  %6959 = vst [vmem:[#allocation50_spill] sm:$0xff] %v5734_v45  ;;  %6960 = vst [vmem:[#allocation51_spill] sm:$0xff] %v5736_v19  ;;  %v5742_v47 = vsel %vm2359_vm8, %v3494_v53, %v3951_v12  ;;  %v2100_v32 = vadd.f32 1.0, %v5691_v50  ;;  %v996_v29 = vmul.f32 %v6852_v38, %v6852_v38 }
 0x1b6   : > { %v1991_v30 = vmul.f32 2.0, %v1100_v51  ;;  %6961 = vst [vmem:[#allocation52_spill] sm:$0xff] %v5742_v47  ;;  %v1079_v1 = vsel %vm1077_vm14, %v1078_v41, %v1076_v46  ;;  %v1012_v33 = vmul.f32 %v4831_v22, %v4831_v22  ;;  %v6962_v15 = vsel %vm5397_vm4, 0.0, %v5376_v8 }
 0x1b7   : > { %v2025_v12 = vmul.f32 0.2546479, %v6962_v15  ;;  %vm6963_vm2 = vcmask 64512   ;;  %v1807_v35 = vmax.f32 %v1791_v21, 0.0  ;;  %v1988_v50 = vmul.f32 2.0, %v1079_v1 }
 0x1b8   : > { %v3430_v54 = vadd.f32 -1.0, %v1991_v30  ;;  %v1948_v43 = vsel %vm6963_vm2, %v5556_v27, 0.0  ;;  %v2116_v10 = vmul.f32 10.0, %v2100_v32  ;;  %v1028_v38 = vadd.f32 %v1012_v33, %v996_v29  ;;  %v6964_v30 = vld [vmem:[#allocation18_spill] sm:$0xff]  ;;  %v1870_v33 = vpop.permute.xlu1 %1869  ;;  %vm6967_vm4 = vmmov %vm6963_vm2 }
 0x1b9   : > { %v2105_v53 = vadd.f32 1.0, %v2025_v12  ;;  %v1009_v17 = vmul.f32 %v6964_v30, %v6964_v30  ;;  %v1823_v46 = vmul.f32 %v1807_v35, %v1807_v35  ;;  %v3427_v41 = vadd.f32 -1.0, %v1988_v50 }
 0x1ba   : > { %v2039_v51 = vadd.f32 1.0, %v3430_v54  ;;  %v3459_v22 = vadd.f32 -1.0, %v2116_v10  ;;  %v993_v60 = vmul.f32 %v6965_v18, %v6965_v18  ;;  %v5762_v15 = vadd.f32 1e-09, %v1028_v38 }
 0x1bb   : > { %v1796_v44 = vsub.f32 1.0, %v1028_v38  ;;  %v2121_v27 = vmul.f32 10.0, %v2105_v53  ;;  %v6966_v21 = vsub.f32 3.1415927, %v5667_v36  ;;  %v5772_v29 = vadd.f32 %v5540_v56, %v1948_v43  ;;  %v6969_v53 = vld [vmem:[#allocation20_spill] sm:$0xff] }
 0x1bc   : > { %v2055_v8 = vmul.f32 4.0, %v2039_v51  ;;  %v2036_v54 = vadd.f32 1.0, %v3427_v41  ;;  %v2148_v1 = vmul.f32 0.5, %v3459_v22  ;;  %v5776_v18 = vsel %vm6967_vm4, %v5669_v63, 0.0 }
 0x1bd   : > { %v5769_v32 = vsel %vm1643_vm12, %v6966_v21, %v5667_v36  ;;  %v1839_v50 = vmul.f32 %v1823_v46, %v1807_v35  ;;  %v5778_v10 = vadd.f32 %v1009_v17, %v993_v60  ;;  %4096 = vrsqrt.f32 %v5762_v15 }
 0x1be   : > { %v3446_v12 = vadd.f32 -1.0, %v2055_v8  ;;  %v2052_v51 = vmul.f32 4.0, %v2036_v54  ;;  %v2180_v38 = vfloor.f32 %v2148_v1  ;;  %v6970_v56 = vsel %vm5178_vm1, 0.0, %v6969_v53 }
 0x1bf   : > { %v5785_v43 = vmul.f32 0.2546479, %v6970_v56  ;;  %v5787_v41 = vmul.f32 %v1870_v33, %v1839_v50  ;;  %v1812_v22 = vmax.f32 %v1796_v44, 0.0  ;;  %v3464_v63 = vadd.f32 -1.0, %v2121_v27 }
 0x1c0   : > { %v2087_v30 = vmul.f32 0.5, %v3446_v12  ;;  %v3443_v21 = vadd.f32 -1.0, %v2052_v51  ;;  %v2228_v8 = vsub.f32 %v2148_v1, %v2180_v38  ;;  %v3944_v35 = vtrunc.f32 %v2180_v38 }
 0x1c1   : > { %v1828_v60 = vmul.f32 %v1812_v22, %v1812_v22  ;;  %v2153_v54 = vmul.f32 0.5, %v3464_v63  ;;  %v5791_v47 = vadd.f32 1e-09, %v5778_v10  ;;  %vm1754_vm12 = vcmp.eq.f32.partialorder %v6923_v58, 0.0 }
 0x1c2   : > { %v2167_v46 = vfloor.f32 %v2087_v30  ;;  %v2084_v36 = vmul.f32 0.5, %v3443_v21  ;;  %v2244_v53 = vsub.f32 1.0, %v2228_v8  ;;  %v3945_v56 = vcvt.f32.s32 %v3944_v35 }
 0x1c3   : > { %v5794_v12 = vmul.f32 %v2228_v8, %v5787_v41  ;;  %v1844_v27 = vmul.f32 %v1828_v60, %v1812_v22  ;;  %v2185_v50 = vfloor.f32 %v2153_v54  ;;  %vm1110_vm8 = vcmp.eq.f32.partialorder %v5762_v15, inf }
 0x1c4   : > { %v2199_v33 = vsub.f32 %v2087_v30, %v2167_v46  ;;  %v3918_v44 = vtrunc.f32 %v2167_v46  ;;  %v2164_v1 = vfloor.f32 %v2084_v36  ;;  %vm2308_vm1 = vcmp.eq.s32.totalorder %v3945_v56, 0 }
 0x1c5   : > { %6971 = vst [vmem:[#allocation18_spill] sm:$0xff] %v5794_v12  ;;  %v3475_v51 = vadd.s32 4294967295, %v3945_v56  ;;  %vm2356_vm0 = vcmp.ge.s32.totalorder %v3945_v56, 8  ;;  %v3491_v63 = vadd.s32 4294967288, %v3945_v56  ;;  %v5797_v37 = vmul.f32 %v2244_v53, %v5787_v41 }
 0x1c6   : > { %v2215_v38 = vsub.f32 1.0, %v2199_v33  ;;  %v3919_v17 = vcvt.f32.s32 %v3918_v44  ;;  %v2196_v21 = vsub.f32 %v2084_v36, %v2164_v1  ;;  %v3912_v40 = vtrunc.f32 %v2164_v1 }
 0x1c7   : > { %6972 = vst [vmem:[#allocation13_spill] sm:$0xff] %v5797_v37  ;;  %v5799_v35 = vsel %vm2308_vm1, 7, %v3475_v51  ;;  %v2233_v8 = vsub.f32 %v2153_v54, %v2185_v50  ;;  %v4097_v30 = vpop.eup %4096  ;;  %v1895_v54 = vpop.permute.xlu0 %1894  ;;  %vm1738_vm2 = vcmp.eq.f32.partialorder %v6899_v20, 0.0  ;;  %v5813_v37 = vsel %vm2356_vm0, %v3491_v63, %v3945_v56 }
 0x1c8   : > { %6973 = vst [vmem:[#allocation41_spill] sm:$0xff] %v5799_v35  ;;  %v2279_v45 = vadd.s32 1, %v3919_v17  ;;  %vm2407_vm3 = vcmp.eq.s32.totalorder %v3919_v17, 0  ;;  %vm2487_vm14 = vcmp.eq.s32.totalorder %v3919_v17, 1  ;;  %vm2567_vm13 = vcmp.eq.s32.totalorder %v3919_v17, 2  ;;  %6977 = vst [vmem:[#allocation55_spill] sm:$0xff] %v5813_v37 }
 0x1c9   : > { %v2423_v22 = vsel %vm2407_vm3, %v2215_v38, 0.0  ;;  %v2503_v46 = vsel %vm2487_vm14, %v2215_v38, 0.0  ;;  %v2583_v60 = vsel %vm2567_vm13, %v2215_v38, 0.0  ;;  %vm2647_vm15 = vcmp.eq.s32.totalorder %v3919_v17, 3 }
 0x1ca   : > { %vm2439_vm6 = vcmp.eq.s32.totalorder %v2279_v45, 0  ;;  %vm2519_vm5 = vcmp.eq.s32.totalorder %v2279_v45, 1  ;;  %vm2599_vm10 = vcmp.eq.s32.totalorder %v2279_v45, 2  ;;  %v2663_v44 = vsel %vm2647_vm15, %v2215_v38, 0.0 }
 0x1cb   : > { %v2455_v36 = vsel %vm2439_vm6, %v2199_v33, 0.0  ;;  %v2535_v53 = vsel %vm2519_vm5, %v2199_v33, 0.0  ;;  %v2615_v1 = vsel %vm2599_vm10, %v2199_v33, 0.0  ;;  %vm2679_vm7 = vcmp.eq.s32.totalorder %v2279_v45, 3  ;;  %vm5843_vm10 = vmand %vm1738_vm2, %vm1754_vm12 }
 0x1cc   : > { %v5803_v51 = vadd.f32 %v2455_v36, %v2423_v22  ;;  %v5805_v19 = vadd.f32 %v2535_v53, %v2503_v46  ;;  %v5807_v28 = vadd.f32 %v2615_v1, %v2583_v60  ;;  %v2695_v17 = vsel %vm2679_vm7, %v2199_v33, 0.0 }
 0x1cd   : > { %v5810_v61 = vadd.f32 %v2695_v17, %v2663_v44  ;;  %v2212_v38 = vsub.f32 1.0, %v2196_v21  ;;  %v3913_v12 = vcvt.f32.s32 %v3912_v40  ;;  %v1109_v45 = vmul.f32 %v4097_v30, %v5762_v15 }
 0x1ce   : > { %6974 = vst [vmem:[#allocation20_spill] sm:$0xff] %v5805_v19  ;;  %6975 = vst [vmem:[#allocation53_spill] sm:$0xff] %v5807_v28  ;;  %v2249_v42 = vsub.f32 1.0, %v2233_v8  ;;  %v3954_v35 = vtrunc.f32 %v2185_v50  ;;  %v5816_v22 = vmul.f32 %v1895_v54, %v1844_v27  ;;  %vm1112_vm5 = vcmp.eq.f32.partialorder %v5762_v15, 0.0 }
 0x1cf   : > { %6976 = vst [vmem:[#allocation54_spill] sm:$0xff] %v5810_v61  ;;  %v2276_v46 = vadd.s32 1, %v3913_v12  ;;  %vm2404_vm4 = vcmp.eq.s32.totalorder %v3913_v12, 0  ;;  %vm2484_vm1 = vcmp.eq.s32.totalorder %v3913_v12, 1  ;;  %vm2564_vm3 = vcmp.eq.s32.totalorder %v3913_v12, 2 }
 0x1d0   : > { %v2420_v33 = vsel %vm2404_vm4, %v2212_v38, 0.0  ;;  %v2500_v60 = vsel %vm2484_vm1, %v2212_v38, 0.0  ;;  %v2580_v36 = vsel %vm2564_vm3, %v2212_v38, 0.0  ;;  %vm2644_vm14 = vcmp.eq.s32.totalorder %v3913_v12, 3 }
 0x1d1   : > { %vm2436_vm13 = vcmp.eq.s32.totalorder %v2276_v46, 0  ;;  %vm2516_vm15 = vcmp.eq.s32.totalorder %v2276_v46, 1  ;;  %vm2596_vm6 = vcmp.eq.s32.totalorder %v2276_v46, 2  ;;  %v2660_v40 = vsel %vm2644_vm14, %v2212_v38, 0.0 }
 0x1d2   : > { %v2452_v56 = vsel %vm2436_vm13, %v2196_v21, 0.0  ;;  %v2532_v63 = vsel %vm2516_vm15, %v2196_v21, 0.0  ;;  %v2612_v44 = vsel %vm2596_vm6, %v2196_v21, 0.0  ;;  %vm2676_vm0 = vcmp.eq.s32.totalorder %v2276_v46, 3 }
 0x1d3   : > { %v5818_v30 = vadd.f32 %v2452_v56, %v2420_v33  ;;  %v5820_v27 = vadd.f32 %v2532_v63, %v2500_v60  ;;  %v5822_v50 = vadd.f32 %v2612_v44, %v2580_v36  ;;  %v2692_v53 = vsel %vm2676_vm0, %v2196_v21, 0.0 }
 0x1d4   : > { %v5824_v1 = vadd.f32 %v2692_v53, %v2660_v40  ;;  %v1111_v12 = vsel %vm1110_vm8, %v5762_v15, %v1109_v45  ;;  %v3955_v54 = vcvt.f32.s32 %v3954_v35  ;;  %v6981_v17 = vand.u32 2147483648, %v5762_v15 }
 0x1d5   : > { %6978 = vst [vmem:[#allocation56_spill] sm:$0xff] %v5818_v30  ;;  %6979 = vst [vmem:[#allocation57_spill] sm:$0xff] %v5820_v27  ;;  %v5833_v46 = vmul.f32 %v2249_v42, %v5816_v22  ;;  %v5836_v33 = vmul.f32 %v2233_v8, %v5816_v22  ;;  %4098 = vrsqrt.f32 %v5791_v47  ;;  %v1952_v45 = vadd.f32 %v5776_v18, %v5772_v29 }
 0x1d6   : > { %6980 = vst [vmem:[#allocation58_spill] sm:$0xff] %v5824_v1  ;;  %v1114_v38 = vsel %vm1112_vm5, %v6981_v17, %v1111_v12  ;;  %vm2313_vm7 = vcmp.eq.s32.totalorder %v3955_v54, 0  ;;  %v3480_v15 = vadd.s32 4294967295, %v3955_v54  ;;  %vm2361_vm8 = vcmp.ge.s32.totalorder %v3955_v54, 8 }
 0x1d7   : > { %6982 = vst [vmem:[#allocation59_spill] sm:$0xff] %v5836_v33  ;;  %v1993_v35 = vmul.f32 2.0, %v1114_v38  ;;  %v3496_v60 = vadd.s32 4294967288, %v3955_v54  ;;  %vm6985_vm4 = vcmask 64512   ;;  %v1793_v63 = vsub.f32 1.0, %v5778_v10  ;;  %v1905_v33 = vpop.permute.xlu0 %1904 }
 0x1d8   : > { %v1953_v36 = vsel %vm6985_vm4, %v5787_v41, 0.0  ;;  %v5855_v56 = vsel %vm2313_vm7, 7, %v3480_v15  ;;  %v2102_v53 = vadd.f32 1.0, %v5785_v43  ;;  %v998_v12 = vmul.f32 %v4822_v6, %v4822_v6  ;;  %vm6986_vm12 = vmmov %vm6985_vm4 }
 0x1d9   : > { %v3432_v40 = vadd.f32 -1.0, %v1993_v35  ;;  %v5858_v44 = vsel %vm2361_vm8, %v3496_v60, %v3955_v54  ;;  %v1014_v17 = vmul.f32 %v6857_v57, %v6857_v57  ;;  %v1955_v29 = vsel %vm6986_vm12, %v5580_v4, 0.0  ;;  %vm6991_vm3 = vmmov %vm6985_vm4 }
 0x1da   : > { %v1809_v41 = vmax.f32 %v1793_v63, 0.0  ;;  %vm6987_vm2 = vnez %v6880_v11  ;;  %v1954_v54 = vadd.f32 %v1953_v36, %v1952_v45  ;;  %v2118_v35 = vmul.f32 10.0, %v2102_v53 }
 0x1db   : > { %v2041_v18 = vadd.f32 1.0, %v3432_v40  ;;  %v6988_v38 = vsel %vm6987_vm2, 0.0, %v5418_v34  ;;  %v1030_v15 = vadd.f32 %v1014_v17, %v998_v12  ;;  %v1011_v43 = vmul.f32 %v6851_v9, %v6851_v9  ;;  %v1880_v17 = vpop.permute.xlu1 %1879 }
 0x1dc   : > { %v2027_v10 = vmul.f32 0.2546479, %v6988_v38  ;;  %v1825_v60 = vmul.f32 %v1809_v41, %v1809_v41  ;;  %v995_v57 = vmul.f32 %v6842_v31, %v6842_v31  ;;  %v3461_v4 = vadd.f32 -1.0, %v2118_v35 }
 0x1dd   : > { %v2057_v6 = vmul.f32 4.0, %v2041_v18  ;;  %v5875_v40 = vadd.f32 1e-09, %v1030_v15  ;;  %v1798_v63 = vsub.f32 1.0, %v1030_v15  ;;  %vm6989_vm1 = vnez %v6863_v52 }
 0x1de   : > { %v2107_v42 = vadd.f32 1.0, %v2027_v10  ;;  %v6990_v34 = vsel %vm6989_vm1, 0.0, %v5245_v3  ;;  %v5883_v45 = vsel %vm6991_vm3, %v5694_v5, 0.0  ;;  %vm1089_vm14 = vcmp.eq.f32.partialorder %v5791_v47, inf }
 0x1df   : > { %v2024_v11 = vmul.f32 0.2546479, %v6990_v34  ;;  %v3448_v9 = vadd.f32 -1.0, %v2057_v6  ;;  %v4099_v53 = vpop.eup %4098  ;;  %vm1091_vm13 = vcmp.eq.f32.partialorder %v5791_v47, 0.0  ;;  %v1092_v31 = vand.u32 2147483648, %v5791_v47 }
 0x1e0   : > { %v2123_v36 = vmul.f32 10.0, %v2107_v42  ;;  %v2150_v12 = vmul.f32 0.5, %v3461_v4  ;;  %v5888_v18 = vadd.f32 %v1011_v43, %v995_v57  ;;  %v1088_v3 = vmul.f32 %v4099_v53, %v5791_v47 }
 0x1e1   : > { %v2089_v52 = vmul.f32 0.5, %v3448_v9  ;;  %v1841_v38 = vmul.f32 %v1825_v60, %v1809_v41  ;;  %v5891_v10 = vadd.f32 %v1955_v29, %v1954_v54  ;;  %4100 = vrsqrt.f32 %v5875_v40 }
 0x1e2   : > { %v2182_v5 = vfloor.f32 %v2150_v12  ;;  %v1814_v35 = vmax.f32 %v1798_v63, 0.0  ;;  %v5894_v42 = vadd.f32 1.0, %v2024_v11  ;;  %v1090_v6 = vsel %vm1089_vm14, %v5791_v47, %v1088_v3 }
 0x1e3   : > { %v2169_v15 = vfloor.f32 %v2089_v52  ;;  %v1937_v4 = vmul.f32 %v1880_v17, %v1841_v38  ;;  %v3466_v43 = vadd.f32 -1.0, %v2123_v36  ;;  %v1093_v57 = vsel %vm1091_vm13, %v1092_v31, %v1090_v6 }
 0x1e4   : > { %v2230_v34 = vsub.f32 %v2150_v12, %v2182_v5  ;;  %v3948_v41 = vtrunc.f32 %v2182_v5  ;;  %v5902_v29 = vadd.f32 1e-09, %v5888_v18  ;;  %v1990_v63 = vmul.f32 2.0, %v1093_v57 }
 0x1e5   : > { %v2201_v54 = vsub.f32 %v2089_v52, %v2169_v15  ;;  %v3922_v60 = vtrunc.f32 %v2169_v15  ;;  %v1795_v11 = vsub.f32 1.0, %v5888_v18  ;;  %v1830_v3 = vmul.f32 %v1814_v35, %v1814_v35 }
 0x1e6   : > { %v2246_v9 = vsub.f32 1.0, %v2230_v34  ;;  %v3949_v53 = vcvt.f32.s32 %v3948_v41  ;;  %v5905_v8 = vmul.f32 %v2230_v34, %v1937_v4  ;;  %v3429_v38 = vadd.f32 -1.0, %v1990_v63 }
 0x1e7   : > { %v2217_v17 = vsub.f32 1.0, %v2201_v54  ;;  %v3923_v36 = vcvt.f32.s32 %v3922_v60  ;;  %v2155_v47 = vmul.f32 0.5, %v3466_v43  ;;  %vm1124_vm0 = vcmp.eq.f32.partialorder %v5875_v40, inf }
 0x1e8   : > { %6992 = vst [vmem:[#allocation60_spill] sm:$0xff] %v5905_v8  ;;  %vm2310_vm15 = vcmp.eq.s32.totalorder %v3949_v53, 0  ;;  %v3477_v31 = vadd.s32 4294967295, %v3949_v53  ;;  %vm2358_vm6 = vcmp.ge.s32.totalorder %v3949_v53, 8  ;;  %v3493_v12 = vadd.s32 4294967288, %v3949_v53 }
 0x1e9   : > { %v2281_v52 = vadd.s32 1, %v3923_v36  ;;  %vm2409_vm5 = vcmp.eq.s32.totalorder %v3923_v36, 0  ;;  %vm2489_vm7 = vcmp.eq.s32.totalorder %v3923_v36, 1  ;;  %vm2569_vm8 = vcmp.eq.s32.totalorder %v3923_v36, 2 }
 0x1ea   : > { %v2425_v18 = vsel %vm2409_vm5, %v2217_v17, 0.0  ;;  %v2505_v5 = vsel %vm2489_vm7, %v2217_v17, 0.0  ;;  %v2585_v15 = vsel %vm2569_vm8, %v2217_v17, 0.0  ;;  %vm2649_vm4 = vcmp.eq.s32.totalorder %v3923_v36, 3 }
 0x1eb   : > { %vm2441_vm12 = vcmp.eq.s32.totalorder %v2281_v52, 0  ;;  %vm2521_vm2 = vcmp.eq.s32.totalorder %v2281_v52, 1  ;;  %vm2601_vm1 = vcmp.eq.s32.totalorder %v2281_v52, 2  ;;  %v2665_v6 = vsel %vm2649_vm4, %v2217_v17, 0.0  ;;  %v4101_v57 = vpop.eup %4100 }
 0x1ec   : > { %v2457_v43 = vsel %vm2441_vm12, %v2201_v54, 0.0  ;;  %v2537_v34 = vsel %vm2521_vm2, %v2201_v54, 0.0  ;;  %v2617_v41 = vsel %vm2601_vm1, %v2201_v54, 0.0  ;;  %vm2681_vm3 = vcmp.eq.s32.totalorder %v2281_v52, 3 }
 0x1ed   : > { %v5908_v60 = vadd.f32 %v2457_v43, %v2425_v18  ;;  %v5910_v63 = vadd.f32 %v2537_v34, %v2505_v5  ;;  %v5912_v61 = vadd.f32 %v2617_v41, %v2585_v15  ;;  %v2697_v19 = vsel %vm2681_vm3, %v2201_v54, 0.0 }
 0x1ee   : > { %v5914_v1 = vadd.f32 %v2697_v19, %v2665_v6  ;;  %v2038_v27 = vadd.f32 1.0, %v3429_v38  ;;  %v5917_v36 = vsel %vm2310_vm15, 7, %v3477_v31  ;;  %v5920_v17 = vsel %vm2358_vm6, %v3493_v12, %v3949_v53 }
 0x1ef   : > { %6993 = vst [vmem:[#allocation61_spill] sm:$0xff] %v5908_v60  ;;  %6994 = vst [vmem:[#allocation62_spill] sm:$0xff] %v5910_v63  ;;  %v5922_v28 = vmul.f32 %v2246_v9, %v1937_v4  ;;  %v1123_v52 = vmul.f32 %v4101_v57, %v5875_v40  ;;  %v1846_v18 = vmul.f32 %v1830_v3, %v1814_v35  ;;  %v2187_v5 = vfloor.f32 %v2155_v47 }
 0x1f0   : > { %6995 = vst [vmem:[#allocation63_spill] sm:$0xff] %v5912_v61  ;;  %6996 = vst [vmem:[#allocation64_spill] sm:$0xff] %v5914_v1  ;;  %v2054_v43 = vmul.f32 4.0, %v2038_v27  ;;  %vm1126_vm14 = vcmp.eq.f32.partialorder %v5875_v40, 0.0  ;;  %v1127_v19 = vand.u32 2147483648, %v5875_v40  ;;  %4102 = vrsqrt.f32 %v5902_v29 }
 0x1f1   : > { %6997 = vst [vmem:[#allocation65_spill] sm:$0xff] %v5920_v17  ;;  %6998 = vst [vmem:[#allocation66_spill] sm:$0xff] %v5922_v28  ;;  %v1125_v54 = vsel %vm1124_vm0, %v5875_v40, %v1123_v52  ;;  %v2235_v53 = vsub.f32 %v2155_v47, %v2187_v5  ;;  %v3958_v38 = vtrunc.f32 %v2187_v5  ;;  %v5931_v31 = vmul.f32 %v1905_v33, %v1846_v18 }
 0x1f2   : > { %v3445_v9 = vadd.f32 -1.0, %v2054_v43  ;;  %vm6999_vm13 = vcmask 64512   ;;  %v1128_v35 = vsel %vm1126_vm14, %v1127_v19, %v1125_v54  ;;  %v1811_v3 = vmax.f32 %v1795_v11, 0.0  ;;  %v1890_v54 = vpop.permute.xlu1 %1889 }
 0x1f3   : > { %v1957_v12 = vsel %vm6999_vm13, %v1937_v4, 0.0  ;;  %v1995_v27 = vmul.f32 2.0, %v1128_v35  ;;  %v2251_v15 = vsub.f32 1.0, %v2235_v53  ;;  %v3959_v6 = vcvt.f32.s32 %v3958_v38 }
 0x1f4   : > { %v5935_v57 = vmul.f32 %v2235_v53, %v5931_v31  ;;  %v2086_v34 = vmul.f32 0.5, %v3445_v9  ;;  %v1827_v41 = vmul.f32 %v1811_v3, %v1811_v3  ;;  %v2120_v1 = vmul.f32 10.0, %v5894_v42 }
 0x1f5   : > { %v1000_v40 = vmul.f32 %v4856_v23, %v4856_v23  ;;  %v3434_v33 = vadd.f32 -1.0, %v1995_v27  ;;  %vm2315_vm15 = vcmp.eq.s32.totalorder %v3959_v6, 0  ;;  %v3482_v47 = vadd.s32 4294967295, %v3959_v6 }
 0x1f6   : > { %7000 = vst [vmem:[#allocation67_spill] sm:$0xff] %v5935_v57  ;;  %vm2363_vm6 = vcmp.ge.s32.totalorder %v3959_v6, 8  ;;  %v2166_v4 = vfloor.f32 %v2086_v34  ;;  %v1958_v11 = vadd.f32 %v1957_v12, %v5891_v10  ;;  %v3498_v52 = vadd.s32 4294967288, %v3959_v6 }
 0x1f7   : > { %v5942_v18 = vmul.f32 %v2251_v15, %v5931_v31  ;;  %v2043_v5 = vadd.f32 1.0, %v3434_v33  ;;  %v5944_v43 = vsel %vm2315_vm15, 7, %v3482_v47  ;;  %v3463_v19 = vadd.f32 -1.0, %v2120_v1 }
 0x1f8   : > { %7002 = vst [vmem:[#allocation69_spill] sm:$0xff] %v5944_v43  ;;  %v1016_v42 = vmul.f32 %v6867_v39, %v6867_v39  ;;  %v2198_v23 = vsub.f32 %v2086_v34, %v2166_v4  ;;  %v3916_v53 = vtrunc.f32 %v2166_v4  ;;  %v5948_v38 = vsel %vm2363_vm6, %v3498_v52, %v3959_v6 }
 0x1f9   : > { %7001 = vst [vmem:[#allocation68_spill] sm:$0xff] %v5942_v18  ;;  %7003 = vst [vmem:[#allocation70_spill] sm:$0xff] %v5948_v38  ;;  %vm1103_vm0 = vcmp.eq.f32.partialorder %v5902_v29, inf  ;;  %v1843_v9 = vmul.f32 %v1827_v41, %v1811_v3  ;;  %v2059_v10 = vmul.f32 4.0, %v2043_v5  ;;  %vm1105_vm5 = vcmp.eq.f32.partialorder %v5902_v29, 0.0 }
 0x1fa   : > { %v1106_v12 = vand.u32 2147483648, %v5902_v29  ;;  %v2152_v35 = vmul.f32 0.5, %v3463_v19  ;;  %v4103_v27 = vpop.eup %4102  ;;  %v2214_v15 = vsub.f32 1.0, %v2198_v23  ;;  %v3917_v1 = vcvt.f32.s32 %v3916_v53 }
 0x1fb   : > { %v5954_v33 = vadd.f32 %v5883_v45, %v1958_v11  ;;  %v1939_v39 = vmul.f32 %v1890_v54, %v1843_v9  ;;  %v3450_v34 = vadd.f32 -1.0, %v2059_v10  ;;  %v1102_v6 = vmul.f32 %v4103_v27, %v5902_v29 }
 0x1fc   : > { %v2184_v47 = vfloor.f32 %v2152_v35  ;;  %v5957_v4 = vadd.f32 %v1016_v42, %v1000_v40  ;;  %v2278_v3 = vadd.s32 1, %v3917_v1  ;;  %vm2406_vm7 = vcmp.eq.s32.totalorder %v3917_v1, 0 }
 0x1fd   : > { %vm2486_vm8 = vcmp.eq.s32.totalorder %v3917_v1, 1  ;;  %vm2566_vm4 = vcmp.eq.s32.totalorder %v3917_v1, 2  ;;  %v2422_v41 = vsel %vm2406_vm7, %v2214_v15, 0.0  ;;  %vm2646_vm12 = vcmp.eq.s32.totalorder %v3917_v1, 3 }
 0x1fe   : > { %v2502_v52 = vsel %vm2486_vm8, %v2214_v15, 0.0  ;;  %v2582_v5 = vsel %vm2566_vm4, %v2214_v15, 0.0  ;;  %vm2438_vm2 = vcmp.eq.s32.totalorder %v2278_v3, 0  ;;  %vm2518_vm1 = vcmp.eq.s32.totalorder %v2278_v3, 1 }
 0x1ff   : > { %vm2598_vm3 = vcmp.eq.s32.totalorder %v2278_v3, 2  ;;  %v2662_v45 = vsel %vm2646_vm12, %v2214_v15, 0.0  ;;  %v2454_v11 = vsel %vm2438_vm2, %v2198_v23, 0.0  ;;  %v2534_v19 = vsel %vm2518_vm1, %v2198_v23, 0.0 }
 0x200   : > { %v2614_v54 = vsel %vm2598_vm3, %v2198_v23, 0.0  ;;  %vm2678_vm14 = vcmp.eq.s32.totalorder %v2278_v3, 3  ;;  %v5959_v53 = vadd.f32 %v2454_v11, %v2422_v41  ;;  %v5961_v40 = vadd.f32 %v2534_v19, %v2502_v52  ;;  %v5981_v11 = vpop.permute.xlu0 %1914 }
 0x201   : > { %v5963_v42 = vadd.f32 %v2614_v54, %v2582_v5  ;;  %v2694_v9 = vsel %vm2678_vm14, %v2198_v23, 0.0  ;;  %v2091_v27 = vmul.f32 0.5, %v3450_v34  ;;  %v1104_v1 = vsel %vm1103_vm0, %v5902_v29, %v1102_v6 }
 0x202   : > { %7004 = vst [vmem:[#allocation71_spill] sm:$0xff] %v5961_v40  ;;  %v5965_v10 = vadd.f32 %v2694_v9, %v2662_v45  ;;  %v2232_v63 = vsub.f32 %v2152_v35, %v2184_v47  ;;  %v1107_v15 = vsel %vm1105_vm5, %v1106_v12, %v1104_v1  ;;  %v3952_v57 = vtrunc.f32 %v2184_v47  ;;  %v3616_v35 = vpop.f32.mrb[0].mxu0  ;;  %v628_v9 = vpop.f32.mrb[1].mxu1 }
 0x203   : > { %v5973_v3 = vadd.f32 1e-09, %v5957_v4  ;;  %v7006_v41 = vsel %vm5529_vm11, 0.0, %v5466_v49  ;;  %v2171_v52 = vfloor.f32 %v2091_v27  ;;  %v1992_v5 = vmul.f32 2.0, %v1107_v15  ;;  %708 = vst [vmem:[#allocation2 + $0x8] sm:$0xff] %v3616_v35  ;;  %v548_v49 = vpop.f32.mrb[1].mxu0 }
 0x204   : > { %7005 = vst [vmem:[#allocation72_spill] sm:$0xff] %v5965_v10  ;;  %v2029_v23 = vmul.f32 0.2546479, %v7006_v41  ;;  %v2248_v34 = vsub.f32 1.0, %v2232_v63  ;;  %v5979_v45 = vmul.f32 %v2232_v63, %v1939_v39  ;;  %v3953_v6 = vcvt.f32.s32 %v3952_v57  ;;  %707 = vst [vmem:[#allocation2] sm:$0xff] %v548_v49  ;;  %v3619_v57 = vpop.f32.mrb[2].mxu0 }
 0x205   : > { %v5984_v29 = vsel %vm6999_vm13, %v1939_v39, 0.0  ;;  %4104 = vrsqrt.f32 %v5973_v3  ;;  %v1800_v12 = vsub.f32 1.0, %v5957_v4  ;;  %v5988_v47 = vsub.f32 %v2091_v27, %v2171_v52  ;;  %723 = vst [vmem:[#allocation2 + $0x80] sm:$0xff] %v628_v9  ;;  %710 = vst [vmem:[#allocation2 + $0x18] sm:$0xff] %v3619_v57  ;;  %v3643_v4 = vpop.f32.mrb[2].mxu1  ;;  %v558_v41 = vpop.f32.mrb[3].mxu0 }
 0x206   : > { %v3926_v19 = vtrunc.f32 %v2171_v52  ;;  %v3431_v54 = vadd.f32 -1.0, %v1992_v5  ;;  %v5990_v63 = vmul.f32 %v2248_v34, %v1939_v39  ;;  %vm2312_vm11 = vcmp.eq.s32.totalorder %v3953_v6, 0  ;;  %726 = vst [vmem:[#allocation2 + $0x98] sm:$0xff] %v3643_v4  ;;  %709 = vst [vmem:[#allocation2 + $0x10] sm:$0xff] %v558_v41  ;;  %v638_v52 = vpop.f32.mrb[3].mxu1  ;;  %v3622_v5 = vpop.f32.mrb[4].mxu0 }
 0x207   : > { %v3479_v1 = vadd.s32 4294967295, %v3953_v6  ;;  %vm2360_vm15 = vcmp.ge.s32.totalorder %v3953_v6, 8  ;;  %v3495_v15 = vadd.s32 4294967288, %v3953_v6  ;;  %v2219_v35 = vsub.f32 1.0, %v5988_v47  ;;  %725 = vst [vmem:[#allocation2 + $0x90] sm:$0xff] %v638_v52  ;;  %712 = vst [vmem:[#allocation2 + $0x28] sm:$0xff] %v3622_v5 }
 0x208   : > { %v3927_v27 = vcvt.f32.s32 %v3926_v19  ;;  %v2040_v10 = vadd.f32 1.0, %v3431_v54  ;;  %v5995_v39 = vmul.f32 %v6853_v0, %v6853_v0  ;;  %v6002_v49 = vmax.f32 %v1800_v12, 0.0  ;;  %v3646_v19 = vpop.f32.mrb[4].mxu1  ;;  %v568_v54 = vpop.f32.mrb[5].mxu0  ;;  %v7008_v12 = vld [vmem:[#allocation25_spill] sm:$0xff] }
 0x209   : > { %v5998_v34 = vsel %vm2312_vm11, 7, %v3479_v1  ;;  %v6000_v24 = vsel %vm2360_vm15, %v3495_v15, %v3953_v6  ;;  %v2109_v9 = vadd.f32 1.0, %v2029_v23  ;;  %728 = vst [vmem:[#allocation2 + $0xa8] sm:$0xff] %v3646_v19  ;;  %711 = vst [vmem:[#allocation2 + $0x20] sm:$0xff] %v568_v54  ;;  %v648_v0 = vpop.f32.mrb[5].mxu1  ;;  %v3625_v4 = vpop.f32.mrb[6].mxu0  ;;  %vm7013_vm14 = vnez %v6876_v25 }
 0x20a   : > { %7007 = vst [vmem:[#allocation73_spill] sm:$0xff] %v6000_v24  ;;  %v2283_v57 = vadd.s32 1, %v3927_v27  ;;  %vm2411_vm6 = vcmp.eq.s32.totalorder %v3927_v27, 0  ;;  %vm2491_vm0 = vcmp.eq.s32.totalorder %v3927_v27, 1  ;;  %vm2571_vm5 = vcmp.eq.s32.totalorder %v3927_v27, 2  ;;  %727 = vst [vmem:[#allocation2 + $0xa0] sm:$0xff] %v648_v0 }
 0x20b   : > { %v2427_v41 = vsel %vm2411_vm6, %v2219_v35, 0.0  ;;  %v2507_v1 = vsel %vm2491_vm0, %v2219_v35, 0.0  ;;  %v2587_v40 = vsel %vm2571_vm5, %v2219_v35, 0.0  ;;  %vm2651_vm7 = vcmp.eq.s32.totalorder %v3927_v27, 3  ;;  %714 = vst [vmem:[#allocation2 + $0x38] sm:$0xff] %v3625_v4  ;;  %v3649_v6 = vpop.f32.mrb[6].mxu1 }
 0x20c   : > { %v578_v23 = vpop.f32.mrb[7].mxu0  ;;  %vm1691_vm8 = vcmp.lt.f32.partialorder %v7008_v12, 0.0  ;;  %vm2443_vm4 = vcmp.eq.s32.totalorder %v2283_v57, 0  ;;  %vm2523_vm12 = vcmp.eq.s32.totalorder %v2283_v57, 1  ;;  %vm2603_vm2 = vcmp.eq.s32.totalorder %v2283_v57, 2  ;;  %730 = vst [vmem:[#allocation2 + $0xb8] sm:$0xff] %v3649_v6 }
 0x20d   : > { %v2667_v15 = vsel %vm2651_vm7, %v2219_v35, 0.0  ;;  %713 = vst [vmem:[#allocation2 + $0x30] sm:$0xff] %v578_v23  ;;  %v658_v52 = vpop.f32.mrb[7].mxu1  ;;  %v3628_v5 = vpop.f32.mrb[8].mxu0  ;;  %v2459_v19 = vsel %vm2443_vm4, %v5988_v47, 0.0  ;;  %v2539_v54 = vsel %vm2523_vm12, %v5988_v47, 0.0 }
 0x20e   : > { %v2619_v27 = vsel %vm2603_vm2, %v5988_v47, 0.0  ;;  %vm2683_vm1 = vcmp.eq.s32.totalorder %v2283_v57, 3  ;;  %729 = vst [vmem:[#allocation2 + $0xb0] sm:$0xff] %v658_v52  ;;  %716 = vst [vmem:[#allocation2 + $0x48] sm:$0xff] %v3628_v5  ;;  %v3652_v0 = vpop.f32.mrb[8].mxu1  ;;  %v588_v4 = vpop.f32.mrb[9].mxu0  ;;  %v6008_v61 = vadd.f32 %v2459_v19, %v2427_v41  ;;  %v6010_v60 = vadd.f32 %v2539_v54, %v2507_v1 }
 0x20f   : > { %v6012_v35 = vadd.f32 %v2619_v27, %v2587_v40  ;;  %v2699_v6 = vsel %vm2683_vm1, %v5988_v47, 0.0  ;;  %732 = vst [vmem:[#allocation2 + $0xc8] sm:$0xff] %v3652_v0  ;;  %715 = vst [vmem:[#allocation2 + $0x40] sm:$0xff] %v588_v4  ;;  %v668_v23 = vpop.f32.mrb[9].mxu1  ;;  %v3631_v38 = vpop.f32.mrb[10].mxu0  ;;  %v2056_v57 = vmul.f32 4.0, %v2040_v10  ;;  %v1832_v52 = vmul.f32 %v6002_v49, %v6002_v49 }
 0x210   : > { %7009 = vst [vmem:[#allocation25_spill] sm:$0xff] %v6008_v61  ;;  %7010 = vst [vmem:[#allocation74_spill] sm:$0xff] %v6010_v60  ;;  %v4105_v18 = vpop.eup %4104  ;;  %v6015_v43 = vadd.f32 %v2699_v6, %v2667_v15  ;;  %v2125_v5 = vmul.f32 10.0, %v2109_v9  ;;  %v3655_v41 = vpop.f32.mrb[10].mxu1  ;;  %vm1138_vm3 = vcmp.eq.f32.partialorder %v5973_v3, inf  ;;  %v1013_v47 = vmul.f32 %v6856_v55, %v6856_v55 }
 0x211   : > { %7011 = vst [vmem:[#allocation75_spill] sm:$0xff] %v6012_v35  ;;  %731 = vst [vmem:[#allocation2 + $0xc0] sm:$0xff] %v668_v23  ;;  %v598_v1 = vpop.f32.mrb[11].mxu0  ;;  %v1137_v40 = vmul.f32 %v4105_v18, %v5973_v3  ;;  %v7014_v15 = vsel %vm7013_vm14, 0.0, %v5414_v26  ;;  %v678_v19 = vpop.f32.mrb[11].mxu1  ;;  %v3447_v54 = vadd.f32 -1.0, %v2056_v57  ;;  %v1848_v25 = vmul.f32 %v1832_v52, %v6002_v49 }
 0x212   : > { %7012 = vst [vmem:[#allocation76_spill] sm:$0xff] %v6015_v43  ;;  %718 = vst [vmem:[#allocation2 + $0x58] sm:$0xff] %v3631_v38  ;;  %v2026_v10 = vmul.f32 0.2546479, %v7014_v15  ;;  %v3634_v9 = vpop.f32.mrb[12].mxu0  ;;  %vm1140_vm13 = vcmp.eq.f32.partialorder %v5973_v3, 0.0  ;;  %v1029_v26 = vadd.f32 %v1013_v47, %v5995_v39 }
 0x213   : > { %734 = vst [vmem:[#allocation2 + $0xd8] sm:$0xff] %v3655_v41  ;;  %717 = vst [vmem:[#allocation2 + $0x50] sm:$0xff] %v598_v1  ;;  %v1141_v38 = vand.u32 2147483648, %v5973_v3  ;;  %v3468_v18 = vadd.f32 -1.0, %v2125_v5  ;;  %v3658_v27 = vpop.f32.mrb[12].mxu1  ;;  %v608_v0 = vpop.f32.mrb[13].mxu0  ;;  %v1139_v55 = vsel %vm1138_vm3, %v5973_v3, %v1137_v40  ;;  %v1018_v1 = vmul.f32 %v6923_v58, %v6923_v58 }
 0x214   : > { %733 = vst [vmem:[#allocation2 + $0xd0] sm:$0xff] %v678_v19  ;;  %720 = vst [vmem:[#allocation2 + $0x68] sm:$0xff] %v3634_v9  ;;  %v2106_v4 = vadd.f32 1.0, %v2026_v10  ;;  %v688_v6 = vpop.f32.mrb[13].mxu1  ;;  %v3637_v23 = vpop.f32.mrb[14].mxu0  ;;  %v2088_v57 = vmul.f32 0.5, %v3447_v54  ;;  %v6047_v9 = vadd.f32 %v5984_v29, %v5954_v33 }
 0x215   : > { %736 = vst [vmem:[#allocation2 + $0xe8] sm:$0xff] %v3658_v27  ;;  %719 = vst [vmem:[#allocation2 + $0x60] sm:$0xff] %v608_v0  ;;  %v1142_v41 = vsel %vm1140_vm13, %v1141_v38, %v1139_v55  ;;  %v2157_v5 = vmul.f32 0.5, %v3468_v18  ;;  %v3661_v40 = vpop.f32.mrb[14].mxu1  ;;  %v618_v15 = vpop.f32.mrb[15].mxu0  ;;  %v1797_v39 = vsub.f32 1.0, %v1029_v26  ;;  %v6050_v18 = vmul.f32 %v5981_v11, %v1848_v25 }
 0x216   : > { %735 = vst [vmem:[#allocation2 + $0xe0] sm:$0xff] %v688_v6  ;;  %722 = vst [vmem:[#allocation2 + $0x78] sm:$0xff] %v3637_v23  ;;  %v1997_v49 = vmul.f32 2.0, %v1142_v41  ;;  %v6036_v52 = vadd.f32 1e-09, %v1029_v26  ;;  %v2122_v47 = vmul.f32 10.0, %v2106_v4  ;;  %v2168_v58 = vfloor.f32 %v2088_v57 }
 0x217   : > { %738 = vst [vmem:[#allocation2 + $0xf8] sm:$0xff] %v3661_v40  ;;  %721 = vst [vmem:[#allocation2 + $0x70] sm:$0xff] %v618_v15  ;;  %v698_v10 = vpop.f32.mrb[15].mxu1  ;;  %v7015_v3 = vsub.f32 0.0, %v5769_v32  ;;  %v2189_v54 = vfloor.f32 %v2157_v5  ;;  %v1002_v27 = vmul.f32 %v6899_v20, %v6899_v20  ;;  %v1813_v6 = vmax.f32 %v1797_v39, 0.0 }
 0x218   : > { %737 = vst [vmem:[#allocation2 + $0xf0] sm:$0xff] %v698_v10  ;;  %v3436_v38 = vadd.f32 -1.0, %v1997_v49  ;;  %4106 = vrsqrt.f32 %v6036_v52  ;;  %v2200_v0 = vsub.f32 %v2088_v57, %v2168_v58  ;;  %v3920_v55 = vtrunc.f32 %v2168_v58 }
 0x219   : > { %v6043_v19 = vsel %vm1691_vm8, %v7015_v3, %v5769_v32  ;;  %v2237_v32 = vsub.f32 %v2157_v5, %v2189_v54  ;;  %v3962_v26 = vtrunc.f32 %v2189_v54  ;;  %v3465_v23 = vadd.f32 -1.0, %v2122_v47 }
 0x21a   : > { %v2045_v4 = vadd.f32 1.0, %v3436_v38  ;;  %v6055_v33 = vadd.f32 %v1018_v1, %v1002_v27  ;;  %v2216_v29 = vsub.f32 1.0, %v2200_v0  ;;  %v3921_v41 = vcvt.f32.s32 %v3920_v55 }
 0x21b   : > { %v2253_v40 = vsub.f32 1.0, %v2237_v32  ;;  %v3963_v15 = vcvt.f32.s32 %v3962_v26  ;;  %v6058_v25 = vmul.f32 %v2237_v32, %v6050_v18  ;;  %vm1117_vm11 = vcmp.eq.f32.partialorder %v6036_v52, inf }
 0x21c   : > { %v2061_v11 = vmul.f32 4.0, %v2045_v4  ;;  %v1829_v20 = vmul.f32 %v1813_v6, %v1813_v6  ;;  %v2154_v57 = vmul.f32 0.5, %v3465_v23  ;;  %v2280_v49 = vadd.s32 1, %v3921_v41 }
 0x21d   : > { %7016 = vst [vmem:[#allocation77_spill] sm:$0xff] %v6058_v25  ;;  %vm2408_vm15 = vcmp.eq.s32.totalorder %v3921_v41, 0  ;;  %vm2488_vm6 = vcmp.eq.s32.totalorder %v3921_v41, 1  ;;  %vm2568_vm0 = vcmp.eq.s32.totalorder %v3921_v41, 2  ;;  %vm1119_vm5 = vcmp.eq.f32.partialorder %v6036_v52, 0.0 }
 0x21e   : > { %v2424_v5 = vsel %vm2408_vm15, %v2216_v29, 0.0  ;;  %v2504_v1 = vsel %vm2488_vm6, %v2216_v29, 0.0  ;;  %v2584_v39 = vsel %vm2568_vm0, %v2216_v29, 0.0  ;;  %vm2648_vm7 = vcmp.eq.s32.totalorder %v3921_v41, 3 }
 0x21f   : > { %vm2440_vm8 = vcmp.eq.s32.totalorder %v2280_v49, 0  ;;  %vm2520_vm4 = vcmp.eq.s32.totalorder %v2280_v49, 1  ;;  %vm2600_vm12 = vcmp.eq.s32.totalorder %v2280_v49, 2  ;;  %v2664_v47 = vsel %vm2648_vm7, %v2216_v29, 0.0 }
 0x220   : > { %v2456_v10 = vsel %vm2440_vm8, %v2200_v0, 0.0  ;;  %v2536_v3 = vsel %vm2520_vm4, %v2200_v0, 0.0  ;;  %v2616_v58 = vsel %vm2600_vm12, %v2200_v0, 0.0  ;;  %vm2680_vm2 = vcmp.eq.s32.totalorder %v2280_v49, 3 }
 0x221   : > { %v6062_v54 = vadd.f32 %v2456_v10, %v2424_v5  ;;  %v6064_v38 = vadd.f32 %v2536_v3, %v2504_v1  ;;  %v6066_v27 = vadd.f32 %v2616_v58, %v2584_v39  ;;  %v2696_v55 = vsel %vm2680_vm2, %v2200_v0, 0.0  ;;  %v1900_v0 = vpop.permute.xlu1 %1899 }
 0x222   : > { %v4107_v32 = vpop.eup %4106  ;;  %v6068_v26 = vadd.f32 %v2696_v55, %v2664_v47  ;;  %v3452_v4 = vadd.f32 -1.0, %v2061_v11  ;;  %vm2317_vm1 = vcmp.eq.s32.totalorder %v3963_v15, 0  ;;  %v3484_v23 = vadd.s32 4294967295, %v3963_v15 }
 0x223   : > { %7017 = vst [vmem:[#allocation78_spill] sm:$0xff] %v6064_v38  ;;  %vm2365_vm3 = vcmp.ge.s32.totalorder %v3963_v15, 8  ;;  %v3500_v41 = vadd.s32 4294967288, %v3963_v15  ;;  %v6071_v29 = vmul.f32 %v2253_v40, %v6050_v18  ;;  %v1116_v49 = vmul.f32 %v4107_v32, %v6036_v52 }
 0x224   : > { %7018 = vst [vmem:[#allocation79_spill] sm:$0xff] %v6068_v26  ;;  %v2093_v5 = vmul.f32 0.5, %v3452_v4  ;;  %v6074_v10 = vsel %vm2317_vm1, 7, %v3484_v23  ;;  %v1120_v1 = vand.u32 2147483648, %v6036_v52  ;;  %v2186_v39 = vfloor.f32 %v2154_v57 }
 0x225   : > { %7019 = vst [vmem:[#allocation80_spill] sm:$0xff] %v6074_v10  ;;  %v6077_v3 = vsel %vm2365_vm3, %v3500_v41, %v3963_v15  ;;  %v1118_v11 = vsel %vm1117_vm11, %v6036_v52, %v1116_v49  ;;  %v1845_v47 = vmul.f32 %v1829_v20, %v1813_v6  ;;  %v6083_v58 = vadd.f32 1e-09, %v6055_v33 }
 0x226   : > { %7020 = vst [vmem:[#allocation81_spill] sm:$0xff] %v6077_v3  ;;  %v2173_v40 = vfloor.f32 %v2093_v5  ;;  %v1121_v55 = vsel %vm1119_vm5, %v1120_v1, %v1118_v11  ;;  %v2234_v32 = vsub.f32 %v2154_v57, %v2186_v39  ;;  %v3956_v4 = vtrunc.f32 %v2186_v39 }
 0x227   : > { %vm7021_vm14 = vcmask 64512   ;;  %v1994_v43 = vmul.f32 2.0, %v1121_v55  ;;  %v1941_v15 = vmul.f32 %v1900_v0, %v1845_v47  ;;  %4108 = vrsqrt.f32 %v6083_v58 }
 0x228   : > { %v1963_v23 = vsel %vm7021_vm14, %v5816_v22, 0.0  ;;  %v2205_v41 = vsub.f32 %v2093_v5, %v2173_v40  ;;  %v3930_v60 = vtrunc.f32 %v2173_v40  ;;  %v3957_v20 = vcvt.f32.s32 %v3956_v4  ;;  %vm7022_vm11 = vmmov %vm7021_vm14 }
 0x229   : > { %v1964_v6 = vadd.f32 %v1963_v23, %v6047_v9  ;;  %v3433_v49 = vadd.f32 -1.0, %v1994_v43  ;;  %v2250_v26 = vsub.f32 1.0, %v2234_v32  ;;  %v6091_v38 = vmul.f32 %v2234_v32, %v1941_v15 }
 0x22a   : > { %v1802_v52 = vsub.f32 1.0, %v6055_v33  ;;  %v2221_v57 = vsub.f32 1.0, %v2205_v41  ;;  %v3931_v1 = vcvt.f32.s32 %v3930_v60  ;;  %vm2314_vm13 = vcmp.eq.s32.totalorder %v3957_v20, 0 }
 0x22b   : > { %v1965_v22 = vsel %vm7022_vm11, %v1941_v15, 0.0  ;;  %v2042_v39 = vadd.f32 1.0, %v3433_v49  ;;  %v3481_v0 = vadd.s32 4294967295, %v3957_v20  ;;  %vm2362_vm15 = vcmp.ge.s32.totalorder %v3957_v20, 8 }
 0x22c   : > { %v3497_v11 = vadd.s32 4294967288, %v3957_v20  ;;  %vm1152_vm6 = vcmp.eq.f32.partialorder %v6083_v58, inf  ;;  %v2285_v5 = vadd.s32 1, %v3931_v1  ;;  %vm2413_vm0 = vcmp.eq.s32.totalorder %v3931_v1, 0 }
 0x22d   : > { %vm2493_vm5 = vcmp.eq.s32.totalorder %v3931_v1, 1  ;;  %vm2573_vm7 = vcmp.eq.s32.totalorder %v3931_v1, 2  ;;  %v2429_v43 = vsel %vm2413_vm0, %v2221_v57, 0.0  ;;  %vm2653_vm8 = vcmp.eq.s32.totalorder %v3931_v1, 3 }
 0x22e   : > { %v2509_v9 = vsel %vm2493_vm5, %v2221_v57, 0.0  ;;  %v2589_v47 = vsel %vm2573_vm7, %v2221_v57, 0.0  ;;  %vm1755_vm4 = vcmp.eq.f32.partialorder %v7008_v12, 0.0  ;;  %vm2445_vm12 = vcmp.eq.s32.totalorder %v2285_v5, 0 }
 0x22f   : > { %vm2525_vm2 = vcmp.eq.s32.totalorder %v2285_v5, 1  ;;  %vm2605_vm1 = vcmp.eq.s32.totalorder %v2285_v5, 2  ;;  %v2669_v60 = vsel %vm2653_vm8, %v2221_v57, 0.0  ;;  %v2461_v33 = vsel %vm2445_vm12, %v2205_v41, 0.0 }
 0x230   : > { %v2541_v40 = vsel %vm2525_vm2, %v2205_v41, 0.0  ;;  %v2621_v55 = vsel %vm2605_vm1, %v2205_v41, 0.0  ;;  %vm2685_vm3 = vcmp.eq.s32.totalorder %v2285_v5, 3  ;;  %vm1739_vm14 = vcmp.eq.f32.partialorder %v6956_v48, 0.0 }
 0x231   : > { %v6098_v32 = vadd.f32 %v2461_v33, %v2429_v43  ;;  %v6100_v4 = vadd.f32 %v2541_v40, %v2509_v9  ;;  %v6102_v23 = vadd.f32 %v2621_v55, %v2589_v47  ;;  %v2701_v49 = vsel %vm2685_vm3, %v2205_v41, 0.0  ;;  %v4109_v1 = vpop.eup %4108 }
 0x232   : > { %v6104_v25 = vadd.f32 %v2701_v49, %v2669_v60  ;;  %v2058_v35 = vmul.f32 4.0, %v2042_v39  ;;  %v6107_v61 = vsel %vm2314_vm13, 7, %v3481_v0  ;;  %v6110_v57 = vsel %vm2362_vm15, %v3497_v11, %v3957_v20  ;;  %v7029_v0 = vld [vmem:[#allocation17_spill] sm:$0xff]  ;;  %vm6142_vm15 = vmand %vm1739_vm14, %vm1755_vm4 }
 0x233   : > { %7023 = vst [vmem:[#allocation82_spill] sm:$0xff] %v6098_v32  ;;  %7024 = vst [vmem:[#allocation83_spill] sm:$0xff] %v6100_v4  ;;  %v6112_v5 = vmul.f32 %v2250_v26, %v1941_v15  ;;  %v1151_v43 = vmul.f32 %v4109_v1, %v6083_v58  ;;  %v1155_v9 = vand.u32 2147483648, %v6083_v58  ;;  %v1818_v33 = vmax.f32 %v1802_v52, 0.0  ;;  %v7030_v52 = vld [vmem:[#allocation28_spill] sm:$0xff] }
 0x234   : > { %7025 = vst [vmem:[#allocation84_spill] sm:$0xff] %v6102_v23  ;;  %7026 = vst [vmem:[#allocation85_spill] sm:$0xff] %v6104_v25  ;;  %v3449_v47 = vadd.f32 -1.0, %v2058_v35  ;;  %v7028_v41 = vsel %vm5843_vm10, 0.0, %v5661_v16  ;;  %v999_v39 = vmul.f32 %v4787_v2, %v4787_v2  ;;  %v1015_v20 = vmul.f32 %v7029_v0, %v7029_v0  ;;  %v7032_v35 = vld [vmem:[#allocation24_spill] sm:$0xff] }
 0x235   : > { %7027 = vst [vmem:[#allocation86_spill] sm:$0xff] %v6112_v5  ;;  %v2031_v60 = vmul.f32 0.2546479, %v7028_v41  ;;  %v1153_v26 = vsel %vm1152_vm6, %v6083_v58, %v1151_v43  ;;  %vm1154_vm13 = vcmp.eq.f32.partialorder %v6083_v58, 0.0  ;;  %v1834_v15 = vmul.f32 %v1818_v33, %v1818_v33 }
 0x236   : > { %vm7031_vm11 = vnez %v7030_v52  ;;  %v2090_v16 = vmul.f32 0.5, %v3449_v47  ;;  %v1156_v40 = vsel %vm1154_vm13, %v1155_v9, %v1153_v26  ;;  %v1031_v49 = vadd.f32 %v1015_v20, %v999_v39  ;;  %v1925_v52 = vpop.permute.xlu0 %1924 }
 0x237   : > { %v7033_v21 = vsel %vm7031_vm11, 0.0, %v7032_v35  ;;  %v2111_v55 = vadd.f32 1.0, %v2031_v60  ;;  %vm7034_vm10 = vcmask 64512   ;;  %v1966_v1 = vadd.f32 %v1965_v22, %v1964_v6 }
 0x238   : > { %v2028_v11 = vmul.f32 0.2546479, %v7033_v21  ;;  %v1967_v2 = vsel %vm7034_vm10, %v5931_v31, 0.0  ;;  %v1999_v41 = vmul.f32 2.0, %v1156_v40  ;;  %v2170_v25 = vfloor.f32 %v2090_v16  ;;  %vm7044_vm13 = vmmov %vm7034_vm10 }
 0x239   : > { %v1850_v43 = vmul.f32 %v1834_v15, %v1818_v33  ;;  %v2127_v4 = vmul.f32 10.0, %v2111_v55  ;;  %v6134_v58 = vadd.f32 1e-09, %v1031_v49  ;;  %v1799_v32 = vsub.f32 1.0, %v1031_v49 }
 0x23a   : > { %v2108_v0 = vadd.f32 1.0, %v2028_v11  ;;  %v3438_v23 = vadd.f32 -1.0, %v1999_v41  ;;  %v1017_v9 = vmul.f32 %v6902_v13, %v6902_v13  ;;  %v2202_v6 = vsub.f32 %v2090_v16, %v2170_v25 }
 0x23b   : > { %v3924_v22 = vtrunc.f32 %v2170_v25  ;;  %v3470_v33 = vadd.f32 -1.0, %v2127_v4  ;;  %4110 = vrsqrt.f32 %v6134_v58  ;;  %v6150_v39 = vadd.f32 %v1967_v2, %v1966_v1 }
 0x23c   : > { %v2124_v35 = vmul.f32 10.0, %v2108_v0  ;;  %v2047_v60 = vadd.f32 1.0, %v3438_v23  ;;  %v1001_v13 = vmul.f32 %v6887_v7, %v6887_v7  ;;  %v2218_v20 = vsub.f32 1.0, %v2202_v6 }
 0x23d   : > { %v3925_v26 = vcvt.f32.s32 %v3924_v22  ;;  %v2159_v15 = vmul.f32 0.5, %v3470_v33  ;;  %v6154_v21 = vmul.f32 %v1925_v52, %v1850_v43  ;;  %v1815_v25 = vmax.f32 %v1799_v32, 0.0 }
 0x23e   : > { %v2063_v11 = vmul.f32 4.0, %v2047_v60  ;;  %v3467_v4 = vadd.f32 -1.0, %v2124_v35  ;;  %v6156_v16 = vadd.f32 %v1017_v9, %v1001_v13  ;;  %vm1131_vm8 = vcmp.eq.f32.partialorder %v6134_v58, inf }
 0x23f   : > { %v2282_v40 = vadd.s32 1, %v3925_v26  ;;  %vm2410_vm6 = vcmp.eq.s32.totalorder %v3925_v26, 0  ;;  %vm2490_vm0 = vcmp.eq.s32.totalorder %v3925_v26, 1  ;;  %vm2570_vm5 = vcmp.eq.s32.totalorder %v3925_v26, 2 }
 0x240   : > { %v2426_v23 = vsel %vm2410_vm6, %v2218_v20, 0.0  ;;  %v2506_v55 = vsel %vm2490_vm0, %v2218_v20, 0.0  ;;  %v2586_v49 = vsel %vm2570_vm5, %v2218_v20, 0.0  ;;  %vm2650_vm7 = vcmp.eq.s32.totalorder %v3925_v26, 3 }
 0x241   : > { %vm2442_vm4 = vcmp.eq.s32.totalorder %v2282_v40, 0  ;;  %vm2522_vm12 = vcmp.eq.s32.totalorder %v2282_v40, 1  ;;  %vm2602_vm2 = vcmp.eq.s32.totalorder %v2282_v40, 2  ;;  %v2666_v7 = vsel %vm2650_vm7, %v2218_v20, 0.0 }
 0x242   : > { %v2458_v2 = vsel %vm2442_vm4, %v2202_v6, 0.0  ;;  %v2538_v1 = vsel %vm2522_vm12, %v2202_v6, 0.0  ;;  %v2618_v32 = vsel %vm2602_vm2, %v2202_v6, 0.0  ;;  %vm2682_vm1 = vcmp.eq.s32.totalorder %v2282_v40, 3 }
 0x243   : > { %vm1133_vm3 = vcmp.eq.f32.partialorder %v6134_v58, 0.0  ;;  %v6160_v41 = vadd.f32 %v2458_v2, %v2426_v23  ;;  %v6162_v0 = vadd.f32 %v2538_v1, %v2506_v55  ;;  %v6164_v43 = vadd.f32 %v2618_v32, %v2586_v49 }
 0x244   : > { %v2698_v52 = vsel %vm2682_vm1, %v2202_v6, 0.0  ;;  %v3454_v9 = vadd.f32 -1.0, %v2063_v11  ;;  %v2191_v22 = vfloor.f32 %v2159_v15  ;;  %v1831_v33 = vmul.f32 %v1815_v25, %v1815_v25  ;;  %v1910_v6 = vpop.permute.xlu1 %1909 }
 0x245   : > { %7037 = vst [vmem:[#allocation17_spill] sm:$0xff] %v6162_v0  ;;  %v6166_v35 = vadd.f32 %v2698_v52, %v2666_v7  ;;  %v4111_v60 = vpop.eup %4110  ;;  %v1134_v13 = vand.u32 2147483648, %v6134_v58  ;;  %v2156_v20 = vmul.f32 0.5, %v3467_v4  ;;  %v6170_v26 = vadd.f32 1e-09, %v6156_v16 }
 0x246   : > { %v2095_v23 = vmul.f32 0.5, %v3454_v9  ;;  %v2239_v55 = vsub.f32 %v2159_v15, %v2191_v22  ;;  %v3966_v2 = vtrunc.f32 %v2191_v22  ;;  %v1130_v49 = vmul.f32 %v4111_v60, %v6134_v58 }
 0x247   : > { %7038 = vst [vmem:[#allocation28_spill] sm:$0xff] %v6166_v35  ;;  %v1847_v7 = vmul.f32 %v1831_v33, %v1815_v25  ;;  %v2188_v1 = vfloor.f32 %v2156_v20  ;;  %4112 = vrsqrt.f32 %v6170_v26  ;;  %v7039_v11 = vsel %vm5640_vm9, 0.0, %v5554_v62 }
 0x248   : > { %v6179_v4 = vmul.f32 0.2546479, %v7039_v11  ;;  %v2175_v32 = vfloor.f32 %v2095_v23  ;;  %v2255_v52 = vsub.f32 1.0, %v2239_v55  ;;  %v3967_v47 = vcvt.f32.s32 %v3966_v2 }
 0x249   : > { %v6182_v9 = vmul.f32 %v2239_v55, %v6154_v21  ;;  %v1132_v15 = vsel %vm1131_vm8, %v6134_v58, %v1130_v49  ;;  %v2236_v25 = vsub.f32 %v2156_v20, %v2188_v1  ;;  %v3960_v22 = vtrunc.f32 %v2188_v1 }
 0x24a   : > { %v1943_v33 = vmul.f32 %v1910_v6, %v1847_v7  ;;  %v2207_v60 = vsub.f32 %v2095_v23, %v2175_v32  ;;  %v3934_v40 = vtrunc.f32 %v2175_v32  ;;  %vm2319_vm14 = vcmp.eq.s32.totalorder %v3967_v47, 0 }
 0x24b   : > { %7040 = vst [vmem:[#allocation24_spill] sm:$0xff] %v6182_v9  ;;  %v3486_v59 = vadd.s32 4294967295, %v3967_v47  ;;  %vm2367_vm9 = vcmp.ge.s32.totalorder %v3967_v47, 8  ;;  %v3502_v62 = vadd.s32 4294967288, %v3967_v47  ;;  %v6188_v11 = vmul.f32 %v2255_v52, %v6154_v21 }
 0x24c   : > { %v1135_v55 = vsel %vm1133_vm3, %v1134_v13, %v1132_v15  ;;  %v2223_v2 = vsub.f32 1.0, %v2207_v60  ;;  %v3935_v35 = vcvt.f32.s32 %v3934_v40  ;;  %v2252_v6 = vsub.f32 1.0, %v2236_v25 }
 0x24d   : > { %7041 = vst [vmem:[#allocation87_spill] sm:$0xff] %v6188_v11  ;;  %v6192_v0 = vsel %vm2319_vm14, 7, %v3486_v59  ;;  %v1996_v49 = vmul.f32 2.0, %v1135_v55  ;;  %v6194_v20 = vsel %vm2367_vm9, %v3502_v62, %v3967_v47  ;;  %v3961_v23 = vcvt.f32.s32 %v3960_v22  ;;  %vm7053_vm14 = vmmov %vm7044_vm13 }
 0x24e   : > { %7042 = vst [vmem:[#allocation88_spill] sm:$0xff] %v6192_v0  ;;  %7043 = vst [vmem:[#allocation89_spill] sm:$0xff] %v6194_v20  ;;  %v1969_v7 = vsel %vm7044_vm13, %v1943_v33, 0.0  ;;  %v2287_v1 = vadd.s32 1, %v3935_v35  ;;  %vm2415_vm11 = vcmp.eq.s32.totalorder %v3935_v35, 0  ;;  %vm2495_vm10 = vcmp.eq.s32.totalorder %v3935_v35, 1 }
 0x24f   : > { %vm2575_vm6 = vcmp.eq.s32.totalorder %v3935_v35, 2  ;;  %v2431_v32 = vsel %vm2415_vm11, %v2223_v2, 0.0  ;;  %v2511_v52 = vsel %vm2495_vm10, %v2223_v2, 0.0  ;;  %vm2655_vm0 = vcmp.eq.s32.totalorder %v3935_v35, 3  ;;  %vm7055_vm9 = vmmov %vm7044_vm13 }
 0x250   : > { %v2591_v9 = vsel %vm2575_vm6, %v2223_v2, 0.0  ;;  %vm2447_vm5 = vcmp.eq.s32.totalorder %v2287_v1, 0  ;;  %vm2527_vm7 = vcmp.eq.s32.totalorder %v2287_v1, 1  ;;  %vm2607_vm8 = vcmp.eq.s32.totalorder %v2287_v1, 2 }
 0x251   : > { %v2671_v58 = vsel %vm2655_vm0, %v2223_v2, 0.0  ;;  %v4113_v13 = vpop.eup %4112  ;;  %v2463_v40 = vsel %vm2447_vm5, %v2207_v60, 0.0  ;;  %v2543_v47 = vsel %vm2527_vm7, %v2207_v60, 0.0  ;;  %v2623_v15 = vsel %vm2607_vm8, %v2207_v60, 0.0 }
 0x252   : > { %vm2687_vm4 = vcmp.eq.s32.totalorder %v2287_v1, 3  ;;  %v6197_v22 = vadd.f32 %v2463_v40, %v2431_v32  ;;  %v6199_v59 = vadd.f32 %v2543_v47, %v2511_v52  ;;  %v6201_v62 = vadd.f32 %v2623_v15, %v2591_v9 }
 0x253   : > { %v2703_v55 = vsel %vm2687_vm4, %v2207_v60, 0.0  ;;  %v3435_v11 = vadd.f32 -1.0, %v1996_v49  ;;  %vm2316_vm12 = vcmp.eq.s32.totalorder %v3961_v23, 0  ;;  %v3483_v35 = vadd.s32 4294967295, %v3961_v23 }
 0x254   : > { %7045 = vst [vmem:[#allocation90_spill] sm:$0xff] %v6197_v22  ;;  %7046 = vst [vmem:[#allocation91_spill] sm:$0xff] %v6199_v59  ;;  %v6203_v20 = vadd.f32 %v2703_v55, %v2671_v58  ;;  %vm2364_vm2 = vcmp.ge.s32.totalorder %v3961_v23, 8  ;;  %v3499_v0 = vadd.s32 4294967288, %v3961_v23  ;;  %v6205_v2 = vmul.f32 %v2252_v6, %v1943_v33 }
 0x255   : > { %7047 = vst [vmem:[#allocation92_spill] sm:$0xff] %v6201_v62  ;;  %vm1145_vm1 = vcmp.eq.f32.partialorder %v6170_v26, inf  ;;  %v2044_v3 = vadd.f32 1.0, %v3435_v11  ;;  %v6208_v1 = vsel %vm2316_vm12, 7, %v3483_v35  ;;  %v6210_v32 = vmul.f32 %v2236_v25, %v1943_v33 }
 0x256   : > { %7048 = vst [vmem:[#allocation93_spill] sm:$0xff] %v6203_v20  ;;  %7049 = vst [vmem:[#allocation94_spill] sm:$0xff] %v6205_v2  ;;  %v1144_v9 = vmul.f32 %v4113_v13, %v6170_v26  ;;  %v6213_v52 = vsel %vm2364_vm2, %v3499_v0, %v3961_v23  ;;  %v1970_v60 = vadd.f32 %v1969_v7, %v6150_v39  ;;  %v1148_v49 = vand.u32 2147483648, %v6170_v26 }
 0x257   : > { %7050 = vst [vmem:[#allocation95_spill] sm:$0xff] %v6208_v1  ;;  %v7051_v58 = vsub.f32 1.0, %v6156_v16  ;;  %v2060_v6 = vmul.f32 4.0, %v2044_v3  ;;  %vm1147_vm3 = vcmp.eq.f32.partialorder %v6170_v26, 0.0  ;;  %v2110_v11 = vadd.f32 1.0, %v6179_v4  ;;  %v1920_v16 = vpop.permute.xlu1 %1919 }
 0x258   : > { %v1146_v47 = vsel %vm1145_vm1, %v6170_v26, %v1144_v9  ;;  %v1003_v0 = vmul.f32 %v6956_v48, %v6956_v48  ;;  %v1019_v39 = vmul.f32 %v7008_v12, %v7008_v12  ;;  %v7052_v3 = vsel %vm6142_vm15, 0.0, %v6043_v19  ;;  %vm7054_vm15 = vmmov %vm7044_vm13 }
 0x259   : > { %v1817_v40 = vmax.f32 %v7051_v58, 0.0  ;;  %v1149_v25 = vsel %vm1147_vm3, %v1148_v49, %v1146_v47  ;;  %v3451_v23 = vadd.f32 -1.0, %v2060_v6  ;;  %v2126_v13 = vmul.f32 10.0, %v2110_v11 }
 0x25a   : > { %v1998_v7 = vmul.f32 2.0, %v1149_v25  ;;  %v2032_v15 = vmul.f32 0.2546479, %v7052_v3  ;;  %v1971_v26 = vsel %vm7053_vm14, %v6050_v18, 0.0  ;;  %v1035_v55 = vadd.f32 %v1019_v39, %v1003_v0 }
 0x25b   : > { %v1833_v33 = vmul.f32 %v1817_v40, %v1817_v40  ;;  %v2092_v35 = vmul.f32 0.5, %v3451_v23  ;;  %v3469_v48 = vadd.f32 -1.0, %v2126_v13  ;;  %v1972_v58 = vadd.f32 %v1971_v26, %v1970_v60 }
 0x25c   : > { %v3437_v9 = vadd.f32 -1.0, %v1998_v7  ;;  %v2112_v49 = vadd.f32 1.0, %v2032_v15  ;;  %v6232_v6 = vadd.f32 1e-09, %v1035_v55  ;;  %v1803_v47 = vsub.f32 1.0, %v1035_v55 }
 0x25d   : > { %v1849_v4 = vmul.f32 %v1833_v33, %v1817_v40  ;;  %v2172_v11 = vfloor.f32 %v2092_v35  ;;  %v2158_v31 = vmul.f32 0.5, %v3469_v48  ;;  %v1975_v39 = vsel %vm7055_vm9, %v6154_v21, 0.0 }
 0x25e   : > { %v2046_v25 = vadd.f32 1.0, %v3437_v9  ;;  %v2128_v20 = vmul.f32 10.0, %v2112_v49  ;;  %4114 = vrsqrt.f32 %v6232_v6  ;;  %v1819_v3 = vmax.f32 %v1803_v47, 0.0 }
 0x25f   : > { %v1945_v12 = vmul.f32 %v1920_v16, %v1849_v4  ;;  %v2204_v18 = vsub.f32 %v2092_v35, %v2172_v11  ;;  %v3928_v40 = vtrunc.f32 %v2172_v11  ;;  %v2190_v0 = vfloor.f32 %v2158_v31 }
 0x260   : > { %v2062_v33 = vmul.f32 4.0, %v2046_v25  ;;  %v3471_v23 = vadd.f32 -1.0, %v2128_v20  ;;  %v1162_v16 = vand.u32 2147483648, %v6232_v6  ;;  %vm1159_vm13 = vcmp.eq.f32.partialorder %v6232_v6, inf }
 0x261   : > { %v1973_v19 = vsel %vm7054_vm15, %v1945_v12, 0.0  ;;  %v2220_v7 = vsub.f32 1.0, %v2204_v18  ;;  %v3929_v13 = vcvt.f32.s32 %v3928_v40  ;;  %v2238_v26 = vsub.f32 %v2158_v31, %v2190_v0 }
 0x262   : > { %v1974_v60 = vadd.f32 %v1973_v19, %v1972_v58  ;;  %v3453_v15 = vadd.f32 -1.0, %v2062_v33  ;;  %v3964_v4 = vtrunc.f32 %v2190_v0  ;;  %v2160_v55 = vmul.f32 0.5, %v3471_v23 }
 0x263   : > { %v2284_v35 = vadd.s32 1, %v3929_v13  ;;  %vm2412_vm11 = vcmp.eq.s32.totalorder %v3929_v13, 0  ;;  %vm2492_vm10 = vcmp.eq.s32.totalorder %v3929_v13, 1  ;;  %vm2572_vm6 = vcmp.eq.s32.totalorder %v3929_v13, 2 }
 0x264   : > { %vm1161_vm0 = vcmp.eq.f32.partialorder %v6232_v6, 0.0  ;;  %v2428_v21 = vsel %vm2412_vm11, %v2220_v7, 0.0  ;;  %v2508_v9 = vsel %vm2492_vm10, %v2220_v7, 0.0  ;;  %v2588_v20 = vsel %vm2572_vm6, %v2220_v7, 0.0 }
 0x265   : > { %vm2652_vm5 = vcmp.eq.s32.totalorder %v3929_v13, 3  ;;  %vm2444_vm7 = vcmp.eq.s32.totalorder %v2284_v35, 0  ;;  %vm2524_vm8 = vcmp.eq.s32.totalorder %v2284_v35, 1  ;;  %vm2604_vm4 = vcmp.eq.s32.totalorder %v2284_v35, 2 }
 0x266   : > { %v2668_v48 = vsel %vm2652_vm5, %v2220_v7, 0.0  ;;  %v2460_v49 = vsel %vm2444_vm7, %v2204_v18, 0.0  ;;  %v2540_v58 = vsel %vm2524_vm8, %v2204_v18, 0.0  ;;  %v2620_v47 = vsel %vm2604_vm4, %v2204_v18, 0.0 }
 0x267   : > { %vm2684_vm12 = vcmp.eq.s32.totalorder %v2284_v35, 3  ;;  %v6241_v11 = vadd.f32 %v2460_v49, %v2428_v21  ;;  %v6243_v25 = vadd.f32 %v2540_v58, %v2508_v9  ;;  %v6245_v31 = vadd.f32 %v2620_v47, %v2588_v20  ;;  %v1930_v58 = vpop.permute.xlu1 %1929 }
 0x268   : > { %v2700_v19 = vsel %vm2684_vm12, %v2204_v18, 0.0  ;;  %v4115_v40 = vpop.eup %4114  ;;  %v2094_v0 = vmul.f32 0.5, %v3453_v15  ;;  %v2254_v23 = vsub.f32 1.0, %v2238_v26  ;;  %v3965_v13 = vcvt.f32.s32 %v3964_v4 }
 0x269   : > { %7056 = vst [vmem:[#allocation96_spill] sm:$0xff] %v6241_v11  ;;  %7057 = vst [vmem:[#allocation97_spill] sm:$0xff] %v6243_v25  ;;  %v6247_v33 = vadd.f32 %v2700_v19, %v2668_v48  ;;  %v6249_v59 = vmul.f32 %v2238_v26, %v1945_v12  ;;  %v1158_v7 = vmul.f32 %v4115_v40, %v6232_v6  ;;  %v2192_v22 = vfloor.f32 %v2160_v55 }
 0x26a   : > { %7058 = vst [vmem:[#allocation98_spill] sm:$0xff] %v6245_v31  ;;  %v1835_v62 = vmul.f32 %v1819_v3, %v1819_v3  ;;  %v2174_v35 = vfloor.f32 %v2094_v0  ;;  %vm2318_vm2 = vcmp.eq.s32.totalorder %v3965_v13, 0  ;;  %v3485_v21 = vadd.s32 4294967295, %v3965_v13 }
 0x26b   : > { %7059 = vst [vmem:[#allocation99_spill] sm:$0xff] %v6247_v33  ;;  %7060 = vst [vmem:[#allocation100_spill] sm:$0xff] %v6249_v59  ;;  %vm2366_vm1 = vcmp.ge.s32.totalorder %v3965_v13, 8  ;;  %v3501_v9 = vadd.s32 4294967288, %v3965_v13  ;;  %v6252_v20 = vmul.f32 %v2254_v23, %v1945_v12  ;;  %v1160_v18 = vsel %vm1159_vm13, %v6232_v6, %v1158_v7 }
 0x26c   : > { %v2240_v15 = vsub.f32 %v2160_v55, %v2192_v22  ;;  %v2206_v48 = vsub.f32 %v2094_v0, %v2174_v35  ;;  %v3932_v4 = vtrunc.f32 %v2174_v35  ;;  %v6257_v26 = vsel %vm2318_vm2, 7, %v3485_v21 }
 0x26d   : > { %v1163_v49 = vsel %vm1161_vm0, %v1162_v16, %v1160_v18  ;;  %v6261_v47 = vsel %vm2366_vm1, %v3501_v9, %v3965_v13  ;;  %v1851_v19 = vmul.f32 %v1835_v62, %v1819_v3  ;;  %v3968_v33 = vtrunc.f32 %v2192_v22 }
 0x26e   : > { %v2000_v40 = vmul.f32 2.0, %v1163_v49  ;;  %v2222_v12 = vsub.f32 1.0, %v2206_v48  ;;  %v3933_v23 = vcvt.f32.s32 %v3932_v4  ;;  %v1976_v25 = vadd.f32 %v1975_v39, %v1974_v60 }
 0x26f   : > { %v2256_v31 = vsub.f32 1.0, %v2240_v15  ;;  %v3969_v7 = vcvt.f32.s32 %v3968_v33  ;;  %v1947_v55 = vmul.f32 %v1930_v58, %v1851_v19  ;;  %vm7063_vm7 = vcmask 64512  }
 0x270   : > { %v3439_v59 = vadd.f32 -1.0, %v2000_v40  ;;  %v2286_v0 = vadd.s32 1, %v3933_v23  ;;  %vm2414_vm3 = vcmp.eq.s32.totalorder %v3933_v23, 0  ;;  %vm2494_vm14 = vcmp.eq.s32.totalorder %v3933_v23, 1 }
 0x271   : > { %vm2574_vm15 = vcmp.eq.s32.totalorder %v3933_v23, 2  ;;  %v2430_v35 = vsel %vm2414_vm3, %v2222_v12, 0.0  ;;  %v2510_v6 = vsel %vm2494_vm14, %v2222_v12, 0.0  ;;  %vm2654_vm9 = vcmp.eq.s32.totalorder %v3933_v23, 3 }
 0x272   : > { %v2590_v16 = vsel %vm2574_vm15, %v2222_v12, 0.0  ;;  %vm2446_vm13 = vcmp.eq.s32.totalorder %v2286_v0, 0  ;;  %vm2526_vm11 = vcmp.eq.s32.totalorder %v2286_v0, 1  ;;  %vm2606_vm10 = vcmp.eq.s32.totalorder %v2286_v0, 2 }
 0x273   : > { %v2670_v62 = vsel %vm2654_vm9, %v2222_v12, 0.0  ;;  %v2462_v22 = vsel %vm2446_vm13, %v2206_v48, 0.0  ;;  %v2542_v3 = vsel %vm2526_vm11, %v2206_v48, 0.0  ;;  %v2622_v13 = vsel %vm2606_vm10, %v2206_v48, 0.0 }
 0x274   : > { %vm2686_vm6 = vcmp.eq.s32.totalorder %v2286_v0, 3  ;;  %v6263_v39 = vadd.f32 %v2462_v22, %v2430_v35  ;;  %v6265_v60 = vadd.f32 %v2542_v3, %v2510_v6  ;;  %v6267_v33 = vadd.f32 %v2622_v13, %v2590_v16 }
 0x275   : > { %v2702_v21 = vsel %vm2686_vm6, %v2206_v48, 0.0  ;;  %v2048_v18 = vadd.f32 1.0, %v3439_v59  ;;  %vm2320_vm0 = vcmp.eq.s32.totalorder %v3969_v7, 0  ;;  %v3487_v4 = vadd.s32 4294967295, %v3969_v7 }
 0x276   : > { %7061 = vst [vmem:[#allocation101_spill] sm:$0xff] %v6265_v60  ;;  %v6269_v9 = vadd.f32 %v2702_v21, %v2670_v62  ;;  %vm2368_vm5 = vcmp.ge.s32.totalorder %v3969_v7, 8  ;;  %v3503_v49 = vadd.s32 4294967288, %v3969_v7  ;;  %v1977_v58 = vsel %vm7063_vm7, %v1947_v55, 0.0 }
 0x277   : > { %v6272_v19 = vmul.f32 %v2256_v31, %v1947_v55  ;;  %v2064_v40 = vmul.f32 4.0, %v2048_v18  ;;  %v6274_v12 = vsel %vm2320_vm0, 7, %v3487_v4  ;;  %v1978_v23 = vadd.f32 %v1977_v58, %v1976_v25 }
 0x278   : > { %7062 = vst [vmem:[#allocation102_spill] sm:$0xff] %v6269_v9  ;;  %7065 = vst [vmem:[#allocation104_spill] sm:$0xff] %v6274_v12  ;;  %v6276_v0 = vmul.f32 %v2240_v15, %v1947_v55  ;;  %v6278_v35 = vsel %vm2368_vm5, %v3503_v49, %v3969_v7 }
 0x279   : > { %7064 = vst [vmem:[#allocation103_spill] sm:$0xff] %v6272_v19  ;;  %v3455_v48 = vadd.f32 -1.0, %v2064_v40  ;;  %v1979_v6 = vrot.slane %v1978_v23, 4 }
 0x27a   : > { %7066 = vst [vmem:[#allocation105_spill] sm:$0xff] %v6276_v0 }
 0x27b   : > { %v2096_v16 = vmul.f32 0.5, %v3455_v48  ;;  %v1980_v59 = vadd.f32 %v1979_v6, %v1978_v23 }
 0x27d   : > { %v2176_v62 = vfloor.f32 %v2096_v16  ;;  %v1981_v22 = vrot.slane %v1980_v59, 2 }
 0x27f   : > { %v2208_v3 = vsub.f32 %v2096_v16, %v2176_v62  ;;  %v3936_v13 = vtrunc.f32 %v2176_v62  ;;  %v1982_v21 = vadd.f32 %v1981_v22, %v1980_v59  ;;  %v6291_v62 = vmov 0.0  }
 0x281   : > { %v2224_v9 = vsub.f32 1.0, %v2208_v3  ;;  %v3937_v31 = vcvt.f32.s32 %v3936_v13  ;;  %v1983_v60 = vrot.slane %v1982_v21, 1 }
 0x283   : > { %v2288_v18 = vadd.s32 1, %v3937_v31  ;;  %vm2416_vm8 = vcmp.eq.s32.totalorder %v3937_v31, 0  ;;  %vm2496_vm4 = vcmp.eq.s32.totalorder %v3937_v31, 1  ;;  %vm2576_vm12 = vcmp.eq.s32.totalorder %v3937_v31, 2 }
 0x284   : > { %v2432_v25 = vsel %vm2416_vm8, %v2224_v9, 0.0  ;;  %v2512_v15 = vsel %vm2496_vm4, %v2224_v9, 0.0  ;;  %v2592_v7 = vsel %vm2576_vm12, %v2224_v9, 0.0  ;;  %vm2656_vm2 = vcmp.eq.s32.totalorder %v3937_v31, 3 }
 0x285   : > { %vm2448_vm1 = vcmp.eq.s32.totalorder %v2288_v18, 0  ;;  %vm2528_vm3 = vcmp.eq.s32.totalorder %v2288_v18, 1  ;;  %vm2608_vm14 = vcmp.eq.s32.totalorder %v2288_v18, 2  ;;  %v2672_v55 = vsel %vm2656_vm2, %v2224_v9, 0.0 }
 0x286   : > { %v2464_v4 = vsel %vm2448_vm1, %v2208_v3, 0.0  ;;  %v2544_v49 = vsel %vm2528_vm3, %v2208_v3, 0.0  ;;  %v2624_v58 = vsel %vm2608_vm14, %v2208_v3, 0.0  ;;  %vm2688_vm15 = vcmp.eq.s32.totalorder %v2288_v18, 3 }
 0x287   : > { %v6280_v40 = vadd.f32 %v2464_v4, %v2432_v25  ;;  %v6282_v23 = vadd.f32 %v2544_v49, %v2512_v15  ;;  %v6284_v48 = vadd.f32 %v2624_v58, %v2592_v7  ;;  %v2704_v6 = vsel %vm2688_vm15, %v2208_v3, 0.0 }
 0x288   : > { %v6286_v16 = vadd.f32 %v2704_v6, %v2672_v55  ;;  %v6288_v59 = vadd.f32 %v1983_v60, %v1982_v21 }
 0x28a   : > { %7067 = vst [vmem:[#allocation106_spill] sm:$0xff] %v6286_v16  ;;  %7068 = vst [vmem:[#allocation107_spill] sm:$0xff] %v6288_v59 }
 0x28b LB: >> { %7069 = vst [vmem:[#allocation108_spill] sm:$0xff] %v4208_v62  ;;  %v6772_v9 = vmov 0.0|0.0   ;;  %v6304_v60 = vstv %s4212_s15  ;;  %vm4217_vm9 = vmmov 0   ;;  %v6770_v22 = vmov 0.0   ;;  %v7070_v3 = vld [vmem:[#allocation21_spill] sm:$0xff]  ;;  %v7071_v13 = vld [vmem:[#allocation27_spill] sm:$0xff]  ;;  %s4212_s15 = sphi %s6293_s15, %s2758_s15   ;;  %v4208_v62 = vphi %v6291_v62, %v7171_v62  }
 0x28c   : >> { %3802 = vmatprep.subr.bf16.mxu1 %v6772_v9  ;;  %3850 = vmatprep.subr.bf16.mxu0 %v6772_v9  ;;  %vm2761_vm13 = vcmp.eq.s32.totalorder %v7070_v3, %v6304_v60  ;;  %vm2762_vm11 = vcmp.eq.s32.totalorder %v7071_v13, %v6304_v60  ;;  %v7072_v21 = vld [vmem:[#allocation16_spill] sm:$0xff]  ;;  %v7073_v31 = vld [vmem:[#allocation35_spill] sm:$0xff]  ;;  %v7074_v18 = vld [vmem:[#allocation34_spill] sm:$0xff]  ;;  %vm2766_vm12 = vcmp.eq.s32.totalorder %v5917_v36, %v6304_v60  ;;  %s3504_s16 = sshll.u32 %s4212_s15, 5  ;;  %s2758_s15 = sadd.s32 1, %s4212_s15  }
 0x28d   : >> { %3694 = vmatprep.mubr.msk.f32.mxu1 %vm4217_vm9, %v6770_v22  ;;  %3764 = vmatprep.mubr.msk.f32.mxu0 %vm4217_vm9, %v6770_v22  ;;  %vm2793_vm10 = vcmp.eq.s32.totalorder %v7072_v21, %v6304_v60  ;;  %vm2794_vm6 = vcmp.eq.s32.totalorder %v7073_v31, %v6304_v60  ;;  %v2777_v25 = vsel %vm2761_vm13, %v7074_v18, 0.0  ;;  %v7075_v15 = vld [vmem:[#allocation31_spill] sm:$0xff]  ;;  %v7076_v55 = vld [vmem:[#allocation29_spill] sm:$0xff]  ;;  %v7078_v14 = vld [vmem:[#allocation42_spill] sm:$0xff]  ;;  %vm2768_vm14 = vcmp.eq.s32.totalorder %v5998_v34, %v6304_v60  ;;  %s6525_s24 = scalar_lea.vmem [#allocation2], %s3504_s16  ;;  %p2755_p12 = scmp.ge.s32.totalorder %s2758_s15, 8  }
 0x28e   : >> { %v2778_v7 = vsel %vm2762_vm11, %v7075_v15, 0.0  ;;  %v2809_v4 = vsel %vm2793_vm10, %v7076_v55, 0.0  ;;  %v7077_v49 = vld [vmem:[#allocation15_spill] sm:$0xff]  ;;  %vm2763_vm0 = vcmp.eq.s32.totalorder %v7078_v14, %v6304_v60  ;;  %v7079_v13 = vld [vmem:[#allocation41_spill] sm:$0xff]  ;;  %v7080_v21 = vld [vmem:[#allocation10_spill] sm:$0xff]  ;;  %vm2769_vm11 = vcmp.eq.s32.totalorder %v5855_v56, %v6304_v60  ;;  %s3506_s25 = sshll.u32 (%p2755_p12), %s4196_s21, 7 }
 0x28f   : >> { %v2810_v58 = vsel %vm2794_vm6, %v7077_v49, 0.0  ;;  %v6322_v6 = vadd.f32 %v2809_v4, %v2777_v25  ;;  %vm2764_vm5 = vcmp.eq.s32.totalorder %v7079_v13, %v6304_v60  ;;  %v2779_v31 = vsel %vm2763_vm0, %v7080_v21, 0.0  ;;  %v7081_v22 = vld [vmem:[#allocation13_spill] sm:$0xff]  ;;  %v7082_v15 = vld [vmem:[#allocation43_spill] sm:$0xff]  ;;  %v7084_v25 = vld [vmem:[#allocation40_spill] sm:$0xff]  ;;  %s3245_s27 = sshll.u32 (%p2755_p12), %s317_s13, 4  ;;  %s6623_s8 = scalar_lea.hbm (%p2755_p12), %s6680_s5, %s3506_s25  ;;  %s6625_s27 = int_to_ptr.vmem [resolvable:$true] %s3245_s27 }
 0x290   : >> { %v6324_v3 = vadd.f32 %v2810_v58, %v2778_v7  ;;  %v2780_v18 = vsel %vm2764_vm5, %v7081_v22, 0.0  ;;  %vm2795_vm7 = vcmp.eq.s32.totalorder %v7082_v15, %v6304_v60  ;;  %v7083_v37 = vld [vmem:[#allocation55_spill] sm:$0xff]  ;;  %v7085_v55 = vld [vmem:[#allocation36_spill] sm:$0xff]  ;;  %v7086_v49 = vld [vmem:[#allocation9_spill] sm:$0xff]  ;;  %vm2770_vm10 = vcmp.eq.s32.totalorder %v6107_v61, %v6304_v60  ;;  %s3231_s21 = scalar_lea.sflag (%p2755_p12), [#allocation6], %s315_s7  ;;  %s4118_s14 = scalar_lea.vmem (%p2755_p12), %s6625_s27, 128 }
 0x291   : >> { %vm2796_vm8 = vcmp.eq.s32.totalorder %v7083_v37, %v6304_v60  ;;  %v2847_v7 = vmul.f32 %v6322_v6, %v7084_v25  ;;  %v3021_v58 = vmul.f32 %v6322_v6, %v7086_v49  ;;  %v7087_v13 = vld [vmem:[#allocation22_spill] sm:$0xff]  ;;  %v7088_v9 = vld [vmem:[#allocation12_spill] sm:$0xff]  ;;  %v7090_v15 = vld [vmem:[#allocation37_spill] sm:$0xff]  ;;  %vm2801_vm6 = vcmp.eq.s32.totalorder %v5858_v44, %v6304_v60  ;;  %p4119_p13 = scmp.ne.s32.totalorder (%p2755_p12), %s6625_s27, %s4118_s14  ;;  %s4219_s9 = smov (%p2755_p12), [#allocation5]  }
 0x292   : >> { %v2848_v4 = vmul.f32 %v6324_v3, %v7085_v55  ;;  %v3022_v21 = vmul.f32 %v6324_v3, %v7087_v13  ;;  %v2811_v22 = vsel %vm2795_vm7, %v7088_v9, 0.0  ;;  %v7089_v14 = vld [vmem:[#allocation18_spill] sm:$0xff]  ;;  %vm2765_vm4 = vcmp.eq.s32.totalorder %v7090_v15, %v6304_v60  ;;  %v7091_v49 = vld [vmem:[#allocation39_spill] sm:$0xff]  ;;  %v7094_v17 = vld [vmem:[#allocation65_spill] sm:$0xff]  ;;  %s4122_s10 = sshll.u32 (%p2755_p12), %s4219_s9, 4  ;;  %s4123_s10 = int_to_ptr.vmem [resolvable:$false] %s4122_s10 }
 0x293   : >> { %v2812_v59 = vsel %vm2796_vm8, %v7089_v14, 0.0  ;;  %v6350_v62 = vadd.f32 %v2811_v22, %v2779_v31  ;;  %v2781_v16 = vsel %vm2765_vm4, %v7091_v49, 0.0  ;;  %v7092_v28 = vld [vmem:[#allocation66_spill] sm:$0xff]  ;;  %vm2798_vm1 = vcmp.eq.s32.totalorder %v7094_v17, %v6304_v60  ;;  %v7095_v14 = vld [vmem:[#allocation47_spill] sm:$0xff]  ;;  %v7096_v30 = vld [vmem:[#allocation56_spill] sm:$0xff]  ;;  %p4120_p0 = pnand (%p2755_p12), %p4119_p13, %p4290_p4  ;;  %s4124_s11 = scalar_lea.vmem (%p2755_p12), %s4123_s10, 256 }
 0x294   : >> { %v3803_v25 = vpack.c.bf16 %v2848_v4, %v2847_v7  ;;  %v3851_v37 = vpack.c.bf16 %v3022_v21, %v3021_v58  ;;  %v6352_v55 = vadd.f32 %v2812_v59, %v2780_v18  ;;  %v2782_v13 = vsel %vm2766_vm12, %v7092_v28, 0.0  ;;  %v7093_v9 = vld [vmem:[#allocation14_spill] sm:$0xff]  ;;  %v7097_v59 = vld [vmem:[#allocation49_spill] sm:$0xff]  ;;  %v7100_v8 = vld [vmem:[#allocation60_spill] sm:$0xff]  ;;  %p4125_p2 = scmp.lt.s32.totalorder (%p2755_p12), %s6625_s27, %s4123_s10  ;;  %p4126_p3 = scmp.lt.s32.totalorder (%p2755_p12), %s4124_s11, %s4118_s14 }
 0x295   : >> { %vm2797_vm2 = vcmp.eq.s32.totalorder %v7093_v9, %v6304_v60  ;;  %v2849_v7 = vmul.f32 %v6350_v62, %v7095_v14  ;;  %v3023_v18 = vmul.f32 %v6350_v62, %v7097_v59  ;;  %v7098_v4 = vld [vmem:[#allocation26_spill] sm:$0xff]  ;;  %v7099_v21 = vmov 0.0|0.0   ;;  %v7103_v17 = vld [vmem:[#allocation23_spill] sm:$0xff]  ;;  %v7106_v24 = vld [vmem:[#allocation73_spill] sm:$0xff]  ;;  %p4121_p1 = pneg (%p2755_p12), %p4120_p0 }
 0x296   : >> { %3804 = vmatpush3.bf16.msra.mxu1 %v3803_v25  ;;  %3852 = vmatpush3.bf16.msra.mxu0 %v3851_v37  ;;  %v2850_v31 = vmul.f32 %v6352_v55, %v7096_v30  ;;  %v2813_v58 = vsel %vm2797_vm2, %v7098_v4, 0.0  ;;  %v3024_v22 = vmul.f32 %v6352_v55, %v5822_v50  ;;  %v2814_v37 = vsel %vm2798_vm1, %v7100_v8, 0.0  ;;  %v7101_v25 = vld [vmem:[#allocation51_spill] sm:$0xff]  ;;  %v7102_v14 = vld [vmem:[#allocation50_spill] sm:$0xff]  ;;  %v7104_v30 = vld [vmem:[#allocation44_spill] sm:$0xff]  ;;  %p4127_p5 = por (%p2755_p12), %p4126_p3, %p4125_p2 }
 0x297   : >> { %3805 = vmatprep.subr.bf16.mxu1 %v7099_v21  ;;  %3853 = vmatprep.subr.bf16.mxu0 %v7099_v21  ;;  %v6372_v15 = vadd.f32 %v2813_v58, %v2781_v16  ;;  %vm2767_vm3 = vcmp.eq.s32.totalorder %v7101_v25, %v6304_v60  ;;  %v6376_v9 = vadd.f32 %v2814_v37, %v2782_v13  ;;  %v2784_v16 = vsel %vm2768_vm14, %v5990_v63, 0.0  ;;  %v7108_v5 = vld [vmem:[#allocation86_spill] sm:$0xff]  ;;  %v7112_v1 = vld [vmem:[#allocation95_spill] sm:$0xff]  ;;  %v7119_v10 = vld [vmem:[#allocation80_spill] sm:$0xff] }
 0x298   : >> { %v3806_v49 = vpack.c.bf16 %v2850_v31, %v2849_v7  ;;  %v2783_v59 = vsel %vm2767_vm3, %v7102_v14, 0.0  ;;  %v3854_v4 = vpack.c.bf16 %v3024_v22, %v3023_v18  ;;  %v7105_v31 = vld [vmem:[#allocation52_spill] sm:$0xff]  ;;  %vm2800_vm13 = vcmp.eq.s32.totalorder %v7106_v24, %v6304_v60  ;;  %v7114_v2 = vld [vmem:[#allocation94_spill] sm:$0xff]  ;;  %v7130_v19 = vld [vmem:[#allocation103_spill] sm:$0xff]  ;;  %p4128_p6 = pnand (%p2755_p12), %p4127_p5, %p4121_p1 }
 0x299   : >> { %v2851_v28 = vmul.f32 %v6372_v15, %v7103_v17  ;;  %v3025_v8 = vmul.f32 %v6372_v15, %v7104_v30  ;;  %v2852_v7 = vmul.f32 %v6376_v9, %v5959_v53  ;;  %v3026_v13 = vmul.f32 %v6376_v9, %v5963_v42  ;;  %v7107_v17 = vld [vmem:[#allocation46_spill] sm:$0xff]  ;;  %v7122_v11 = vld [vmem:[#allocation96_spill] sm:$0xff]  ;;  %v7135_v0 = vld [vmem:[#allocation105_spill] sm:$0xff] }
 0x29a   : >> { %3807 = vmatpush3.bf16.msra.mxu1 %v3806_v49  ;;  %vm2799_vm15 = vcmp.eq.s32.totalorder %v7105_v31, %v6304_v60  ;;  %3855 = vmatpush3.bf16.msra.mxu0 %v3854_v4  ;;  %v2816_v18 = vsel %vm2800_vm13, %v5979_v45, 0.0  ;;  %v2785_v49 = vsel %vm2769_vm11, %v5833_v46, 0.0  ;;  %v2786_v14 = vsel %vm2770_vm10, %v7108_v5, 0.0  ;;  %v7115_v24 = vld [vmem:[#allocation70_spill] sm:$0xff]  ;;  %v7128_v12 = vld [vmem:[#allocation104_spill] sm:$0xff] }
 0x29b   : >> { %3808 = vmatprep.subr.bf16.mxu1 %v7099_v21  ;;  %v2815_v30 = vsel %vm2799_vm15, %v7107_v17, 0.0  ;;  %3856 = vmatprep.subr.bf16.mxu0 %v7099_v21  ;;  %v3809_v58 = vpack.c.bf16 %v2852_v7, %v2851_v28  ;;  %v3857_v22 = vpack.c.bf16 %v3026_v13, %v3025_v8  ;;  %v6404_v25 = vadd.f32 %v2816_v18, %v2784_v16  ;;  %v7109_v8 = vld [vmem:[#allocation53_spill] sm:$0xff]  ;;  %v7110_v7 = vld [vmem:[#allocation59_spill] sm:$0xff] }
 0x29c   : >> { %v6402_v37 = vadd.f32 %v2815_v30, %v2783_v59  ;;  %vm2802_vm0 = vcmp.eq.s32.totalorder %v6110_v57, %v6304_v60  ;;  %v2817_v13 = vsel %vm2801_vm6, %v7110_v7, 0.0  ;;  %v7111_v17 = vld [vmem:[#allocation69_spill] sm:$0xff]  ;;  %vm2772_vm7 = vcmp.eq.s32.totalorder %v7112_v1, %v6304_v60 }
 0x29d   : >> { %v2854_v28 = vmul.f32 %v6404_v25, %v6062_v54  ;;  %v3028_v16 = vmul.f32 %v6404_v25, %v6066_v27  ;;  %v2818_v31 = vsel %vm2802_vm0, %v6091_v38, 0.0  ;;  %vm2771_vm5 = vcmp.eq.s32.totalorder %v7111_v17, %v6304_v60  ;;  %v7116_v17 = vld [vmem:[#allocation61_spill] sm:$0xff] }
 0x29e   : >> { %3810 = vmatpush3.bf16.msra.mxu1 %v3809_v58  ;;  %v2853_v4 = vmul.f32 %v6402_v37, %v5803_v51  ;;  %v3027_v59 = vmul.f32 %v6402_v37, %v7109_v8  ;;  %3858 = vmatpush3.bf16.msra.mxu0 %v3857_v22  ;;  %v6428_v58 = vadd.f32 %v2817_v13, %v2785_v49  ;;  %v7113_v22 = vld [vmem:[#allocation68_spill] sm:$0xff]  ;;  %v2788_v7 = vsel %vm2772_vm7, %v7114_v2, 0.0 }
 0x29f   : >> { %3811 = vmatprep.subr.bf16.mxu1 %v7099_v21  ;;  %3859 = vmatprep.subr.bf16.mxu0 %v7099_v21  ;;  %v6430_v8 = vadd.f32 %v2818_v31, %v2786_v14  ;;  %v2787_v5 = vsel %vm2771_vm5, %v7113_v22, 0.0  ;;  %vm2803_vm8 = vcmp.eq.s32.totalorder %v7115_v24, %v6304_v60  ;;  %vm2804_vm4 = vcmp.eq.s32.totalorder %v6213_v52, %v6304_v60  ;;  %v7118_v24 = vld [vmem:[#allocation67_spill] sm:$0xff] }
 0x2a0   : >> { %v3812_v30 = vpack.c.bf16 %v2854_v28, %v2853_v4  ;;  %v3860_v18 = vpack.c.bf16 %v3028_v16, %v3027_v59  ;;  %v2855_v1 = vmul.f32 %v6428_v58, %v7116_v17  ;;  %v7117_v4 = vld [vmem:[#allocation63_spill] sm:$0xff]  ;;  %v2819_v59 = vsel %vm2803_vm8, %v7118_v24, 0.0  ;;  %v7121_v24 = vld [vmem:[#allocation25_spill] sm:$0xff] }
 0x2a1   : >> { %v2856_v49 = vmul.f32 %v6430_v8, %v6160_v41  ;;  %v3029_v14 = vmul.f32 %v6428_v58, %v7117_v4  ;;  %v3030_v28 = vmul.f32 %v6430_v8, %v6164_v43  ;;  %v2820_v16 = vsel %vm2804_vm4, %v6210_v32, 0.0  ;;  %v7120_v4 = vld [vmem:[#allocation81_spill] sm:$0xff] }
 0x2a2   : >> { %3813 = vmatpush3.bf16.msra.mxu1 %v3812_v30  ;;  %3861 = vmatpush3.bf16.msra.mxu0 %v3860_v18  ;;  %vm2773_vm12 = vcmp.eq.s32.totalorder %v7119_v10, %v6304_v60  ;;  %vm2774_vm2 = vcmp.eq.s32.totalorder %v6257_v26, %v6304_v60  ;;  %v6454_v30 = vadd.f32 %v2819_v59, %v2787_v5  ;;  %vm7172_vm10 = vcmask (%p2755_p12), 64512  }
 0x2a3   : >> { %3814 = vmatprep.subr.bf16.mxu1 %v7099_v21  ;;  %3862 = vmatprep.subr.bf16.mxu0 %v7099_v21  ;;  %v3815_v13 = vpack.c.bf16 %v2856_v49, %v2855_v1  ;;  %v3863_v31 = vpack.c.bf16 %v3030_v28, %v3029_v14  ;;  %v6456_v22 = vadd.f32 %v2820_v16, %v2788_v7  ;;  %v2789_v18 = vsel %vm2773_vm12, %v6071_v29, 0.0  ;;  %v7123_v1 = vld [vmem:[#allocation75_spill] sm:$0xff]  ;;  %v7124_v49 = vld [vmem:[#allocation98_spill] sm:$0xff]  ;;  %v7125_v28 = vld [vmem:[#allocation77_spill] sm:$0xff] }
 0x2a4   : >> { %v2790_v17 = vsel %vm2774_vm2, %v6252_v20, 0.0  ;;  %vm2805_vm1 = vcmp.eq.s32.totalorder %v7120_v4, %v6304_v60  ;;  %vm2806_vm3 = vcmp.eq.s32.totalorder %v6261_v47, %v6304_v60  ;;  %v2857_v2 = vmul.f32 %v6454_v30, %v7121_v24  ;;  %v7126_v16 = vld [vmem:[#allocation100_spill] sm:$0xff]  ;;  %vm7176_vm0 = vmmov (%p2755_p12), %vm7172_vm10 }
 0x2a5   : >> { %v2858_v5 = vmul.f32 %v6456_v22, %v7122_v11  ;;  %v3031_v7 = vmul.f32 %v6454_v30, %v7123_v1  ;;  %v3032_v14 = vmul.f32 %v6456_v22, %v7124_v49  ;;  %v2821_v59 = vsel %vm2805_vm1, %v7125_v28, 0.0 }
 0x2a6   : >> { %3816 = vmatpush3.bf16.msra.mxu1 %v3815_v13  ;;  %3864 = vmatpush3.bf16.msra.mxu0 %v3863_v31  ;;  %v2822_v4 = vsel %vm2806_vm3, %v7126_v16, 0.0  ;;  %v7127_v13 = vld [vmem:[#allocation88_spill] sm:$0xff]  ;;  %vm2776_vm15 = vcmp.eq.s32.totalorder %v7128_v12, %v6304_v60  ;;  %v6480_v10 = vadd.f32 %v2821_v59, %v2789_v18  ;;  %v7129_v31 = vld [vmem:[#allocation87_spill] sm:$0xff]  ;;  %v7131_v16 = vld [vmem:[#allocation89_spill] sm:$0xff]  ;;  %vm2808_vm11 = vcmp.eq.s32.totalorder %v6278_v35, %v6304_v60 }
 0x2a7   : >> { %3817 = vmatprep.subr.bf16.mxu1 %v7099_v21  ;;  %vm2775_vm14 = vcmp.eq.s32.totalorder %v7127_v13, %v6304_v60  ;;  %3865 = vmatprep.subr.bf16.mxu0 %v7099_v21  ;;  %v3818_v24 = vpack.c.bf16 %v2858_v5, %v2857_v2  ;;  %v3866_v1 = vpack.c.bf16 %v3032_v14, %v3031_v7  ;;  %v2792_v28 = vsel %vm2776_vm15, %v7130_v19, 0.0  ;;  %v7132_v13 = vld [vmem:[#allocation82_spill] sm:$0xff]  ;;  %v7134_v14 = vld [vmem:[#allocation24_spill] sm:$0xff] }
 0x2a8   : >> { %v6482_v49 = vadd.f32 %v2822_v4, %v2790_v17  ;;  %v2791_v11 = vsel %vm2775_vm14, %v7129_v31, 0.0  ;;  %vm2807_vm13 = vcmp.eq.s32.totalorder %v7131_v16, %v6304_v60  ;;  %v2859_v2 = vmul.f32 %v6480_v10, %v7132_v13  ;;  %v7133_v17 = vld [vmem:[#allocation84_spill] sm:$0xff]  ;;  %v7136_v13 = vld [vmem:[#allocation19_spill] sm:$0xff]  ;;  %v7138_v19 = vld [vmem:[#allocation90_spill] sm:$0xff] }
 0x2a9   : >> { %v3033_v5 = vmul.f32 %v6480_v10, %v7133_v17  ;;  %v2823_v59 = vsel %vm2807_vm13, %v7134_v14, 0.0  ;;  %v2824_v60 = vsel %vm2808_vm11, %v7135_v0, 0.0  ;;  %v2934_v17 = vmul.f32 %v6322_v6, %v7136_v13  ;;  %v7137_v12 = vld [vmem:[#allocation32_spill] sm:$0xff] }
 0x2aa   : >> { %3819 = vmatpush3.bf16.msra.mxu1 %v3818_v24  ;;  %v2860_v18 = vmul.f32 %v6482_v49, %v6263_v39  ;;  %v3034_v7 = vmul.f32 %v6482_v49, %v6267_v33  ;;  %3867 = vmatpush3.bf16.msra.mxu0 %v3866_v1  ;;  %v6502_v31 = vadd.f32 %v2823_v59, %v2791_v11 }
 0x2ab   : >> { %3820 = vmatprep.subr.bf16.mxu1 %v7099_v21  ;;  %3868 = vmatprep.subr.bf16.mxu0 %v7099_v21  ;;  %v6504_v16 = vadd.f32 %v2824_v60, %v2792_v28  ;;  %v2935_v1 = vmul.f32 %v6324_v3, %v7137_v12  ;;  %v7141_v12 = vld [vmem:[#allocation30_spill] sm:$0xff]  ;;  %v2843_v60 = vld [vmem:[%s6525_s24] sm:$0xff] }
 0x2ac   : >> { %v3821_v4 = vpack.c.bf16 %v2860_v18, %v2859_v2  ;;  %v3869_v24 = vpack.c.bf16 %v3034_v7, %v3033_v5  ;;  %v2861_v14 = vmul.f32 %v6502_v31, %v7138_v19  ;;  %v7139_v2 = vld [vmem:[#allocation92_spill] sm:$0xff]  ;;  %v7140_v18 = vld [vmem:[#allocation11_spill] sm:$0xff]  ;;  %v3109_v7 = vmul.f32 %v6324_v3, %v7141_v12 }
 0x2ad   : >> { %v2862_v0 = vmul.f32 %v6504_v16, %v6280_v40  ;;  %v3035_v11 = vmul.f32 %v6502_v31, %v7139_v2  ;;  %v3036_v28 = vmul.f32 %v6504_v16, %v6284_v48  ;;  %v3108_v5 = vmul.f32 %v6322_v6, %v7140_v18  ;;  %v7143_v2 = vld [vmem:[#allocation57_spill] sm:$0xff]  ;;  %v2845_v3 = vld [vmem:[%s6525_s24 + $0x10] sm:$0xff] }
 0x2ae   : >> { %3822 = vmatpush3.bf16.msra.mxu1 %v3821_v4  ;;  %3870 = vmatpush3.bf16.msra.mxu0 %v3869_v24  ;;  %v3827_v4 = vpack.c.bf16 %v2935_v1, %v2934_v17  ;;  %v7142_v24 = vld [vmem:[#allocation48_spill] sm:$0xff]  ;;  %v2937_v6 = vmul.f32 %v6352_v55, %v7143_v2  ;;  %v7146_v1 = vld [vmem:[#allocation38_spill] sm:$0xff] }
 0x2af   : >> { %3823 = vmatprep.subr.bf16.mxu1 %v7099_v21  ;;  %3871 = vmatprep.subr.bf16.mxu0 %v7099_v21  ;;  %v3824_v19 = vpack.c.bf16 %v2862_v0, %v2861_v14  ;;  %v3872_v59 = vpack.c.bf16 %v3036_v28, %v3035_v11  ;;  %v2936_v13 = vmul.f32 %v6350_v62, %v7142_v24  ;;  %v7144_v0 = vld [vmem:[#allocation33_spill] sm:$0xff]  ;;  %v7145_v11 = vld [vmem:[#allocation58_spill] sm:$0xff] }
 0x2b0   : >> { %v3875_v18 = vpack.c.bf16 %v3109_v7, %v3108_v5  ;;  %v3110_v14 = vmul.f32 %v6350_v62, %v7144_v0  ;;  %v3111_v28 = vmul.f32 %v6352_v55, %v7145_v11  ;;  %v2938_v12 = vmul.f32 %v6372_v15, %v7146_v1  ;;  %v7148_v62 = vld [vmem:[#allocation45_spill] sm:$0xff]  ;;  %v7149_v55 = vld [vmem:[#allocation72_spill] sm:$0xff]  ;;  %v7154_v0 = vld [vmem:[#allocation79_spill] sm:$0xff] }
 0x2b1   : >> { %v3830_v17 = vpack.c.bf16 %v2937_v6, %v2936_v13  ;;  %v3112_v7 = vmul.f32 %v6372_v15, %v7148_v62  ;;  %v3113_v24 = vmul.f32 %v6376_v9, %v7149_v55  ;;  %v7151_v13 = vld [vmem:[#allocation20_spill] sm:$0xff]  ;;  %v7152_v6 = vld [vmem:[#allocation78_spill] sm:$0xff]  ;;  %v7156_v1 = vld [vmem:[#allocation17_spill] sm:$0xff] }
 0x2b2   : >> { %3825 = vmatpush3.bf16.msra.mxu1 %v3824_v19  ;;  %3873 = vmatpush3.bf16.msra.mxu0 %v3872_v59  ;;  %v7147_v19 = vld [vmem:[#allocation71_spill] sm:$0xff]  ;;  %v3878_v5 = vpack.c.bf16 %v3111_v28, %v3110_v14  ;;  %v2940_v2 = vmul.f32 %v6402_v37, %v7151_v13  ;;  %v3115_v14 = vmul.f32 %v6404_v25, %v7154_v0  ;;  %v7155_v28 = vld [vmem:[#allocation62_spill] sm:$0xff]  ;;  %v7161_v13 = vld [vmem:[#allocation76_spill] sm:$0xff] }
 0x2b3   : >> { %3826 = vmatprep.subr.bf16.mxu1 %v7099_v21  ;;  %3874 = vmatprep.subr.bf16.mxu0 %v7099_v21  ;;  %v2939_v59 = vmul.f32 %v6376_v9, %v7147_v19  ;;  %v3881_v15 = vpack.c.bf16 %v3113_v24, %v3112_v7  ;;  %v7153_v9 = vld [vmem:[#allocation54_spill] sm:$0xff]  ;;  %v7160_v24 = vld [vmem:[#allocation97_spill] sm:$0xff] }
 0x2b4   : >> { %v7159_v7 = vld [vmem:[#allocation74_spill] sm:$0xff] }
 0x2b5   : >> { %3695 = vmatmul.mubr.f32.vlgmr.msra.gmra.mrb[0].mxu1 %v2843_v60  ;;  %3765 = vmatmul.mubr.f32.vlgmr.msra.gmra.mrb[0].mxu0 %v2845_v3  ;;  %v7150_v60 = vmov 0.0   ;;  %v2941_v3 = vmul.f32 %v6404_v25, %v7152_v6  ;;  %v2944_v55 = vmul.f32 %v6454_v30, %v7159_v7  ;;  %v2846_v7 = vld [vmem:[%s6525_s24 + $0x18] sm:$0xff] }
 0x2b6   : >> { %3828 = vmatpush3.bf16.msra.mxu1 %v3827_v4  ;;  %3876 = vmatpush3.bf16.msra.mxu0 %v3875_v18  ;;  %v3833_v4 = vpack.c.bf16 %v2939_v59, %v2938_v12  ;;  %v3114_v18 = vmul.f32 %v6402_v37, %v7153_v9  ;;  %v2943_v12 = vmul.f32 %v6430_v8, %v7156_v1  ;;  %v7157_v59 = vld [vmem:[#allocation64_spill] sm:$0xff]  ;;  %v7164_v9 = vld [vmem:[#allocation101_spill] sm:$0xff] }
 0x2b7   : >> { %3829 = vmatprep.subr.bf16.mxu1 %v7099_v21  ;;  %3877 = vmatprep.subr.bf16.mxu0 %v7099_v21  ;;  %v3836_v11 = vpack.c.bf16 %v2941_v3, %v2940_v2  ;;  %v3116_v37 = vmul.f32 %v6428_v58, %v7157_v59  ;;  %v7162_v2 = vld [vmem:[#allocation99_spill] sm:$0xff] }
 0x2b8   : >> { %3729 = vmatprep.mubr.msk.f32.mxu1 %vm4217_vm9, %v7150_v60  ;;  %3799 = vmatprep.mubr.msk.f32.mxu0 %vm4217_vm9, %v7150_v60  ;;  %v3884_v19 = vpack.c.bf16 %v3115_v14, %v3114_v18  ;;  %v2945_v60 = vmul.f32 %v6456_v22, %v7160_v24  ;;  %v7163_v3 = vld [vmem:[#allocation83_spill] sm:$0xff]  ;;  %v2947_v18 = vmul.f32 %v6482_v49, %v7164_v9  ;;  %v7165_v14 = vld [vmem:[#allocation85_spill] sm:$0xff]  ;;  %vm3200_vm9 = vcmask (%p2755_p12), 57344  }
 0x2ba   : >> { %3831 = vmatpush3.bf16.msra.mxu1 %v3830_v17  ;;  %3879 = vmatpush3.bf16.msra.mxu0 %v3878_v5  ;;  %v2942_v17 = vmul.f32 %v6428_v58, %v7155_v28  ;;  %v7158_v5 = vld [vmem:[#allocation28_spill] sm:$0xff]  ;;  %v3118_v58 = vmul.f32 %v6454_v30, %v7161_v13  ;;  %v3842_v6 = vpack.c.bf16 %v2945_v60, %v2944_v55 }
 0x2bb   : >> { %3832 = vmatprep.subr.bf16.mxu1 %v7099_v21  ;;  %3880 = vmatprep.subr.bf16.mxu0 %v7099_v21  ;;  %v3117_v25 = vmul.f32 %v6430_v8, %v7158_v5  ;;  %v3119_v8 = vmul.f32 %v6456_v22, %v7162_v2  ;;  %v3120_v30 = vmul.f32 %v6480_v10, %v7165_v14  ;;  %v7170_v55 = vld [vmem:[#allocation108_spill] sm:$0xff] }
 0x2bc   : >> { %v3839_v62 = vpack.c.bf16 %v2943_v12, %v2942_v17  ;;  %v7167_v17 = vld [vmem:[#allocation91_spill] sm:$0xff]  ;;  %v2949_v12 = vmul.f32 %v6504_v16, %v6282_v23 }
 0x2bd   : >> { %v3890_v0 = vpack.c.bf16 %v3119_v8, %v3118_v58  ;;  %v2948_v1 = vmul.f32 %v6502_v31, %v7167_v17 }
 0x2be   : >> { %3834 = vmatpush3.bf16.msra.mxu1 %v3833_v4  ;;  %3882 = vmatpush3.bf16.msra.mxu0 %v3881_v15  ;;  %v3887_v4 = vpack.c.bf16 %v3117_v25, %v3116_v37  ;;  %v2946_v15 = vmul.f32 %v6480_v10, %v7163_v3  ;;  %v7168_v10 = vld [vmem:[#allocation93_spill] sm:$0xff]  ;;  %v7174_v3 = vld [vmem:[#allocation8_spill] sm:$0xff] (%p2755_p12) }
 0x2bf   : >> { %3835 = vmatprep.subr.bf16.mxu1 %v7099_v21  ;;  %3883 = vmatprep.subr.bf16.mxu0 %v7099_v21  ;;  %v3122_v59 = vmul.f32 %v6502_v31, %v7168_v10  ;;  %v3848_v5 = vpack.c.bf16 %v2949_v12, %v2948_v1  ;;  %v7175_v61 = vsub.s32 (%p2755_p12), 0, %v7174_v3 }
 0x2c0   : >> { %v3845_v28 = vpack.c.bf16 %v2947_v18, %v2946_v15 }
 0x2c2   : >> { %3837 = vmatpush3.bf16.msra.mxu1 %v3836_v11  ;;  %3885 = vmatpush3.bf16.msra.mxu0 %v3884_v19  ;;  %v7166_v11 = vld [vmem:[#allocation102_spill] sm:$0xff] }
 0x2c3   : >> { %3838 = vmatprep.subr.bf16.mxu1 %v7099_v21  ;;  %3886 = vmatprep.subr.bf16.mxu0 %v7099_v21  ;;  %v3121_v22 = vmul.f32 %v6482_v49, %v7166_v11  ;;  %v7169_v49 = vld [vmem:[#allocation106_spill] sm:$0xff] }
 0x2c4   : >> { %v3123_v37 = vmul.f32 %v6504_v16, %v7169_v49 }
 0x2c5   : >> { %v3893_v19 = vpack.c.bf16 %v3121_v22, %v3120_v30 }
 0x2c6   : >> { %3840 = vmatpush3.bf16.msra.mxu1 %v3839_v62  ;;  %3888 = vmatpush3.bf16.msra.mxu0 %v3887_v4  ;;  %v3896_v25 = vpack.c.bf16 %v3123_v37, %v3122_v59  ;;  %v2844_v62 = vld [vmem:[%s6525_s24 + $0x8] sm:$0xff] }
 0x2c7   : >> { %3841 = vmatprep.subr.bf16.mxu1 %v7099_v21  ;;  %3889 = vmatprep.subr.bf16.mxu0 %v7099_v21 }
 0x2ca   : >> { %3843 = vmatpush3.bf16.msra.mxu1 %v3842_v6  ;;  %3891 = vmatpush3.bf16.msra.mxu0 %v3890_v0 }
 0x2cb   : >> { %3844 = vmatprep.subr.bf16.mxu1 %v7099_v21  ;;  %3892 = vmatprep.subr.bf16.mxu0 %v7099_v21 }
 0x2ce   : >> { %3846 = vmatpush3.bf16.msra.mxu1 %v3845_v28  ;;  %3894 = vmatpush3.bf16.msra.mxu0 %v3893_v19 }
 0x2cf   : >> { %3847 = vmatprep.subr.bf16.mxu1 %v7099_v21  ;;  %3895 = vmatprep.subr.bf16.mxu0 %v7099_v21  ;;  %v7173_v21 = vld [vmem:[#allocation107_spill] sm:$0xff] (%p2755_p12) }
 0x2d0   : > { %3201 = vst.msk [vmem:[#allocation4] sm:$0x1] (%p2755_p12), %vm3200_vm9, %v7173_v21 }
 0x2d2   : >> { %3849 = vmatpush3.bf16.msra.mxu1 %v3848_v5  ;;  %3897 = vmatpush3.bf16.msra.mxu0 %v3896_v25 }
 0x2d5   : >> { %3730 = vmatmul.mubr.f32.vlgmr.msra.gmra.mrb[0].mxu1 %v2844_v62  ;;  %3800 = vmatmul.mubr.f32.vlgmr.msra.gmra.mrb[0].mxu0 %v2846_v7 }
 0x2d7   : > { %v3217_v58 = vld [vmem:[#allocation4] sm:$0x1] (%p2755_p12) }
 0x2d8   : > { %vm3218_vm6 = vcmp.eq.f32.partialorder (%p2755_p12), %v3217_v58, 0.0 }
 0x2d9   : > { %v3219_v2 = vsel (%p2755_p12), %vm3218_vm6, 1.0, %v3217_v58 }
 0x2da   : > { %4116 = vrcp.f32 (%p2755_p12), %v3219_v2 }
 0x2e4   : > { %v4117_v8 = vpop.eup (%p2755_p12), %4116 }
 0x2e5   : > { %v3226_v51 = vrot.slane (%p2755_p12), %v4117_v8, %v7175_v61 }
 0x3a7   : > { %2757 = sbr.rel (!%p2755_p12) target bundleno = 651 (0x28b), region = 104 }
 0x3a8   : >> { %v3016_v31 = vpop.f32.mrb[0].mxu1  ;;  %v3190_v16 = vpop.f32.mrb[0].mxu0 }
 0x3a9   : >> { %v3900_v24 = vadd.f32 %v7170_v55, %v3016_v31  ;;  %v3731_v60 = vpop.f32.mrb[1].mxu1  ;;  %v3801_v4 = vpop.f32.mrb[1].mxu0 }
 0x3ab   : >> { %v3901_v13 = vadd.f32 %v3900_v24, %v3190_v16  }
 0x3ad   : >> { %v7171_v62 = vmov %v3901_v13  ;;  %3199 = vst.msk [vmem:[#allocation3] sm:$0xff] (%p2755_p12), %vm7172_vm10, %v3901_v13 }
 0x3b4   : > { %v3216_v6 = vld [vmem:[#allocation3] sm:$0xff] }
 0x3b5   : > { %v3228_v50 = vmul.f32 %v3226_v51, %v3216_v6 }
 0x3b7   : > { %3229 = vst.msk [vmem:[%s317_s13] sm:$0xff] %vm7176_vm0, %v3228_v50 }
 0x3b8   : > { %4131 = shalt.err (!%p4128_p6)
}
 0x3b9   : > { %s4132_s7 = scalar_lea.hbm %s6623_s8, 128  ;;  %s4136_s15 = scalar_lea.hbm %s6680_s5, 256 }
 0x3ba   : > { %p4133_p7 = scmp.ne.s32.totalorder %s6623_s8, %s4132_s7  ;;  %p4137_p11 = scmp.lt.u32.totalorder %s6623_s8, %s6680_s5 }
 0x3bb   : > { %p4138_p12 = scmp.lt.u32.totalorder %s4136_s15, %s4132_s7  ;;  %p4140_p0 = scmp.lt.u32.totalorder %s4132_s7, %s6623_s8 }
 0x3bc   : > { %p4134_p9 = pnand %p4133_p7, %p4290_p4 }
 0x3bd   : > { %p4139_p13 = por %p4138_p12, %p4137_p11 }
 0x3be   : > { %p4135_p10 = pneg %p4134_p9 }
 0x3bf   : > { %p4141_p1 = por %p4140_p0, %p4139_p13 }
 0x3c1   : > { %p4142_p2 = pnand %p4141_p1, %p4135_p10 }
 0x3c3   : > { %4145 = shalt.err (!%p4142_p2)
}
 0x3c4   : > { %3970 = dma.vmem_to_hbm [thread:$0]  (%p4290_p4), %s6625_s27, 128, %s6623_s8, %s3231_s21  }
 0x3c5 PF: > { %p3976_p3 = scmp.ge.s32.totalorder %s4204_s23, 2  ;;  %s3257_s25 = sand.u32 1, %s4184_s18  }
 0x3c6   : > { %s3258_s17 = scalar_lea.sflag [#allocation6], %s3257_s25 }
 0x3c7   : > { %p3973_p5 = pnand %p3976_p3, %p4297_p8 }
 0x3c9   : > { %4179 = dma.done.wait (!%p3973_p5), %s3258_s17, 128  }
 0x3ca   : > { %4181 = vsyncadd (!%p3973_p5), %s3258_s17, 4294967168  ;;  %s18_s23 = sadd.s32 1, %s4204_s23   ;;  %s7177_s18 = smov %s4188_s19 }
 0x3cb   : > { %p15_p6 = scmp.ge.s32.totalorder %s18_s23, 4   ;;  %s7178_s19 = smov %s4192_s20 }
 0x3cc   : > { %s7179_s20 = smov %s4303_s6  ;;  %s7180_s21 = smov %s4200_s22 }
 0x3cd   : > { %s7181_s22 = smov %s7183_s26  ;;  %17 = sbr.rel (!%p15_p6) target bundleno = 4 (0x4), region = 115 }
 0x3d4   :  { %3263 = vsyncpa [#allocation6], 1 }
 0x3d5   :  { %3265 = vsyncpa [#allocation6 + $0x1], 1 }

</bundles_post_ra>
